<compile_context>
chip_gen: v5e
topology: v5e:2x2
jax: 0.10.0
libtpu: 0.0.40
codegen_flags: <defaults>
</compile_context>

<pallas_src>
import math

import jax
import jax.numpy as jnp
from jax import lax
from jax.experimental import pallas as pl
from jax.experimental.pallas import tpu as pltpu

# ----------------------------- tiny T5 config --------------------------------
VOCAB = 64
D_MODEL = 32
D_KV = 8
NUM_HEADS = 4          # inner_dim = NUM_HEADS * D_KV = 32
INNER = NUM_HEADS * D_KV
D_FF = 64
NUM_ENC_LAYERS = 2
NUM_DEC_LAYERS = 2
REL_BUCKETS = 32
REL_MAX_DIST = 128
EPS = 1e-6
NEG_INF = -1e9


# ----------------------- relative-position bias (host glue) -------------------
def relative_position_bucket(rel_pos, bidirectional, num_buckets, max_distance):
    ret = jnp.zeros_like(rel_pos)
    if bidirectional:
        num_buckets //= 2
        ret = ret + (rel_pos > 0).astype(jnp.int32) * num_buckets
        rel_pos = jnp.abs(rel_pos)
    else:
        rel_pos = -jnp.minimum(rel_pos, 0)
    max_exact = num_buckets // 2
    is_small = rel_pos < max_exact
    safe = jnp.maximum(rel_pos, 1).astype(jnp.float32)
    rel_large = max_exact + (
        jnp.log(safe / max_exact) / math.log(max_distance / max_exact)
        * (num_buckets - max_exact)
    ).astype(jnp.int32)
    rel_large = jnp.minimum(rel_large, num_buckets - 1)
    return ret + jnp.where(is_small, rel_pos, rel_large)


def compute_position_bias(rel_bias_weight, q_len, k_len, bidirectional):
    context = jnp.arange(q_len, dtype=jnp.int32)[:, None]
    memory = jnp.arange(k_len, dtype=jnp.int32)[None, :]
    buckets = relative_position_bucket(memory - context, bidirectional,
                                       REL_BUCKETS, REL_MAX_DIST)
    values = rel_bias_weight[buckets]            # [q, k, H]
    return values.transpose(2, 0, 1)             # [H, q, k]


# --------------------------- fused whole-model forward -------------------------
def t5_dense_encode(params, input_ids, attention_mask, decoder_input_ids):
    """Equivalent of T5DenseEncoder.encode(): decoder last_hidden_state squeezed."""
    B, Le = input_ids.shape
    Ld = decoder_input_ids.shape[1]
    assert Ld == 1  # module contract: hidden_state.size(1) == 1
    D, H, dk, HK, F = D_MODEL, NUM_HEADS, D_KV, INNER, D_FF
    NE, ND = NUM_ENC_LAYERS, NUM_DEC_LAYERS
    R = B * Le                                   # flattened encoder rows

    # ---- host glue: embedding gather, bias packing, weight slab packing ----
    enc_x = params["embed"][input_ids].reshape(R, D)
    dec_x = params["embed"][decoder_input_ids].reshape(B * Ld, D)

    mask_bias = (1.0 - attention_mask.astype(jnp.float32)) * NEG_INF       # [B, Le]
    enc_pos = compute_position_bias(params["enc_rel_bias"], Le, Le, True)  # [H, Le, Le]

    # Encoder self-attention bias laid out block-diagonally over the flattened
    # (batch*seq) row/col axes: combines relative-position bias, attention mask
    # and batch separation, so the in-kernel attention is one row-batched 2-D
    # matmul per head.  Off-diagonal (cross-batch) entries get -1e9 and underflow
    # to exactly 0 in the softmax.
    # TODO(synk): O(H*(B*L)^2) — fine here, switch to per-batch bias at real sizes.
    enc_bias = jnp.full((H, R, R), NEG_INF, dtype=jnp.float32)
    for b in range(B):
        blk = enc_pos + mask_bias[b][None, None, :]
        enc_bias = enc_bias.at[:, b * Le:(b + 1) * Le, b * Le:(b + 1) * Le].set(blk)

    # Decoder->encoder cross-attention bias (no position bias in T5 cross-attn):
    # attention mask + batch block structure over flattened encoder keys.
    cross_bias = jnp.full((B * Ld, R), NEG_INF, dtype=jnp.float32)
    for b in range(B):
        cross_bias = cross_bias.at[b, b * Le:(b + 1) * Le].set(mask_bias[b])

    enc, dec = params["encoder"], params["decoder"]

    # LayerNorm weights: one stacked slab, indexed by static row in-kernel.
    ln_rows = []
    for lp in enc:
        ln_rows += [lp["ln1"], lp["ln2"]]
    ln_rows.append(params["enc_final_ln"])
    for lp in dec:
        ln_rows += [lp["ln1"], lp["ln2"], lp["ln3"]]
    ln_rows.append(params["dec_final_ln"])
    ln_all = jnp.stack(ln_rows)[:, None, :]                  # [n_norms, 1, D]
    ENC_LN1 = lambda l: 2 * l
    ENC_LN2 = lambda l: 2 * l + 1
    ENC_FLN = 2 * NE
    DEC_LN1 = lambda l: 2 * NE + 1 + 3 * l
    DEC_LN2 = lambda l: 2 * NE + 1 + 3 * l + 1
    DEC_LN3 = lambda l: 2 * NE + 1 + 3 * l + 2
    DEC_FLN = 2 * NE + 1 + 3 * ND

    def stack(getter, layers):
        return jnp.stack([getter(lp) for lp in layers])

    # Per-layer "input-side" (x @ W) weights concatenated along lanes and
    # "output-side" (ctx/ffn @ W) weights concatenated along sublanes.
    enc_win = stack(lambda lp: jnp.concatenate(
        [lp["attn"]["wq"], lp["attn"]["wk"], lp["attn"]["wv"], lp["wi"]],
        axis=1), enc)                                        # [NE, D, 3HK+F]
    enc_wout = stack(lambda lp: jnp.concatenate(
        [lp["attn"]["wo"], lp["wo"]], axis=0), enc)          # [NE, HK+F, D]
    # Decoder self-attention with Ld == 1: softmax over a single key is exactly
    # 1.0, so its output equals V and wq/wk (and the decoder relative-position
    # bias) provably do not affect the result — they are not packed.
    dec_win = stack(lambda lp: jnp.concatenate(
        [lp["self_attn"]["wv"],
         lp["cross_attn"]["wq"], lp["cross_attn"]["wk"], lp["cross_attn"]["wv"],
         lp["wi"]], axis=1), dec)                            # [ND, D, 4HK+F]
    dec_wout = stack(lambda lp: jnp.concatenate(
        [lp["self_attn"]["wo"], lp["cross_attn"]["wo"], lp["wo"]],
        axis=0), dec)                                        # [ND, 2HK+F, D]

    inputs = [enc_x, dec_x, enc_bias, cross_bias, ln_all,
              enc_win, enc_wout, dec_win, dec_wout]

    # ------------------------- the single fused kernel -------------------------
    def kernel(enc_x_ref, dec_x_ref, enc_bias_ref, cross_bias_ref, ln_ref,
               enc_win_ref, enc_wout_ref, dec_win_ref, dec_wout_ref, out_ref):

        # Hoisted loads: bias slabs are reused by every layer / head.
        enc_b = enc_bias_ref[...]                            # [H, R, R]
        cross_b = cross_bias_ref[...]                        # [B*Ld, R]

        def ln(idx):
            return ln_ref[idx]                               # [1, D]

        def rmsnorm(x, w_row):                               # x [rows, D]
            var = jnp.mean(x * x, axis=-1, keepdims=True)
            return x * lax.rsqrt(var + EPS) * w_row

        def mm(a, b):
            return jnp.dot(a, b, preferred_element_type=jnp.float32)

        def attention(q, k, v, bias_fn):
            # q [Rq, HK], k/v [Rk, HK].  One row-batched 2-D matmul pair per head;
            # per-head context stays in vregs and is concatenated along lanes —
            # no VMEM scratch, no masked partial stores.
            # T5 does NOT scale scores by 1/sqrt(d_kv).
            ctx = []
            for h in range(H):
                sl = slice(h * dk, (h + 1) * dk)
                s = lax.dot_general(q[:, sl], k[:, sl], (((1,), (1,)), ((), ())),
                                    preferred_element_type=jnp.float32)
                s = s + bias_fn(h)
                m = jnp.max(s, axis=-1, keepdims=True)
                p = jnp.exp(s - m)
                inv = pl.reciprocal(jnp.sum(p, axis=-1, keepdims=True),
                                    approx=True)
                ctx.append(mm(p * inv, v[:, sl]))
            return jnp.concatenate(ctx, axis=-1)             # [Rq, HK]

        # ---------------- encoder ----------------
        h_e = enc_x_ref[...]                                 # [R, D]
        for l in range(NE):
            w_in = enc_win_ref[l]                            # [D, 3HK+F]
            w_out = enc_wout_ref[l]                          # [HK+F, D]
            n = rmsnorm(h_e, ln(ENC_LN1(l)))
            qkv = mm(n, w_in[:, 0:3 * HK])                   # fused QKV projection
            ctx = attention(qkv[:, 0:HK], qkv[:, HK:2 * HK], qkv[:, 2 * HK:3 * HK],
                            lambda hh: enc_b[hh])
            h_e = h_e + mm(ctx, w_out[0:HK, :])
            n = rmsnorm(h_e, ln(ENC_LN2(l)))
            h_e = h_e + mm(jnp.maximum(mm(n, w_in[:, 3 * HK:3 * HK + F]), 0.0),
                           w_out[HK:HK + F, :])
        enc_out = rmsnorm(h_e, ln(ENC_FLN))

        # ---------------- decoder (length-1 target sequence) ----------------
        h_d = dec_x_ref[...]                                 # [B*Ld, D]
        for l in range(ND):
            w_in = dec_win_ref[l]                            # [D, 4HK+F]
            w_out = dec_wout_ref[l]                          # [2HK+F, D]

            # Self-attention: Ld == 1 ⇒ softmax over one key is 1.0 ⇒ ctx == V.
            # TODO(synk): for Ld > 1 restore causal-masked self-attention + dec pos bias.
            n = rmsnorm(h_d, ln(DEC_LN1(l)))
            v_self = mm(n, w_in[:, 0:HK])
            h_d = h_d + mm(v_self, w_out[0:HK, :])

            # Cross-attention over encoder output (zero position bias in T5).
            n = rmsnorm(h_d, ln(DEC_LN2(l)))
            q = mm(n, w_in[:, HK:2 * HK])                    # [B*Ld, HK]
            kv = mm(enc_out, w_in[:, 2 * HK:4 * HK])         # fused cross K/V [R, 2HK]
            ctx = attention(q, kv[:, 0:HK], kv[:, HK:2 * HK],
                            lambda hh: cross_b)
            h_d = h_d + mm(ctx, w_out[HK:2 * HK, :])

            # Feed-forward (ReLU).
            n = rmsnorm(h_d, ln(DEC_LN3(l)))
            h_d = h_d + mm(jnp.maximum(mm(n, w_in[:, 4 * HK:4 * HK + F]), 0.0),
                           w_out[2 * HK:2 * HK + F, :])

        out_ref[...] = rmsnorm(h_d, ln(DEC_FLN))             # [B*Ld, D]

    in_specs = [pl.BlockSpec(x.shape, (lambda nd: (lambda i: (0,) * nd))(x.ndim))
                for x in inputs]

    out = pl.pallas_call(
        kernel,
        out_shape=jax.ShapeDtypeStruct((B * Ld, D), jnp.float32),
        grid=(1,),
        in_specs=in_specs,
        out_specs=pl.BlockSpec((B * Ld, D), lambda i: (0, 0)),
        compiler_params=pltpu.CompilerParams(
            dimension_semantics=("arbitrary",)),
    )(*inputs)

    # hidden_state.dim() == 3 and size(1) == 1 -> squeeze(1); Ld == 1 so rows == B.
    return out                                               # [B, D]


# ------------------------------ parameter init --------------------------------
def init_params(key):
    keys = iter(jax.random.split(key, 256))

    def nrm(shape, scale=0.02):
        return scale * jax.random.normal(next(keys), shape, dtype=jnp.float32)

    def attn_params():
        return {"wq": nrm((D_MODEL, INNER)),
                "wk": nrm((D_MODEL, INNER)),
                "wv": nrm((D_MODEL, INNER)),
                "wo": nrm((INNER, D_MODEL))}

    params = {
        "embed": nrm((VOCAB, D_MODEL), 1.0),
        "enc_rel_bias": nrm((REL_BUCKETS, NUM_HEADS)),
        "dec_rel_bias": nrm((REL_BUCKETS, NUM_HEADS)),   # unused: no effect when Ld == 1
        "enc_final_ln": jnp.ones((D_MODEL,), jnp.float32),
        "dec_final_ln": jnp.ones((D_MODEL,), jnp.float32),
        "encoder": [],
        "decoder": [],
    }
    for _ in range(NUM_ENC_LAYERS):
        params["encoder"].append({
            "ln1": jnp.ones((D_MODEL,), jnp.float32),
            "attn": attn_params(),
            "ln2": jnp.ones((D_MODEL,), jnp.float32),
            "wi": nrm((D_MODEL, D_FF)),
            "wo": nrm((D_FF, D_MODEL)),
        })
    for _ in range(NUM_DEC_LAYERS):
        params["decoder"].append({
            "ln1": jnp.ones((D_MODEL,), jnp.float32),
            "self_attn": attn_params(),
            "ln2": jnp.ones((D_MODEL,), jnp.float32),
            "cross_attn": attn_params(),
            "ln3": jnp.ones((D_MODEL,), jnp.float32),
            "wi": nrm((D_MODEL, D_FF)),
            "wo": nrm((D_FF, D_MODEL)),
        })
    return params


# ----------------------------------- main --------------------------------------
if __name__ == "__main__":
    key = jax.random.PRNGKey(0)
    pkey, ikey = jax.random.split(key)
    params = init_params(pkey)

    B, Le = 2, 8
    input_ids = jax.random.randint(ikey, (B, Le), 0, VOCAB, dtype=jnp.int32)
    attention_mask = jnp.ones((B, Le), dtype=jnp.int32)
    decoder_input_ids = jnp.zeros((B, 1), dtype=jnp.int32)   # decoder_start_token_id = 0

    encode = jax.jit(t5_dense_encode)
    out = encode(params, input_ids, attention_mask, decoder_input_ids)
    out = jax.block_until_ready(out)
    assert out.shape == (B, D_MODEL) and out.dtype == jnp.float32
    assert bool(jnp.all(jnp.isfinite(out)))
    print("KERNEL_OK")
</pallas_src>

<mosaic_0001>
module attributes {stable_mosaic.version = 11 : i64} {
  func.func @kernel(%arg0: i32, %arg1: memref<16x32xf32, #tpu.memory_space<vmem>>, %arg2: memref<2x32xf32, #tpu.memory_space<vmem>>, %arg3: memref<4x16x16xf32, #tpu.memory_space<vmem>>, %arg4: memref<2x16xf32, #tpu.memory_space<vmem>>, %arg5: memref<12x1x32xf32, #tpu.memory_space<vmem>>, %arg6: memref<2x32x160xf32, #tpu.memory_space<vmem>>, %arg7: memref<2x96x32xf32, #tpu.memory_space<vmem>>, %arg8: memref<2x32x192xf32, #tpu.memory_space<vmem>>, %arg9: memref<2x128x32xf32, #tpu.memory_space<vmem>>, %arg10: memref<2x32xf32, #tpu.memory_space<vmem>>) attributes {dimension_semantics = [#tpu.dimension_semantics<arbitrary>], iteration_bounds = array<i64: 1>, scalar_prefetch = 0 : i64, scratch_operands = 0 : i64, tpu.core_type = #tpu.core_type<tc>, window_params = [{pipeline_mode = #tpu.pipeline_mode<synchronous>, transform_indices = @transform_0, window_bounds = array<i64: 16, 32>}, {pipeline_mode = #tpu.pipeline_mode<synchronous>, transform_indices = @transform_1, window_bounds = array<i64: 2, 32>}, {pipeline_mode = #tpu.pipeline_mode<synchronous>, transform_indices = @transform_2, window_bounds = array<i64: 4, 16, 16>}, {pipeline_mode = #tpu.pipeline_mode<synchronous>, transform_indices = @transform_3, window_bounds = array<i64: 2, 16>}, {pipeline_mode = #tpu.pipeline_mode<synchronous>, transform_indices = @transform_4, window_bounds = array<i64: 12, 1, 32>}, {pipeline_mode = #tpu.pipeline_mode<synchronous>, transform_indices = @transform_5, window_bounds = array<i64: 2, 32, 160>}, {pipeline_mode = #tpu.pipeline_mode<synchronous>, transform_indices = @transform_6, window_bounds = array<i64: 2, 96, 32>}, {pipeline_mode = #tpu.pipeline_mode<synchronous>, transform_indices = @transform_7, window_bounds = array<i64: 2, 32, 192>}, {pipeline_mode = #tpu.pipeline_mode<synchronous>, transform_indices = @transform_8, window_bounds = array<i64: 2, 128, 32>}, {pipeline_mode = #tpu.pipeline_mode<synchronous>, transform_indices = @transform_9, window_bounds = array<i64: 2, 32>}]} {
    %c0 = arith.constant 0 : index
    %c0_0 = arith.constant 0 : index
    %c0_1 = arith.constant 0 : index
    %0 = vector.load %arg3[%c0, %c0_0, %c0_1] : memref<4x16x16xf32, #tpu.memory_space<vmem>>, vector<4x16x16xf32>
    %c0_2 = arith.constant 0 : index
    %c0_3 = arith.constant 0 : index
    %1 = vector.load %arg4[%c0_2, %c0_3] : memref<2x16xf32, #tpu.memory_space<vmem>>, vector<2x16xf32>
    %c0_4 = arith.constant 0 : index
    %c0_5 = arith.constant 0 : index
    %2 = vector.load %arg1[%c0_4, %c0_5] : memref<16x32xf32, #tpu.memory_space<vmem>>, vector<16x32xf32>
    %c0_6 = arith.constant 0 : index
    %c0_7 = arith.constant 0 : index
    %c0_8 = arith.constant 0 : index
    %3 = vector.load %arg6[%c0_6, %c0_7, %c0_8] : memref<2x32x160xf32, #tpu.memory_space<vmem>>, vector<1x32x160xf32>
    %4 = vector.shape_cast %3 : vector<1x32x160xf32> to vector<32x160xf32>
    %c0_9 = arith.constant 0 : index
    %c0_10 = arith.constant 0 : index
    %c0_11 = arith.constant 0 : index
    %5 = vector.load %arg7[%c0_9, %c0_10, %c0_11] : memref<2x96x32xf32, #tpu.memory_space<vmem>>, vector<1x96x32xf32>
    %6 = vector.shape_cast %5 : vector<1x96x32xf32> to vector<96x32xf32>
    %c0_12 = arith.constant 0 : index
    %c0_13 = arith.constant 0 : index
    %c0_14 = arith.constant 0 : index
    %7 = vector.load %arg5[%c0_12, %c0_13, %c0_14] : memref<12x1x32xf32, #tpu.memory_space<vmem>>, vector<1x1x32xf32>
    %8 = vector.shape_cast %7 : vector<1x1x32xf32> to vector<1x32xf32>
    %9 = arith.mulf %2, %2 : vector<16x32xf32>
    %cst = arith.constant dense<0.000000e+00> : vector<16xf32>
    %10 = vector.multi_reduction <add>, %9, %cst [1] : vector<16x32xf32> to vector<16xf32>
    %11 = vector.shape_cast %10 : vector<16xf32> to vector<16x1xf32>
    %cst_15 = arith.constant 3.200000e+01 : f32
    %12 = vector.broadcast %cst_15 : f32 to vector<16x1xf32>
    %13 = arith.divf %11, %12 : vector<16x1xf32>
    %cst_16 = arith.constant 9.99999997E-7 : f32
    %14 = vector.broadcast %cst_16 : f32 to vector<16x1xf32>
    %15 = arith.addf %13, %14 : vector<16x1xf32>
    %16 = math.rsqrt %15 : vector<16x1xf32>
    %17 = vector.broadcast %16 : vector<16x1xf32> to vector<16x32xf32>
    %18 = arith.mulf %2, %17 : vector<16x32xf32>
    %19 = vector.broadcast %8 : vector<1x32xf32> to vector<16x32xf32>
    %20 = arith.mulf %18, %19 : vector<16x32xf32>
    %21 = vector.extract_strided_slice %4 {offsets = [0, 0], sizes = [32, 96], strides = [1, 1]} : vector<32x160xf32> to vector<32x96xf32>
    %cst_17 = arith.constant dense<0.000000e+00> : vector<16x96xf32>
    %22 = tpu.matmul %20, %21, %cst_17 {dimension_numbers = #tpu.dot_dimension_numbers<[1], [0], [0], [1], [0, 0, 1, 1], [], []>} : vector<16x32xf32>, vector<32x96xf32>, vector<16x96xf32> -> vector<16x96xf32>
    %23 = vector.extract_strided_slice %22 {offsets = [0, 0], sizes = [16, 32], strides = [1, 1]} : vector<16x96xf32> to vector<16x32xf32>
    %24 = vector.extract_strided_slice %22 {offsets = [0, 32], sizes = [16, 32], strides = [1, 1]} : vector<16x96xf32> to vector<16x32xf32>
    %25 = vector.extract_strided_slice %22 {offsets = [0, 64], sizes = [16, 32], strides = [1, 1]} : vector<16x96xf32> to vector<16x32xf32>
    %26 = vector.extract_strided_slice %23 {offsets = [0, 0], sizes = [16, 8], strides = [1, 1]} : vector<16x32xf32> to vector<16x8xf32>
    %27 = vector.extract_strided_slice %24 {offsets = [0, 0], sizes = [16, 8], strides = [1, 1]} : vector<16x32xf32> to vector<16x8xf32>
    %cst_18 = arith.constant dense<0.000000e+00> : vector<16x16xf32>
    %28 = tpu.matmul %26, %27, %cst_18 {dimension_numbers = #tpu.dot_dimension_numbers<[1], [1], [0], [0], [0, 0, 1, 0], [], []>} : vector<16x8xf32>, vector<16x8xf32>, vector<16x16xf32> -> vector<16x16xf32>
    %29 = vector.extract_strided_slice %0 {offsets = [0, 0, 0], sizes = [1, 16, 16], strides = [1, 1, 1]} : vector<4x16x16xf32> to vector<1x16x16xf32>
    %30 = vector.shape_cast %29 : vector<1x16x16xf32> to vector<16x16xf32>
    %31 = arith.addf %28, %30 : vector<16x16xf32>
    %cst_19 = arith.constant dense<0xFF800000> : vector<16xf32>
    %32 = vector.multi_reduction <maximumf>, %31, %cst_19 [1] : vector<16x16xf32> to vector<16xf32>
    %33 = vector.shape_cast %32 : vector<16xf32> to vector<16x1xf32>
    %34 = vector.broadcast %33 : vector<16x1xf32> to vector<16x16xf32>
    %35 = arith.subf %31, %34 : vector<16x16xf32>
    %36 = math.exp %35 : vector<16x16xf32>
    %cst_20 = arith.constant dense<0.000000e+00> : vector<16xf32>
    %37 = vector.multi_reduction <add>, %36, %cst_20 [1] : vector<16x16xf32> to vector<16xf32>
    %38 = vector.shape_cast %37 : vector<16xf32> to vector<16x1xf32>
    %39 = tpu.reciprocal %38 {approx = true} : vector<16x1xf32> -> vector<16x1xf32>
    %40 = vector.broadcast %39 : vector<16x1xf32> to vector<16x16xf32>
    %41 = arith.mulf %36, %40 : vector<16x16xf32>
    %42 = vector.extract_strided_slice %25 {offsets = [0, 0], sizes = [16, 8], strides = [1, 1]} : vector<16x32xf32> to vector<16x8xf32>
    %cst_21 = arith.constant dense<0.000000e+00> : vector<16x8xf32>
    %43 = tpu.matmul %41, %42, %cst_21 {dimension_numbers = #tpu.dot_dimension_numbers<[1], [0], [0], [1], [0, 0, 1, 1], [], []>} : vector<16x16xf32>, vector<16x8xf32>, vector<16x8xf32> -> vector<16x8xf32>
    %44 = vector.extract_strided_slice %23 {offsets = [0, 8], sizes = [16, 8], strides = [1, 1]} : vector<16x32xf32> to vector<16x8xf32>
    %45 = vector.extract_strided_slice %24 {offsets = [0, 8], sizes = [16, 8], strides = [1, 1]} : vector<16x32xf32> to vector<16x8xf32>
    %cst_22 = arith.constant dense<0.000000e+00> : vector<16x16xf32>
    %46 = tpu.matmul %44, %45, %cst_22 {dimension_numbers = #tpu.dot_dimension_numbers<[1], [1], [0], [0], [0, 0, 1, 0], [], []>} : vector<16x8xf32>, vector<16x8xf32>, vector<16x16xf32> -> vector<16x16xf32>
    %47 = vector.extract_strided_slice %0 {offsets = [1, 0, 0], sizes = [1, 16, 16], strides = [1, 1, 1]} : vector<4x16x16xf32> to vector<1x16x16xf32>
    %48 = vector.shape_cast %47 : vector<1x16x16xf32> to vector<16x16xf32>
    %49 = arith.addf %46, %48 : vector<16x16xf32>
    %cst_23 = arith.constant dense<0xFF800000> : vector<16xf32>
    %50 = vector.multi_reduction <maximumf>, %49, %cst_23 [1] : vector<16x16xf32> to vector<16xf32>
    %51 = vector.shape_cast %50 : vector<16xf32> to vector<16x1xf32>
    %52 = vector.broadcast %51 : vector<16x1xf32> to vector<16x16xf32>
    %53 = arith.subf %49, %52 : vector<16x16xf32>
    %54 = math.exp %53 : vector<16x16xf32>
    %cst_24 = arith.constant dense<0.000000e+00> : vector<16xf32>
    %55 = vector.multi_reduction <add>, %54, %cst_24 [1] : vector<16x16xf32> to vector<16xf32>
    %56 = vector.shape_cast %55 : vector<16xf32> to vector<16x1xf32>
    %57 = tpu.reciprocal %56 {approx = true} : vector<16x1xf32> -> vector<16x1xf32>
    %58 = vector.broadcast %57 : vector<16x1xf32> to vector<16x16xf32>
    %59 = arith.mulf %54, %58 : vector<16x16xf32>
    %60 = vector.extract_strided_slice %25 {offsets = [0, 8], sizes = [16, 8], strides = [1, 1]} : vector<16x32xf32> to vector<16x8xf32>
    %cst_25 = arith.constant dense<0.000000e+00> : vector<16x8xf32>
    %61 = tpu.matmul %59, %60, %cst_25 {dimension_numbers = #tpu.dot_dimension_numbers<[1], [0], [0], [1], [0, 0, 1, 1], [], []>} : vector<16x16xf32>, vector<16x8xf32>, vector<16x8xf32> -> vector<16x8xf32>
    %62 = vector.extract_strided_slice %23 {offsets = [0, 16], sizes = [16, 8], strides = [1, 1]} : vector<16x32xf32> to vector<16x8xf32>
    %63 = vector.extract_strided_slice %24 {offsets = [0, 16], sizes = [16, 8], strides = [1, 1]} : vector<16x32xf32> to vector<16x8xf32>
    %cst_26 = arith.constant dense<0.000000e+00> : vector<16x16xf32>
    %64 = tpu.matmul %62, %63, %cst_26 {dimension_numbers = #tpu.dot_dimension_numbers<[1], [1], [0], [0], [0, 0, 1, 0], [], []>} : vector<16x8xf32>, vector<16x8xf32>, vector<16x16xf32> -> vector<16x16xf32>
    %65 = vector.extract_strided_slice %0 {offsets = [2, 0, 0], sizes = [1, 16, 16], strides = [1, 1, 1]} : vector<4x16x16xf32> to vector<1x16x16xf32>
    %66 = vector.shape_cast %65 : vector<1x16x16xf32> to vector<16x16xf32>
    %67 = arith.addf %64, %66 : vector<16x16xf32>
    %cst_27 = arith.constant dense<0xFF800000> : vector<16xf32>
    %68 = vector.multi_reduction <maximumf>, %67, %cst_27 [1] : vector<16x16xf32> to vector<16xf32>
    %69 = vector.shape_cast %68 : vector<16xf32> to vector<16x1xf32>
    %70 = vector.broadcast %69 : vector<16x1xf32> to vector<16x16xf32>
    %71 = arith.subf %67, %70 : vector<16x16xf32>
    %72 = math.exp %71 : vector<16x16xf32>
    %cst_28 = arith.constant dense<0.000000e+00> : vector<16xf32>
    %73 = vector.multi_reduction <add>, %72, %cst_28 [1] : vector<16x16xf32> to vector<16xf32>
    %74 = vector.shape_cast %73 : vector<16xf32> to vector<16x1xf32>
    %75 = tpu.reciprocal %74 {approx = true} : vector<16x1xf32> -> vector<16x1xf32>
    %76 = vector.broadcast %75 : vector<16x1xf32> to vector<16x16xf32>
    %77 = arith.mulf %72, %76 : vector<16x16xf32>
    %78 = vector.extract_strided_slice %25 {offsets = [0, 16], sizes = [16, 8], strides = [1, 1]} : vector<16x32xf32> to vector<16x8xf32>
    %cst_29 = arith.constant dense<0.000000e+00> : vector<16x8xf32>
    %79 = tpu.matmul %77, %78, %cst_29 {dimension_numbers = #tpu.dot_dimension_numbers<[1], [0], [0], [1], [0, 0, 1, 1], [], []>} : vector<16x16xf32>, vector<16x8xf32>, vector<16x8xf32> -> vector<16x8xf32>
    %80 = vector.extract_strided_slice %23 {offsets = [0, 24], sizes = [16, 8], strides = [1, 1]} : vector<16x32xf32> to vector<16x8xf32>
    %81 = vector.extract_strided_slice %24 {offsets = [0, 24], sizes = [16, 8], strides = [1, 1]} : vector<16x32xf32> to vector<16x8xf32>
    %cst_30 = arith.constant dense<0.000000e+00> : vector<16x16xf32>
    %82 = tpu.matmul %80, %81, %cst_30 {dimension_numbers = #tpu.dot_dimension_numbers<[1], [1], [0], [0], [0, 0, 1, 0], [], []>} : vector<16x8xf32>, vector<16x8xf32>, vector<16x16xf32> -> vector<16x16xf32>
    %83 = vector.extract_strided_slice %0 {offsets = [3, 0, 0], sizes = [1, 16, 16], strides = [1, 1, 1]} : vector<4x16x16xf32> to vector<1x16x16xf32>
    %84 = vector.shape_cast %83 : vector<1x16x16xf32> to vector<16x16xf32>
    %85 = arith.addf %82, %84 : vector<16x16xf32>
    %cst_31 = arith.constant dense<0xFF800000> : vector<16xf32>
    %86 = vector.multi_reduction <maximumf>, %85, %cst_31 [1] : vector<16x16xf32> to vector<16xf32>
    %87 = vector.shape_cast %86 : vector<16xf32> to vector<16x1xf32>
    %88 = vector.broadcast %87 : vector<16x1xf32> to vector<16x16xf32>
    %89 = arith.subf %85, %88 : vector<16x16xf32>
    %90 = math.exp %89 : vector<16x16xf32>
    %cst_32 = arith.constant dense<0.000000e+00> : vector<16xf32>
    %91 = vector.multi_reduction <add>, %90, %cst_32 [1] : vector<16x16xf32> to vector<16xf32>
    %92 = vector.shape_cast %91 : vector<16xf32> to vector<16x1xf32>
    %93 = tpu.reciprocal %92 {approx = true} : vector<16x1xf32> -> vector<16x1xf32>
    %94 = vector.broadcast %93 : vector<16x1xf32> to vector<16x16xf32>
    %95 = arith.mulf %90, %94 : vector<16x16xf32>
    %96 = vector.extract_strided_slice %25 {offsets = [0, 24], sizes = [16, 8], strides = [1, 1]} : vector<16x32xf32> to vector<16x8xf32>
    %cst_33 = arith.constant dense<0.000000e+00> : vector<16x8xf32>
    %97 = tpu.matmul %95, %96, %cst_33 {dimension_numbers = #tpu.dot_dimension_numbers<[1], [0], [0], [1], [0, 0, 1, 1], [], []>} : vector<16x16xf32>, vector<16x8xf32>, vector<16x8xf32> -> vector<16x8xf32>
    %98 = tpu.concatenate %43, %61, %79, %97 in 1 : vector<16x8xf32>, vector<16x8xf32>, vector<16x8xf32>, vector<16x8xf32> -> vector<16x32xf32>
    %99 = vector.extract_strided_slice %6 {offsets = [0, 0], sizes = [32, 32], strides = [1, 1]} : vector<96x32xf32> to vector<32x32xf32>
    %cst_34 = arith.constant dense<0.000000e+00> : vector<16x32xf32>
    %100 = tpu.matmul %98, %99, %cst_34 {dimension_numbers = #tpu.dot_dimension_numbers<[1], [0], [0], [1], [0, 0, 1, 1], [], []>} : vector<16x32xf32>, vector<32x32xf32>, vector<16x32xf32> -> vector<16x32xf32>
    %101 = arith.addf %2, %100 : vector<16x32xf32>
    %c1 = arith.constant 1 : index
    %c0_35 = arith.constant 0 : index
    %c0_36 = arith.constant 0 : index
    %102 = vector.load %arg5[%c1, %c0_35, %c0_36] : memref<12x1x32xf32, #tpu.memory_space<vmem>>, vector<1x1x32xf32>
    %103 = vector.shape_cast %102 : vector<1x1x32xf32> to vector<1x32xf32>
    %104 = arith.mulf %101, %101 : vector<16x32xf32>
    %cst_37 = arith.constant dense<0.000000e+00> : vector<16xf32>
    %105 = vector.multi_reduction <add>, %104, %cst_37 [1] : vector<16x32xf32> to vector<16xf32>
    %106 = vector.shape_cast %105 : vector<16xf32> to vector<16x1xf32>
    %cst_38 = arith.constant 3.200000e+01 : f32
    %107 = vector.broadcast %cst_38 : f32 to vector<16x1xf32>
    %108 = arith.divf %106, %107 : vector<16x1xf32>
    %cst_39 = arith.constant 9.99999997E-7 : f32
    %109 = vector.broadcast %cst_39 : f32 to vector<16x1xf32>
    %110 = arith.addf %108, %109 : vector<16x1xf32>
    %111 = math.rsqrt %110 : vector<16x1xf32>
    %112 = vector.broadcast %111 : vector<16x1xf32> to vector<16x32xf32>
    %113 = arith.mulf %101, %112 : vector<16x32xf32>
    %114 = vector.broadcast %103 : vector<1x32xf32> to vector<16x32xf32>
    %115 = arith.mulf %113, %114 : vector<16x32xf32>
    %116 = vector.extract_strided_slice %4 {offsets = [0, 96], sizes = [32, 64], strides = [1, 1]} : vector<32x160xf32> to vector<32x64xf32>
    %cst_40 = arith.constant dense<0.000000e+00> : vector<16x64xf32>
    %117 = tpu.matmul %115, %116, %cst_40 {dimension_numbers = #tpu.dot_dimension_numbers<[1], [0], [0], [1], [0, 0, 1, 1], [], []>} : vector<16x32xf32>, vector<32x64xf32>, vector<16x64xf32> -> vector<16x64xf32>
    %cst_41 = arith.constant 0.000000e+00 : f32
    %118 = vector.broadcast %cst_41 : f32 to vector<16x64xf32>
    %119 = arith.maximumf %117, %118 : vector<16x64xf32>
    %120 = vector.extract_strided_slice %6 {offsets = [32, 0], sizes = [64, 32], strides = [1, 1]} : vector<96x32xf32> to vector<64x32xf32>
    %cst_42 = arith.constant dense<0.000000e+00> : vector<16x32xf32>
    %121 = tpu.matmul %119, %120, %cst_42 {dimension_numbers = #tpu.dot_dimension_numbers<[1], [0], [0], [1], [0, 0, 1, 1], [], []>} : vector<16x64xf32>, vector<64x32xf32>, vector<16x32xf32> -> vector<16x32xf32>
    %122 = arith.addf %101, %121 : vector<16x32xf32>
    %c1_43 = arith.constant 1 : index
    %c0_44 = arith.constant 0 : index
    %c0_45 = arith.constant 0 : index
    %123 = vector.load %arg6[%c1_43, %c0_44, %c0_45] : memref<2x32x160xf32, #tpu.memory_space<vmem>>, vector<1x32x160xf32>
    %124 = vector.shape_cast %123 : vector<1x32x160xf32> to vector<32x160xf32>
    %c1_46 = arith.constant 1 : index
    %c0_47 = arith.constant 0 : index
    %c0_48 = arith.constant 0 : index
    %125 = vector.load %arg7[%c1_46, %c0_47, %c0_48] : memref<2x96x32xf32, #tpu.memory_space<vmem>>, vector<1x96x32xf32>
    %126 = vector.shape_cast %125 : vector<1x96x32xf32> to vector<96x32xf32>
    %c2 = arith.constant 2 : index
    %c0_49 = arith.constant 0 : index
    %c0_50 = arith.constant 0 : index
    %127 = vector.load %arg5[%c2, %c0_49, %c0_50] : memref<12x1x32xf32, #tpu.memory_space<vmem>>, vector<1x1x32xf32>
    %128 = vector.shape_cast %127 : vector<1x1x32xf32> to vector<1x32xf32>
    %129 = arith.mulf %122, %122 : vector<16x32xf32>
    %cst_51 = arith.constant dense<0.000000e+00> : vector<16xf32>
    %130 = vector.multi_reduction <add>, %129, %cst_51 [1] : vector<16x32xf32> to vector<16xf32>
    %131 = vector.shape_cast %130 : vector<16xf32> to vector<16x1xf32>
    %cst_52 = arith.constant 3.200000e+01 : f32
    %132 = vector.broadcast %cst_52 : f32 to vector<16x1xf32>
    %133 = arith.divf %131, %132 : vector<16x1xf32>
    %cst_53 = arith.constant 9.99999997E-7 : f32
    %134 = vector.broadcast %cst_53 : f32 to vector<16x1xf32>
    %135 = arith.addf %133, %134 : vector<16x1xf32>
    %136 = math.rsqrt %135 : vector<16x1xf32>
    %137 = vector.broadcast %136 : vector<16x1xf32> to vector<16x32xf32>
    %138 = arith.mulf %122, %137 : vector<16x32xf32>
    %139 = vector.broadcast %128 : vector<1x32xf32> to vector<16x32xf32>
    %140 = arith.mulf %138, %139 : vector<16x32xf32>
    %141 = vector.extract_strided_slice %124 {offsets = [0, 0], sizes = [32, 96], strides = [1, 1]} : vector<32x160xf32> to vector<32x96xf32>
    %cst_54 = arith.constant dense<0.000000e+00> : vector<16x96xf32>
    %142 = tpu.matmul %140, %141, %cst_54 {dimension_numbers = #tpu.dot_dimension_numbers<[1], [0], [0], [1], [0, 0, 1, 1], [], []>} : vector<16x32xf32>, vector<32x96xf32>, vector<16x96xf32> -> vector<16x96xf32>
    %143 = vector.extract_strided_slice %142 {offsets = [0, 0], sizes = [16, 32], strides = [1, 1]} : vector<16x96xf32> to vector<16x32xf32>
    %144 = vector.extract_strided_slice %142 {offsets = [0, 32], sizes = [16, 32], strides = [1, 1]} : vector<16x96xf32> to vector<16x32xf32>
    %145 = vector.extract_strided_slice %142 {offsets = [0, 64], sizes = [16, 32], strides = [1, 1]} : vector<16x96xf32> to vector<16x32xf32>
    %146 = vector.extract_strided_slice %143 {offsets = [0, 0], sizes = [16, 8], strides = [1, 1]} : vector<16x32xf32> to vector<16x8xf32>
    %147 = vector.extract_strided_slice %144 {offsets = [0, 0], sizes = [16, 8], strides = [1, 1]} : vector<16x32xf32> to vector<16x8xf32>
    %cst_55 = arith.constant dense<0.000000e+00> : vector<16x16xf32>
    %148 = tpu.matmul %146, %147, %cst_55 {dimension_numbers = #tpu.dot_dimension_numbers<[1], [1], [0], [0], [0, 0, 1, 0], [], []>} : vector<16x8xf32>, vector<16x8xf32>, vector<16x16xf32> -> vector<16x16xf32>
    %149 = vector.extract_strided_slice %0 {offsets = [0, 0, 0], sizes = [1, 16, 16], strides = [1, 1, 1]} : vector<4x16x16xf32> to vector<1x16x16xf32>
    %150 = vector.shape_cast %149 : vector<1x16x16xf32> to vector<16x16xf32>
    %151 = arith.addf %148, %150 : vector<16x16xf32>
    %cst_56 = arith.constant dense<0xFF800000> : vector<16xf32>
    %152 = vector.multi_reduction <maximumf>, %151, %cst_56 [1] : vector<16x16xf32> to vector<16xf32>
    %153 = vector.shape_cast %152 : vector<16xf32> to vector<16x1xf32>
    %154 = vector.broadcast %153 : vector<16x1xf32> to vector<16x16xf32>
    %155 = arith.subf %151, %154 : vector<16x16xf32>
    %156 = math.exp %155 : vector<16x16xf32>
    %cst_57 = arith.constant dense<0.000000e+00> : vector<16xf32>
    %157 = vector.multi_reduction <add>, %156, %cst_57 [1] : vector<16x16xf32> to vector<16xf32>
    %158 = vector.shape_cast %157 : vector<16xf32> to vector<16x1xf32>
    %159 = tpu.reciprocal %158 {approx = true} : vector<16x1xf32> -> vector<16x1xf32>
    %160 = vector.broadcast %159 : vector<16x1xf32> to vector<16x16xf32>
    %161 = arith.mulf %156, %160 : vector<16x16xf32>
    %162 = vector.extract_strided_slice %145 {offsets = [0, 0], sizes = [16, 8], strides = [1, 1]} : vector<16x32xf32> to vector<16x8xf32>
    %cst_58 = arith.constant dense<0.000000e+00> : vector<16x8xf32>
    %163 = tpu.matmul %161, %162, %cst_58 {dimension_numbers = #tpu.dot_dimension_numbers<[1], [0], [0], [1], [0, 0, 1, 1], [], []>} : vector<16x16xf32>, vector<16x8xf32>, vector<16x8xf32> -> vector<16x8xf32>
    %164 = vector.extract_strided_slice %143 {offsets = [0, 8], sizes = [16, 8], strides = [1, 1]} : vector<16x32xf32> to vector<16x8xf32>
    %165 = vector.extract_strided_slice %144 {offsets = [0, 8], sizes = [16, 8], strides = [1, 1]} : vector<16x32xf32> to vector<16x8xf32>
    %cst_59 = arith.constant dense<0.000000e+00> : vector<16x16xf32>
    %166 = tpu.matmul %164, %165, %cst_59 {dimension_numbers = #tpu.dot_dimension_numbers<[1], [1], [0], [0], [0, 0, 1, 0], [], []>} : vector<16x8xf32>, vector<16x8xf32>, vector<16x16xf32> -> vector<16x16xf32>
    %167 = vector.extract_strided_slice %0 {offsets = [1, 0, 0], sizes = [1, 16, 16], strides = [1, 1, 1]} : vector<4x16x16xf32> to vector<1x16x16xf32>
    %168 = vector.shape_cast %167 : vector<1x16x16xf32> to vector<16x16xf32>
    %169 = arith.addf %166, %168 : vector<16x16xf32>
    %cst_60 = arith.constant dense<0xFF800000> : vector<16xf32>
    %170 = vector.multi_reduction <maximumf>, %169, %cst_60 [1] : vector<16x16xf32> to vector<16xf32>
    %171 = vector.shape_cast %170 : vector<16xf32> to vector<16x1xf32>
    %172 = vector.broadcast %171 : vector<16x1xf32> to vector<16x16xf32>
    %173 = arith.subf %169, %172 : vector<16x16xf32>
    %174 = math.exp %173 : vector<16x16xf32>
    %cst_61 = arith.constant dense<0.000000e+00> : vector<16xf32>
    %175 = vector.multi_reduction <add>, %174, %cst_61 [1] : vector<16x16xf32> to vector<16xf32>
    %176 = vector.shape_cast %175 : vector<16xf32> to vector<16x1xf32>
    %177 = tpu.reciprocal %176 {approx = true} : vector<16x1xf32> -> vector<16x1xf32>
    %178 = vector.broadcast %177 : vector<16x1xf32> to vector<16x16xf32>
    %179 = arith.mulf %174, %178 : vector<16x16xf32>
    %180 = vector.extract_strided_slice %145 {offsets = [0, 8], sizes = [16, 8], strides = [1, 1]} : vector<16x32xf32> to vector<16x8xf32>
    %cst_62 = arith.constant dense<0.000000e+00> : vector<16x8xf32>
    %181 = tpu.matmul %179, %180, %cst_62 {dimension_numbers = #tpu.dot_dimension_numbers<[1], [0], [0], [1], [0, 0, 1, 1], [], []>} : vector<16x16xf32>, vector<16x8xf32>, vector<16x8xf32> -> vector<16x8xf32>
    %182 = vector.extract_strided_slice %143 {offsets = [0, 16], sizes = [16, 8], strides = [1, 1]} : vector<16x32xf32> to vector<16x8xf32>
    %183 = vector.extract_strided_slice %144 {offsets = [0, 16], sizes = [16, 8], strides = [1, 1]} : vector<16x32xf32> to vector<16x8xf32>
    %cst_63 = arith.constant dense<0.000000e+00> : vector<16x16xf32>
    %184 = tpu.matmul %182, %183, %cst_63 {dimension_numbers = #tpu.dot_dimension_numbers<[1], [1], [0], [0], [0, 0, 1, 0], [], []>} : vector<16x8xf32>, vector<16x8xf32>, vector<16x16xf32> -> vector<16x16xf32>
    %185 = vector.extract_strided_slice %0 {offsets = [2, 0, 0], sizes = [1, 16, 16], strides = [1, 1, 1]} : vector<4x16x16xf32> to vector<1x16x16xf32>
    %186 = vector.shape_cast %185 : vector<1x16x16xf32> to vector<16x16xf32>
    %187 = arith.addf %184, %186 : vector<16x16xf32>
    %cst_64 = arith.constant dense<0xFF800000> : vector<16xf32>
    %188 = vector.multi_reduction <maximumf>, %187, %cst_64 [1] : vector<16x16xf32> to vector<16xf32>
    %189 = vector.shape_cast %188 : vector<16xf32> to vector<16x1xf32>
    %190 = vector.broadcast %189 : vector<16x1xf32> to vector<16x16xf32>
    %191 = arith.subf %187, %190 : vector<16x16xf32>
    %192 = math.exp %191 : vector<16x16xf32>
    %cst_65 = arith.constant dense<0.000000e+00> : vector<16xf32>
    %193 = vector.multi_reduction <add>, %192, %cst_65 [1] : vector<16x16xf32> to vector<16xf32>
    %194 = vector.shape_cast %193 : vector<16xf32> to vector<16x1xf32>
    %195 = tpu.reciprocal %194 {approx = true} : vector<16x1xf32> -> vector<16x1xf32>
    %196 = vector.broadcast %195 : vector<16x1xf32> to vector<16x16xf32>
    %197 = arith.mulf %192, %196 : vector<16x16xf32>
    %198 = vector.extract_strided_slice %145 {offsets = [0, 16], sizes = [16, 8], strides = [1, 1]} : vector<16x32xf32> to vector<16x8xf32>
    %cst_66 = arith.constant dense<0.000000e+00> : vector<16x8xf32>
    %199 = tpu.matmul %197, %198, %cst_66 {dimension_numbers = #tpu.dot_dimension_numbers<[1], [0], [0], [1], [0, 0, 1, 1], [], []>} : vector<16x16xf32>, vector<16x8xf32>, vector<16x8xf32> -> vector<16x8xf32>
    %200 = vector.extract_strided_slice %143 {offsets = [0, 24], sizes = [16, 8], strides = [1, 1]} : vector<16x32xf32> to vector<16x8xf32>
    %201 = vector.extract_strided_slice %144 {offsets = [0, 24], sizes = [16, 8], strides = [1, 1]} : vector<16x32xf32> to vector<16x8xf32>
    %cst_67 = arith.constant dense<0.000000e+00> : vector<16x16xf32>
    %202 = tpu.matmul %200, %201, %cst_67 {dimension_numbers = #tpu.dot_dimension_numbers<[1], [1], [0], [0], [0, 0, 1, 0], [], []>} : vector<16x8xf32>, vector<16x8xf32>, vector<16x16xf32> -> vector<16x16xf32>
    %203 = vector.extract_strided_slice %0 {offsets = [3, 0, 0], sizes = [1, 16, 16], strides = [1, 1, 1]} : vector<4x16x16xf32> to vector<1x16x16xf32>
    %204 = vector.shape_cast %203 : vector<1x16x16xf32> to vector<16x16xf32>
    %205 = arith.addf %202, %204 : vector<16x16xf32>
    %cst_68 = arith.constant dense<0xFF800000> : vector<16xf32>
    %206 = vector.multi_reduction <maximumf>, %205, %cst_68 [1] : vector<16x16xf32> to vector<16xf32>
    %207 = vector.shape_cast %206 : vector<16xf32> to vector<16x1xf32>
    %208 = vector.broadcast %207 : vector<16x1xf32> to vector<16x16xf32>
    %209 = arith.subf %205, %208 : vector<16x16xf32>
    %210 = math.exp %209 : vector<16x16xf32>
    %cst_69 = arith.constant dense<0.000000e+00> : vector<16xf32>
    %211 = vector.multi_reduction <add>, %210, %cst_69 [1] : vector<16x16xf32> to vector<16xf32>
    %212 = vector.shape_cast %211 : vector<16xf32> to vector<16x1xf32>
    %213 = tpu.reciprocal %212 {approx = true} : vector<16x1xf32> -> vector<16x1xf32>
    %214 = vector.broadcast %213 : vector<16x1xf32> to vector<16x16xf32>
    %215 = arith.mulf %210, %214 : vector<16x16xf32>
    %216 = vector.extract_strided_slice %145 {offsets = [0, 24], sizes = [16, 8], strides = [1, 1]} : vector<16x32xf32> to vector<16x8xf32>
    %cst_70 = arith.constant dense<0.000000e+00> : vector<16x8xf32>
    %217 = tpu.matmul %215, %216, %cst_70 {dimension_numbers = #tpu.dot_dimension_numbers<[1], [0], [0], [1], [0, 0, 1, 1], [], []>} : vector<16x16xf32>, vector<16x8xf32>, vector<16x8xf32> -> vector<16x8xf32>
    %218 = tpu.concatenate %163, %181, %199, %217 in 1 : vector<16x8xf32>, vector<16x8xf32>, vector<16x8xf32>, vector<16x8xf32> -> vector<16x32xf32>
    %219 = vector.extract_strided_slice %126 {offsets = [0, 0], sizes = [32, 32], strides = [1, 1]} : vector<96x32xf32> to vector<32x32xf32>
    %cst_71 = arith.constant dense<0.000000e+00> : vector<16x32xf32>
    %220 = tpu.matmul %218, %219, %cst_71 {dimension_numbers = #tpu.dot_dimension_numbers<[1], [0], [0], [1], [0, 0, 1, 1], [], []>} : vector<16x32xf32>, vector<32x32xf32>, vector<16x32xf32> -> vector<16x32xf32>
    %221 = arith.addf %122, %220 : vector<16x32xf32>
    %c3 = arith.constant 3 : index
    %c0_72 = arith.constant 0 : index
    %c0_73 = arith.constant 0 : index
    %222 = vector.load %arg5[%c3, %c0_72, %c0_73] : memref<12x1x32xf32, #tpu.memory_space<vmem>>, vector<1x1x32xf32>
    %223 = vector.shape_cast %222 : vector<1x1x32xf32> to vector<1x32xf32>
    %224 = arith.mulf %221, %221 : vector<16x32xf32>
    %cst_74 = arith.constant dense<0.000000e+00> : vector<16xf32>
    %225 = vector.multi_reduction <add>, %224, %cst_74 [1] : vector<16x32xf32> to vector<16xf32>
    %226 = vector.shape_cast %225 : vector<16xf32> to vector<16x1xf32>
    %cst_75 = arith.constant 3.200000e+01 : f32
    %227 = vector.broadcast %cst_75 : f32 to vector<16x1xf32>
    %228 = arith.divf %226, %227 : vector<16x1xf32>
    %cst_76 = arith.constant 9.99999997E-7 : f32
    %229 = vector.broadcast %cst_76 : f32 to vector<16x1xf32>
    %230 = arith.addf %228, %229 : vector<16x1xf32>
    %231 = math.rsqrt %230 : vector<16x1xf32>
    %232 = vector.broadcast %231 : vector<16x1xf32> to vector<16x32xf32>
    %233 = arith.mulf %221, %232 : vector<16x32xf32>
    %234 = vector.broadcast %223 : vector<1x32xf32> to vector<16x32xf32>
    %235 = arith.mulf %233, %234 : vector<16x32xf32>
    %236 = vector.extract_strided_slice %124 {offsets = [0, 96], sizes = [32, 64], strides = [1, 1]} : vector<32x160xf32> to vector<32x64xf32>
    %cst_77 = arith.constant dense<0.000000e+00> : vector<16x64xf32>
    %237 = tpu.matmul %235, %236, %cst_77 {dimension_numbers = #tpu.dot_dimension_numbers<[1], [0], [0], [1], [0, 0, 1, 1], [], []>} : vector<16x32xf32>, vector<32x64xf32>, vector<16x64xf32> -> vector<16x64xf32>
    %cst_78 = arith.constant 0.000000e+00 : f32
    %238 = vector.broadcast %cst_78 : f32 to vector<16x64xf32>
    %239 = arith.maximumf %237, %238 : vector<16x64xf32>
    %240 = vector.extract_strided_slice %126 {offsets = [32, 0], sizes = [64, 32], strides = [1, 1]} : vector<96x32xf32> to vector<64x32xf32>
    %cst_79 = arith.constant dense<0.000000e+00> : vector<16x32xf32>
    %241 = tpu.matmul %239, %240, %cst_79 {dimension_numbers = #tpu.dot_dimension_numbers<[1], [0], [0], [1], [0, 0, 1, 1], [], []>} : vector<16x64xf32>, vector<64x32xf32>, vector<16x32xf32> -> vector<16x32xf32>
    %242 = arith.addf %221, %241 : vector<16x32xf32>
    %c4 = arith.constant 4 : index
    %c0_80 = arith.constant 0 : index
    %c0_81 = arith.constant 0 : index
    %243 = vector.load %arg5[%c4, %c0_80, %c0_81] : memref<12x1x32xf32, #tpu.memory_space<vmem>>, vector<1x1x32xf32>
    %244 = vector.shape_cast %243 : vector<1x1x32xf32> to vector<1x32xf32>
    %245 = arith.mulf %242, %242 : vector<16x32xf32>
    %cst_82 = arith.constant dense<0.000000e+00> : vector<16xf32>
    %246 = vector.multi_reduction <add>, %245, %cst_82 [1] : vector<16x32xf32> to vector<16xf32>
    %247 = vector.shape_cast %246 : vector<16xf32> to vector<16x1xf32>
    %cst_83 = arith.constant 3.200000e+01 : f32
    %248 = vector.broadcast %cst_83 : f32 to vector<16x1xf32>
    %249 = arith.divf %247, %248 : vector<16x1xf32>
    %cst_84 = arith.constant 9.99999997E-7 : f32
    %250 = vector.broadcast %cst_84 : f32 to vector<16x1xf32>
    %251 = arith.addf %249, %250 : vector<16x1xf32>
    %252 = math.rsqrt %251 : vector<16x1xf32>
    %253 = vector.broadcast %252 : vector<16x1xf32> to vector<16x32xf32>
    %254 = arith.mulf %242, %253 : vector<16x32xf32>
    %255 = vector.broadcast %244 : vector<1x32xf32> to vector<16x32xf32>
    %256 = arith.mulf %254, %255 : vector<16x32xf32>
    %c0_85 = arith.constant 0 : index
    %c0_86 = arith.constant 0 : index
    %257 = vector.load %arg2[%c0_85, %c0_86] : memref<2x32xf32, #tpu.memory_space<vmem>>, vector<2x32xf32>
    %c0_87 = arith.constant 0 : index
    %c0_88 = arith.constant 0 : index
    %c0_89 = arith.constant 0 : index
    %258 = vector.load %arg8[%c0_87, %c0_88, %c0_89] : memref<2x32x192xf32, #tpu.memory_space<vmem>>, vector<1x32x192xf32>
    %259 = vector.shape_cast %258 : vector<1x32x192xf32> to vector<32x192xf32>
    %c0_90 = arith.constant 0 : index
    %c0_91 = arith.constant 0 : index
    %c0_92 = arith.constant 0 : index
    %260 = vector.load %arg9[%c0_90, %c0_91, %c0_92] : memref<2x128x32xf32, #tpu.memory_space<vmem>>, vector<1x128x32xf32>
    %261 = vector.shape_cast %260 : vector<1x128x32xf32> to vector<128x32xf32>
    %c5 = arith.constant 5 : index
    %c0_93 = arith.constant 0 : index
    %c0_94 = arith.constant 0 : index
    %262 = vector.load %arg5[%c5, %c0_93, %c0_94] : memref<12x1x32xf32, #tpu.memory_space<vmem>>, vector<1x1x32xf32>
    %263 = vector.shape_cast %262 : vector<1x1x32xf32> to vector<1x32xf32>
    %264 = arith.mulf %257, %257 : vector<2x32xf32>
    %cst_95 = arith.constant dense<0.000000e+00> : vector<2xf32>
    %265 = vector.multi_reduction <add>, %264, %cst_95 [1] : vector<2x32xf32> to vector<2xf32>
    %266 = vector.shape_cast %265 : vector<2xf32> to vector<2x1xf32>
    %cst_96 = arith.constant 3.200000e+01 : f32
    %267 = vector.broadcast %cst_96 : f32 to vector<2x1xf32>
    %268 = arith.divf %266, %267 : vector<2x1xf32>
    %cst_97 = arith.constant 9.99999997E-7 : f32
    %269 = vector.broadcast %cst_97 : f32 to vector<2x1xf32>
    %270 = arith.addf %268, %269 : vector<2x1xf32>
    %271 = math.rsqrt %270 : vector<2x1xf32>
    %272 = vector.broadcast %271 : vector<2x1xf32> to vector<2x32xf32>
    %273 = arith.mulf %257, %272 : vector<2x32xf32>
    %274 = vector.broadcast %263 : vector<1x32xf32> to vector<2x32xf32>
    %275 = arith.mulf %273, %274 : vector<2x32xf32>
    %276 = vector.extract_strided_slice %259 {offsets = [0, 0], sizes = [32, 32], strides = [1, 1]} : vector<32x192xf32> to vector<32x32xf32>
    %cst_98 = arith.constant dense<0.000000e+00> : vector<2x32xf32>
    %277 = tpu.matmul %275, %276, %cst_98 {dimension_numbers = #tpu.dot_dimension_numbers<[1], [0], [0], [1], [0, 0, 1, 1], [], []>} : vector<2x32xf32>, vector<32x32xf32>, vector<2x32xf32> -> vector<2x32xf32>
    %278 = vector.extract_strided_slice %261 {offsets = [0, 0], sizes = [32, 32], strides = [1, 1]} : vector<128x32xf32> to vector<32x32xf32>
    %cst_99 = arith.constant dense<0.000000e+00> : vector<2x32xf32>
    %279 = tpu.matmul %277, %278, %cst_99 {dimension_numbers = #tpu.dot_dimension_numbers<[1], [0], [0], [1], [0, 0, 1, 1], [], []>} : vector<2x32xf32>, vector<32x32xf32>, vector<2x32xf32> -> vector<2x32xf32>
    %280 = arith.addf %257, %279 : vector<2x32xf32>
    %c6 = arith.constant 6 : index
    %c0_100 = arith.constant 0 : index
    %c0_101 = arith.constant 0 : index
    %281 = vector.load %arg5[%c6, %c0_100, %c0_101] : memref<12x1x32xf32, #tpu.memory_space<vmem>>, vector<1x1x32xf32>
    %282 = vector.shape_cast %281 : vector<1x1x32xf32> to vector<1x32xf32>
    %283 = arith.mulf %280, %280 : vector<2x32xf32>
    %cst_102 = arith.constant dense<0.000000e+00> : vector<2xf32>
    %284 = vector.multi_reduction <add>, %283, %cst_102 [1] : vector<2x32xf32> to vector<2xf32>
    %285 = vector.shape_cast %284 : vector<2xf32> to vector<2x1xf32>
    %cst_103 = arith.constant 3.200000e+01 : f32
    %286 = vector.broadcast %cst_103 : f32 to vector<2x1xf32>
    %287 = arith.divf %285, %286 : vector<2x1xf32>
    %cst_104 = arith.constant 9.99999997E-7 : f32
    %288 = vector.broadcast %cst_104 : f32 to vector<2x1xf32>
    %289 = arith.addf %287, %288 : vector<2x1xf32>
    %290 = math.rsqrt %289 : vector<2x1xf32>
    %291 = vector.broadcast %290 : vector<2x1xf32> to vector<2x32xf32>
    %292 = arith.mulf %280, %291 : vector<2x32xf32>
    %293 = vector.broadcast %282 : vector<1x32xf32> to vector<2x32xf32>
    %294 = arith.mulf %292, %293 : vector<2x32xf32>
    %295 = vector.extract_strided_slice %259 {offsets = [0, 32], sizes = [32, 32], strides = [1, 1]} : vector<32x192xf32> to vector<32x32xf32>
    %cst_105 = arith.constant dense<0.000000e+00> : vector<2x32xf32>
    %296 = tpu.matmul %294, %295, %cst_105 {dimension_numbers = #tpu.dot_dimension_numbers<[1], [0], [0], [1], [0, 0, 1, 1], [], []>} : vector<2x32xf32>, vector<32x32xf32>, vector<2x32xf32> -> vector<2x32xf32>
    %297 = vector.extract_strided_slice %259 {offsets = [0, 64], sizes = [32, 64], strides = [1, 1]} : vector<32x192xf32> to vector<32x64xf32>
    %cst_106 = arith.constant dense<0.000000e+00> : vector<16x64xf32>
    %298 = tpu.matmul %256, %297, %cst_106 {dimension_numbers = #tpu.dot_dimension_numbers<[1], [0], [0], [1], [0, 0, 1, 1], [], []>} : vector<16x32xf32>, vector<32x64xf32>, vector<16x64xf32> -> vector<16x64xf32>
    %299 = vector.extract_strided_slice %298 {offsets = [0, 0], sizes = [16, 32], strides = [1, 1]} : vector<16x64xf32> to vector<16x32xf32>
    %300 = vector.extract_strided_slice %298 {offsets = [0, 32], sizes = [16, 32], strides = [1, 1]} : vector<16x64xf32> to vector<16x32xf32>
    %301 = vector.extract_strided_slice %296 {offsets = [0, 0], sizes = [2, 8], strides = [1, 1]} : vector<2x32xf32> to vector<2x8xf32>
    %302 = vector.extract_strided_slice %299 {offsets = [0, 0], sizes = [16, 8], strides = [1, 1]} : vector<16x32xf32> to vector<16x8xf32>
    %cst_107 = arith.constant dense<0.000000e+00> : vector<2x16xf32>
    %303 = tpu.matmul %301, %302, %cst_107 {dimension_numbers = #tpu.dot_dimension_numbers<[1], [1], [0], [0], [0, 0, 1, 0], [], []>} : vector<2x8xf32>, vector<16x8xf32>, vector<2x16xf32> -> vector<2x16xf32>
    %304 = arith.addf %303, %1 : vector<2x16xf32>
    %cst_108 = arith.constant dense<0xFF800000> : vector<2xf32>
    %305 = vector.multi_reduction <maximumf>, %304, %cst_108 [1] : vector<2x16xf32> to vector<2xf32>
    %306 = vector.shape_cast %305 : vector<2xf32> to vector<2x1xf32>
    %307 = vector.broadcast %306 : vector<2x1xf32> to vector<2x16xf32>
    %308 = arith.subf %304, %307 : vector<2x16xf32>
    %309 = math.exp %308 : vector<2x16xf32>
    %cst_109 = arith.constant dense<0.000000e+00> : vector<2xf32>
    %310 = vector.multi_reduction <add>, %309, %cst_109 [1] : vector<2x16xf32> to vector<2xf32>
    %311 = vector.shape_cast %310 : vector<2xf32> to vector<2x1xf32>
    %312 = tpu.reciprocal %311 {approx = true} : vector<2x1xf32> -> vector<2x1xf32>
    %313 = vector.broadcast %312 : vector<2x1xf32> to vector<2x16xf32>
    %314 = arith.mulf %309, %313 : vector<2x16xf32>
    %315 = vector.extract_strided_slice %300 {offsets = [0, 0], sizes = [16, 8], strides = [1, 1]} : vector<16x32xf32> to vector<16x8xf32>
    %cst_110 = arith.constant dense<0.000000e+00> : vector<2x8xf32>
    %316 = tpu.matmul %314, %315, %cst_110 {dimension_numbers = #tpu.dot_dimension_numbers<[1], [0], [0], [1], [0, 0, 1, 1], [], []>} : vector<2x16xf32>, vector<16x8xf32>, vector<2x8xf32> -> vector<2x8xf32>
    %317 = vector.extract_strided_slice %296 {offsets = [0, 8], sizes = [2, 8], strides = [1, 1]} : vector<2x32xf32> to vector<2x8xf32>
    %318 = vector.extract_strided_slice %299 {offsets = [0, 8], sizes = [16, 8], strides = [1, 1]} : vector<16x32xf32> to vector<16x8xf32>
    %cst_111 = arith.constant dense<0.000000e+00> : vector<2x16xf32>
    %319 = tpu.matmul %317, %318, %cst_111 {dimension_numbers = #tpu.dot_dimension_numbers<[1], [1], [0], [0], [0, 0, 1, 0], [], []>} : vector<2x8xf32>, vector<16x8xf32>, vector<2x16xf32> -> vector<2x16xf32>
    %320 = arith.addf %319, %1 : vector<2x16xf32>
    %cst_112 = arith.constant dense<0xFF800000> : vector<2xf32>
    %321 = vector.multi_reduction <maximumf>, %320, %cst_112 [1] : vector<2x16xf32> to vector<2xf32>
    %322 = vector.shape_cast %321 : vector<2xf32> to vector<2x1xf32>
    %323 = vector.broadcast %322 : vector<2x1xf32> to vector<2x16xf32>
    %324 = arith.subf %320, %323 : vector<2x16xf32>
    %325 = math.exp %324 : vector<2x16xf32>
    %cst_113 = arith.constant dense<0.000000e+00> : vector<2xf32>
    %326 = vector.multi_reduction <add>, %325, %cst_113 [1] : vector<2x16xf32> to vector<2xf32>
    %327 = vector.shape_cast %326 : vector<2xf32> to vector<2x1xf32>
    %328 = tpu.reciprocal %327 {approx = true} : vector<2x1xf32> -> vector<2x1xf32>
    %329 = vector.broadcast %328 : vector<2x1xf32> to vector<2x16xf32>
    %330 = arith.mulf %325, %329 : vector<2x16xf32>
    %331 = vector.extract_strided_slice %300 {offsets = [0, 8], sizes = [16, 8], strides = [1, 1]} : vector<16x32xf32> to vector<16x8xf32>
    %cst_114 = arith.constant dense<0.000000e+00> : vector<2x8xf32>
    %332 = tpu.matmul %330, %331, %cst_114 {dimension_numbers = #tpu.dot_dimension_numbers<[1], [0], [0], [1], [0, 0, 1, 1], [], []>} : vector<2x16xf32>, vector<16x8xf32>, vector<2x8xf32> -> vector<2x8xf32>
    %333 = vector.extract_strided_slice %296 {offsets = [0, 16], sizes = [2, 8], strides = [1, 1]} : vector<2x32xf32> to vector<2x8xf32>
    %334 = vector.extract_strided_slice %299 {offsets = [0, 16], sizes = [16, 8], strides = [1, 1]} : vector<16x32xf32> to vector<16x8xf32>
    %cst_115 = arith.constant dense<0.000000e+00> : vector<2x16xf32>
    %335 = tpu.matmul %333, %334, %cst_115 {dimension_numbers = #tpu.dot_dimension_numbers<[1], [1], [0], [0], [0, 0, 1, 0], [], []>} : vector<2x8xf32>, vector<16x8xf32>, vector<2x16xf32> -> vector<2x16xf32>
    %336 = arith.addf %335, %1 : vector<2x16xf32>
    %cst_116 = arith.constant dense<0xFF800000> : vector<2xf32>
    %337 = vector.multi_reduction <maximumf>, %336, %cst_116 [1] : vector<2x16xf32> to vector<2xf32>
    %338 = vector.shape_cast %337 : vector<2xf32> to vector<2x1xf32>
    %339 = vector.broadcast %338 : vector<2x1xf32> to vector<2x16xf32>
    %340 = arith.subf %336, %339 : vector<2x16xf32>
    %341 = math.exp %340 : vector<2x16xf32>
    %cst_117 = arith.constant dense<0.000000e+00> : vector<2xf32>
    %342 = vector.multi_reduction <add>, %341, %cst_117 [1] : vector<2x16xf32> to vector<2xf32>
    %343 = vector.shape_cast %342 : vector<2xf32> to vector<2x1xf32>
    %344 = tpu.reciprocal %343 {approx = true} : vector<2x1xf32> -> vector<2x1xf32>
    %345 = vector.broadcast %344 : vector<2x1xf32> to vector<2x16xf32>
    %346 = arith.mulf %341, %345 : vector<2x16xf32>
    %347 = vector.extract_strided_slice %300 {offsets = [0, 16], sizes = [16, 8], strides = [1, 1]} : vector<16x32xf32> to vector<16x8xf32>
    %cst_118 = arith.constant dense<0.000000e+00> : vector<2x8xf32>
    %348 = tpu.matmul %346, %347, %cst_118 {dimension_numbers = #tpu.dot_dimension_numbers<[1], [0], [0], [1], [0, 0, 1, 1], [], []>} : vector<2x16xf32>, vector<16x8xf32>, vector<2x8xf32> -> vector<2x8xf32>
    %349 = vector.extract_strided_slice %296 {offsets = [0, 24], sizes = [2, 8], strides = [1, 1]} : vector<2x32xf32> to vector<2x8xf32>
    %350 = vector.extract_strided_slice %299 {offsets = [0, 24], sizes = [16, 8], strides = [1, 1]} : vector<16x32xf32> to vector<16x8xf32>
    %cst_119 = arith.constant dense<0.000000e+00> : vector<2x16xf32>
    %351 = tpu.matmul %349, %350, %cst_119 {dimension_numbers = #tpu.dot_dimension_numbers<[1], [1], [0], [0], [0, 0, 1, 0], [], []>} : vector<2x8xf32>, vector<16x8xf32>, vector<2x16xf32> -> vector<2x16xf32>
    %352 = arith.addf %351, %1 : vector<2x16xf32>
    %cst_120 = arith.constant dense<0xFF800000> : vector<2xf32>
    %353 = vector.multi_reduction <maximumf>, %352, %cst_120 [1] : vector<2x16xf32> to vector<2xf32>
    %354 = vector.shape_cast %353 : vector<2xf32> to vector<2x1xf32>
    %355 = vector.broadcast %354 : vector<2x1xf32> to vector<2x16xf32>
    %356 = arith.subf %352, %355 : vector<2x16xf32>
    %357 = math.exp %356 : vector<2x16xf32>
    %cst_121 = arith.constant dense<0.000000e+00> : vector<2xf32>
    %358 = vector.multi_reduction <add>, %357, %cst_121 [1] : vector<2x16xf32> to vector<2xf32>
    %359 = vector.shape_cast %358 : vector<2xf32> to vector<2x1xf32>
    %360 = tpu.reciprocal %359 {approx = true} : vector<2x1xf32> -> vector<2x1xf32>
    %361 = vector.broadcast %360 : vector<2x1xf32> to vector<2x16xf32>
    %362 = arith.mulf %357, %361 : vector<2x16xf32>
    %363 = vector.extract_strided_slice %300 {offsets = [0, 24], sizes = [16, 8], strides = [1, 1]} : vector<16x32xf32> to vector<16x8xf32>
    %cst_122 = arith.constant dense<0.000000e+00> : vector<2x8xf32>
    %364 = tpu.matmul %362, %363, %cst_122 {dimension_numbers = #tpu.dot_dimension_numbers<[1], [0], [0], [1], [0, 0, 1, 1], [], []>} : vector<2x16xf32>, vector<16x8xf32>, vector<2x8xf32> -> vector<2x8xf32>
    %365 = tpu.concatenate %316, %332, %348, %364 in 1 : vector<2x8xf32>, vector<2x8xf32>, vector<2x8xf32>, vector<2x8xf32> -> vector<2x32xf32>
    %366 = vector.extract_strided_slice %261 {offsets = [32, 0], sizes = [32, 32], strides = [1, 1]} : vector<128x32xf32> to vector<32x32xf32>
    %cst_123 = arith.constant dense<0.000000e+00> : vector<2x32xf32>
    %367 = tpu.matmul %365, %366, %cst_123 {dimension_numbers = #tpu.dot_dimension_numbers<[1], [0], [0], [1], [0, 0, 1, 1], [], []>} : vector<2x32xf32>, vector<32x32xf32>, vector<2x32xf32> -> vector<2x32xf32>
    %368 = arith.addf %280, %367 : vector<2x32xf32>
    %c7 = arith.constant 7 : index
    %c0_124 = arith.constant 0 : index
    %c0_125 = arith.constant 0 : index
    %369 = vector.load %arg5[%c7, %c0_124, %c0_125] : memref<12x1x32xf32, #tpu.memory_space<vmem>>, vector<1x1x32xf32>
    %370 = vector.shape_cast %369 : vector<1x1x32xf32> to vector<1x32xf32>
    %371 = arith.mulf %368, %368 : vector<2x32xf32>
    %cst_126 = arith.constant dense<0.000000e+00> : vector<2xf32>
    %372 = vector.multi_reduction <add>, %371, %cst_126 [1] : vector<2x32xf32> to vector<2xf32>
    %373 = vector.shape_cast %372 : vector<2xf32> to vector<2x1xf32>
    %cst_127 = arith.constant 3.200000e+01 : f32
    %374 = vector.broadcast %cst_127 : f32 to vector<2x1xf32>
    %375 = arith.divf %373, %374 : vector<2x1xf32>
    %cst_128 = arith.constant 9.99999997E-7 : f32
    %376 = vector.broadcast %cst_128 : f32 to vector<2x1xf32>
    %377 = arith.addf %375, %376 : vector<2x1xf32>
    %378 = math.rsqrt %377 : vector<2x1xf32>
    %379 = vector.broadcast %378 : vector<2x1xf32> to vector<2x32xf32>
    %380 = arith.mulf %368, %379 : vector<2x32xf32>
    %381 = vector.broadcast %370 : vector<1x32xf32> to vector<2x32xf32>
    %382 = arith.mulf %380, %381 : vector<2x32xf32>
    %383 = vector.extract_strided_slice %259 {offsets = [0, 128], sizes = [32, 64], strides = [1, 1]} : vector<32x192xf32> to vector<32x64xf32>
    %cst_129 = arith.constant dense<0.000000e+00> : vector<2x64xf32>
    %384 = tpu.matmul %382, %383, %cst_129 {dimension_numbers = #tpu.dot_dimension_numbers<[1], [0], [0], [1], [0, 0, 1, 1], [], []>} : vector<2x32xf32>, vector<32x64xf32>, vector<2x64xf32> -> vector<2x64xf32>
    %cst_130 = arith.constant 0.000000e+00 : f32
    %385 = vector.broadcast %cst_130 : f32 to vector<2x64xf32>
    %386 = arith.maximumf %384, %385 : vector<2x64xf32>
    %387 = vector.extract_strided_slice %261 {offsets = [64, 0], sizes = [64, 32], strides = [1, 1]} : vector<128x32xf32> to vector<64x32xf32>
    %cst_131 = arith.constant dense<0.000000e+00> : vector<2x32xf32>
    %388 = tpu.matmul %386, %387, %cst_131 {dimension_numbers = #tpu.dot_dimension_numbers<[1], [0], [0], [1], [0, 0, 1, 1], [], []>} : vector<2x64xf32>, vector<64x32xf32>, vector<2x32xf32> -> vector<2x32xf32>
    %389 = arith.addf %368, %388 : vector<2x32xf32>
    %c1_132 = arith.constant 1 : index
    %c0_133 = arith.constant 0 : index
    %c0_134 = arith.constant 0 : index
    %390 = vector.load %arg8[%c1_132, %c0_133, %c0_134] : memref<2x32x192xf32, #tpu.memory_space<vmem>>, vector<1x32x192xf32>
    %391 = vector.shape_cast %390 : vector<1x32x192xf32> to vector<32x192xf32>
    %c1_135 = arith.constant 1 : index
    %c0_136 = arith.constant 0 : index
    %c0_137 = arith.constant 0 : index
    %392 = vector.load %arg9[%c1_135, %c0_136, %c0_137] : memref<2x128x32xf32, #tpu.memory_space<vmem>>, vector<1x128x32xf32>
    %393 = vector.shape_cast %392 : vector<1x128x32xf32> to vector<128x32xf32>
    %c8 = arith.constant 8 : index
    %c0_138 = arith.constant 0 : index
    %c0_139 = arith.constant 0 : index
    %394 = vector.load %arg5[%c8, %c0_138, %c0_139] : memref<12x1x32xf32, #tpu.memory_space<vmem>>, vector<1x1x32xf32>
    %395 = vector.shape_cast %394 : vector<1x1x32xf32> to vector<1x32xf32>
    %396 = arith.mulf %389, %389 : vector<2x32xf32>
    %cst_140 = arith.constant dense<0.000000e+00> : vector<2xf32>
    %397 = vector.multi_reduction <add>, %396, %cst_140 [1] : vector<2x32xf32> to vector<2xf32>
    %398 = vector.shape_cast %397 : vector<2xf32> to vector<2x1xf32>
    %cst_141 = arith.constant 3.200000e+01 : f32
    %399 = vector.broadcast %cst_141 : f32 to vector<2x1xf32>
    %400 = arith.divf %398, %399 : vector<2x1xf32>
    %cst_142 = arith.constant 9.99999997E-7 : f32
    %401 = vector.broadcast %cst_142 : f32 to vector<2x1xf32>
    %402 = arith.addf %400, %401 : vector<2x1xf32>
    %403 = math.rsqrt %402 : vector<2x1xf32>
    %404 = vector.broadcast %403 : vector<2x1xf32> to vector<2x32xf32>
    %405 = arith.mulf %389, %404 : vector<2x32xf32>
    %406 = vector.broadcast %395 : vector<1x32xf32> to vector<2x32xf32>
    %407 = arith.mulf %405, %406 : vector<2x32xf32>
    %408 = vector.extract_strided_slice %391 {offsets = [0, 0], sizes = [32, 32], strides = [1, 1]} : vector<32x192xf32> to vector<32x32xf32>
    %cst_143 = arith.constant dense<0.000000e+00> : vector<2x32xf32>
    %409 = tpu.matmul %407, %408, %cst_143 {dimension_numbers = #tpu.dot_dimension_numbers<[1], [0], [0], [1], [0, 0, 1, 1], [], []>} : vector<2x32xf32>, vector<32x32xf32>, vector<2x32xf32> -> vector<2x32xf32>
    %410 = vector.extract_strided_slice %393 {offsets = [0, 0], sizes = [32, 32], strides = [1, 1]} : vector<128x32xf32> to vector<32x32xf32>
    %cst_144 = arith.constant dense<0.000000e+00> : vector<2x32xf32>
    %411 = tpu.matmul %409, %410, %cst_144 {dimension_numbers = #tpu.dot_dimension_numbers<[1], [0], [0], [1], [0, 0, 1, 1], [], []>} : vector<2x32xf32>, vector<32x32xf32>, vector<2x32xf32> -> vector<2x32xf32>
    %412 = arith.addf %389, %411 : vector<2x32xf32>
    %c9 = arith.constant 9 : index
    %c0_145 = arith.constant 0 : index
    %c0_146 = arith.constant 0 : index
    %413 = vector.load %arg5[%c9, %c0_145, %c0_146] : memref<12x1x32xf32, #tpu.memory_space<vmem>>, vector<1x1x32xf32>
    %414 = vector.shape_cast %413 : vector<1x1x32xf32> to vector<1x32xf32>
    %415 = arith.mulf %412, %412 : vector<2x32xf32>
    %cst_147 = arith.constant dense<0.000000e+00> : vector<2xf32>
    %416 = vector.multi_reduction <add>, %415, %cst_147 [1] : vector<2x32xf32> to vector<2xf32>
    %417 = vector.shape_cast %416 : vector<2xf32> to vector<2x1xf32>
    %cst_148 = arith.constant 3.200000e+01 : f32
    %418 = vector.broadcast %cst_148 : f32 to vector<2x1xf32>
    %419 = arith.divf %417, %418 : vector<2x1xf32>
    %cst_149 = arith.constant 9.99999997E-7 : f32
    %420 = vector.broadcast %cst_149 : f32 to vector<2x1xf32>
    %421 = arith.addf %419, %420 : vector<2x1xf32>
    %422 = math.rsqrt %421 : vector<2x1xf32>
    %423 = vector.broadcast %422 : vector<2x1xf32> to vector<2x32xf32>
    %424 = arith.mulf %412, %423 : vector<2x32xf32>
    %425 = vector.broadcast %414 : vector<1x32xf32> to vector<2x32xf32>
    %426 = arith.mulf %424, %425 : vector<2x32xf32>
    %427 = vector.extract_strided_slice %391 {offsets = [0, 32], sizes = [32, 32], strides = [1, 1]} : vector<32x192xf32> to vector<32x32xf32>
    %cst_150 = arith.constant dense<0.000000e+00> : vector<2x32xf32>
    %428 = tpu.matmul %426, %427, %cst_150 {dimension_numbers = #tpu.dot_dimension_numbers<[1], [0], [0], [1], [0, 0, 1, 1], [], []>} : vector<2x32xf32>, vector<32x32xf32>, vector<2x32xf32> -> vector<2x32xf32>
    %429 = vector.extract_strided_slice %391 {offsets = [0, 64], sizes = [32, 64], strides = [1, 1]} : vector<32x192xf32> to vector<32x64xf32>
    %cst_151 = arith.constant dense<0.000000e+00> : vector<16x64xf32>
    %430 = tpu.matmul %256, %429, %cst_151 {dimension_numbers = #tpu.dot_dimension_numbers<[1], [0], [0], [1], [0, 0, 1, 1], [], []>} : vector<16x32xf32>, vector<32x64xf32>, vector<16x64xf32> -> vector<16x64xf32>
    %431 = vector.extract_strided_slice %430 {offsets = [0, 0], sizes = [16, 32], strides = [1, 1]} : vector<16x64xf32> to vector<16x32xf32>
    %432 = vector.extract_strided_slice %430 {offsets = [0, 32], sizes = [16, 32], strides = [1, 1]} : vector<16x64xf32> to vector<16x32xf32>
    %433 = vector.extract_strided_slice %428 {offsets = [0, 0], sizes = [2, 8], strides = [1, 1]} : vector<2x32xf32> to vector<2x8xf32>
    %434 = vector.extract_strided_slice %431 {offsets = [0, 0], sizes = [16, 8], strides = [1, 1]} : vector<16x32xf32> to vector<16x8xf32>
    %cst_152 = arith.constant dense<0.000000e+00> : vector<2x16xf32>
    %435 = tpu.matmul %433, %434, %cst_152 {dimension_numbers = #tpu.dot_dimension_numbers<[1], [1], [0], [0], [0, 0, 1, 0], [], []>} : vector<2x8xf32>, vector<16x8xf32>, vector<2x16xf32> -> vector<2x16xf32>
    %436 = arith.addf %435, %1 : vector<2x16xf32>
    %cst_153 = arith.constant dense<0xFF800000> : vector<2xf32>
    %437 = vector.multi_reduction <maximumf>, %436, %cst_153 [1] : vector<2x16xf32> to vector<2xf32>
    %438 = vector.shape_cast %437 : vector<2xf32> to vector<2x1xf32>
    %439 = vector.broadcast %438 : vector<2x1xf32> to vector<2x16xf32>
    %440 = arith.subf %436, %439 : vector<2x16xf32>
    %441 = math.exp %440 : vector<2x16xf32>
    %cst_154 = arith.constant dense<0.000000e+00> : vector<2xf32>
    %442 = vector.multi_reduction <add>, %441, %cst_154 [1] : vector<2x16xf32> to vector<2xf32>
    %443 = vector.shape_cast %442 : vector<2xf32> to vector<2x1xf32>
    %444 = tpu.reciprocal %443 {approx = true} : vector<2x1xf32> -> vector<2x1xf32>
    %445 = vector.broadcast %444 : vector<2x1xf32> to vector<2x16xf32>
    %446 = arith.mulf %441, %445 : vector<2x16xf32>
    %447 = vector.extract_strided_slice %432 {offsets = [0, 0], sizes = [16, 8], strides = [1, 1]} : vector<16x32xf32> to vector<16x8xf32>
    %cst_155 = arith.constant dense<0.000000e+00> : vector<2x8xf32>
    %448 = tpu.matmul %446, %447, %cst_155 {dimension_numbers = #tpu.dot_dimension_numbers<[1], [0], [0], [1], [0, 0, 1, 1], [], []>} : vector<2x16xf32>, vector<16x8xf32>, vector<2x8xf32> -> vector<2x8xf32>
    %449 = vector.extract_strided_slice %428 {offsets = [0, 8], sizes = [2, 8], strides = [1, 1]} : vector<2x32xf32> to vector<2x8xf32>
    %450 = vector.extract_strided_slice %431 {offsets = [0, 8], sizes = [16, 8], strides = [1, 1]} : vector<16x32xf32> to vector<16x8xf32>
    %cst_156 = arith.constant dense<0.000000e+00> : vector<2x16xf32>
    %451 = tpu.matmul %449, %450, %cst_156 {dimension_numbers = #tpu.dot_dimension_numbers<[1], [1], [0], [0], [0, 0, 1, 0], [], []>} : vector<2x8xf32>, vector<16x8xf32>, vector<2x16xf32> -> vector<2x16xf32>
    %452 = arith.addf %451, %1 : vector<2x16xf32>
    %cst_157 = arith.constant dense<0xFF800000> : vector<2xf32>
    %453 = vector.multi_reduction <maximumf>, %452, %cst_157 [1] : vector<2x16xf32> to vector<2xf32>
    %454 = vector.shape_cast %453 : vector<2xf32> to vector<2x1xf32>
    %455 = vector.broadcast %454 : vector<2x1xf32> to vector<2x16xf32>
    %456 = arith.subf %452, %455 : vector<2x16xf32>
    %457 = math.exp %456 : vector<2x16xf32>
    %cst_158 = arith.constant dense<0.000000e+00> : vector<2xf32>
    %458 = vector.multi_reduction <add>, %457, %cst_158 [1] : vector<2x16xf32> to vector<2xf32>
    %459 = vector.shape_cast %458 : vector<2xf32> to vector<2x1xf32>
    %460 = tpu.reciprocal %459 {approx = true} : vector<2x1xf32> -> vector<2x1xf32>
    %461 = vector.broadcast %460 : vector<2x1xf32> to vector<2x16xf32>
    %462 = arith.mulf %457, %461 : vector<2x16xf32>
    %463 = vector.extract_strided_slice %432 {offsets = [0, 8], sizes = [16, 8], strides = [1, 1]} : vector<16x32xf32> to vector<16x8xf32>
    %cst_159 = arith.constant dense<0.000000e+00> : vector<2x8xf32>
    %464 = tpu.matmul %462, %463, %cst_159 {dimension_numbers = #tpu.dot_dimension_numbers<[1], [0], [0], [1], [0, 0, 1, 1], [], []>} : vector<2x16xf32>, vector<16x8xf32>, vector<2x8xf32> -> vector<2x8xf32>
    %465 = vector.extract_strided_slice %428 {offsets = [0, 16], sizes = [2, 8], strides = [1, 1]} : vector<2x32xf32> to vector<2x8xf32>
    %466 = vector.extract_strided_slice %431 {offsets = [0, 16], sizes = [16, 8], strides = [1, 1]} : vector<16x32xf32> to vector<16x8xf32>
    %cst_160 = arith.constant dense<0.000000e+00> : vector<2x16xf32>
    %467 = tpu.matmul %465, %466, %cst_160 {dimension_numbers = #tpu.dot_dimension_numbers<[1], [1], [0], [0], [0, 0, 1, 0], [], []>} : vector<2x8xf32>, vector<16x8xf32>, vector<2x16xf32> -> vector<2x16xf32>
    %468 = arith.addf %467, %1 : vector<2x16xf32>
    %cst_161 = arith.constant dense<0xFF800000> : vector<2xf32>
    %469 = vector.multi_reduction <maximumf>, %468, %cst_161 [1] : vector<2x16xf32> to vector<2xf32>
    %470 = vector.shape_cast %469 : vector<2xf32> to vector<2x1xf32>
    %471 = vector.broadcast %470 : vector<2x1xf32> to vector<2x16xf32>
    %472 = arith.subf %468, %471 : vector<2x16xf32>
    %473 = math.exp %472 : vector<2x16xf32>
    %cst_162 = arith.constant dense<0.000000e+00> : vector<2xf32>
    %474 = vector.multi_reduction <add>, %473, %cst_162 [1] : vector<2x16xf32> to vector<2xf32>
    %475 = vector.shape_cast %474 : vector<2xf32> to vector<2x1xf32>
    %476 = tpu.reciprocal %475 {approx = true} : vector<2x1xf32> -> vector<2x1xf32>
    %477 = vector.broadcast %476 : vector<2x1xf32> to vector<2x16xf32>
    %478 = arith.mulf %473, %477 : vector<2x16xf32>
    %479 = vector.extract_strided_slice %432 {offsets = [0, 16], sizes = [16, 8], strides = [1, 1]} : vector<16x32xf32> to vector<16x8xf32>
    %cst_163 = arith.constant dense<0.000000e+00> : vector<2x8xf32>
    %480 = tpu.matmul %478, %479, %cst_163 {dimension_numbers = #tpu.dot_dimension_numbers<[1], [0], [0], [1], [0, 0, 1, 1], [], []>} : vector<2x16xf32>, vector<16x8xf32>, vector<2x8xf32> -> vector<2x8xf32>
    %481 = vector.extract_strided_slice %428 {offsets = [0, 24], sizes = [2, 8], strides = [1, 1]} : vector<2x32xf32> to vector<2x8xf32>
    %482 = vector.extract_strided_slice %431 {offsets = [0, 24], sizes = [16, 8], strides = [1, 1]} : vector<16x32xf32> to vector<16x8xf32>
    %cst_164 = arith.constant dense<0.000000e+00> : vector<2x16xf32>
    %483 = tpu.matmul %481, %482, %cst_164 {dimension_numbers = #tpu.dot_dimension_numbers<[1], [1], [0], [0], [0, 0, 1, 0], [], []>} : vector<2x8xf32>, vector<16x8xf32>, vector<2x16xf32> -> vector<2x16xf32>
    %484 = arith.addf %483, %1 : vector<2x16xf32>
    %cst_165 = arith.constant dense<0xFF800000> : vector<2xf32>
    %485 = vector.multi_reduction <maximumf>, %484, %cst_165 [1] : vector<2x16xf32> to vector<2xf32>
    %486 = vector.shape_cast %485 : vector<2xf32> to vector<2x1xf32>
    %487 = vector.broadcast %486 : vector<2x1xf32> to vector<2x16xf32>
    %488 = arith.subf %484, %487 : vector<2x16xf32>
    %489 = math.exp %488 : vector<2x16xf32>
    %cst_166 = arith.constant dense<0.000000e+00> : vector<2xf32>
    %490 = vector.multi_reduction <add>, %489, %cst_166 [1] : vector<2x16xf32> to vector<2xf32>
    %491 = vector.shape_cast %490 : vector<2xf32> to vector<2x1xf32>
    %492 = tpu.reciprocal %491 {approx = true} : vector<2x1xf32> -> vector<2x1xf32>
    %493 = vector.broadcast %492 : vector<2x1xf32> to vector<2x16xf32>
    %494 = arith.mulf %489, %493 : vector<2x16xf32>
    %495 = vector.extract_strided_slice %432 {offsets = [0, 24], sizes = [16, 8], strides = [1, 1]} : vector<16x32xf32> to vector<16x8xf32>
    %cst_167 = arith.constant dense<0.000000e+00> : vector<2x8xf32>
    %496 = tpu.matmul %494, %495, %cst_167 {dimension_numbers = #tpu.dot_dimension_numbers<[1], [0], [0], [1], [0, 0, 1, 1], [], []>} : vector<2x16xf32>, vector<16x8xf32>, vector<2x8xf32> -> vector<2x8xf32>
    %497 = tpu.concatenate %448, %464, %480, %496 in 1 : vector<2x8xf32>, vector<2x8xf32>, vector<2x8xf32>, vector<2x8xf32> -> vector<2x32xf32>
    %498 = vector.extract_strided_slice %393 {offsets = [32, 0], sizes = [32, 32], strides = [1, 1]} : vector<128x32xf32> to vector<32x32xf32>
    %cst_168 = arith.constant dense<0.000000e+00> : vector<2x32xf32>
    %499 = tpu.matmul %497, %498, %cst_168 {dimension_numbers = #tpu.dot_dimension_numbers<[1], [0], [0], [1], [0, 0, 1, 1], [], []>} : vector<2x32xf32>, vector<32x32xf32>, vector<2x32xf32> -> vector<2x32xf32>
    %500 = arith.addf %412, %499 : vector<2x32xf32>
    %c10 = arith.constant 10 : index
    %c0_169 = arith.constant 0 : index
    %c0_170 = arith.constant 0 : index
    %501 = vector.load %arg5[%c10, %c0_169, %c0_170] : memref<12x1x32xf32, #tpu.memory_space<vmem>>, vector<1x1x32xf32>
    %502 = vector.shape_cast %501 : vector<1x1x32xf32> to vector<1x32xf32>
    %503 = arith.mulf %500, %500 : vector<2x32xf32>
    %cst_171 = arith.constant dense<0.000000e+00> : vector<2xf32>
    %504 = vector.multi_reduction <add>, %503, %cst_171 [1] : vector<2x32xf32> to vector<2xf32>
    %505 = vector.shape_cast %504 : vector<2xf32> to vector<2x1xf32>
    %cst_172 = arith.constant 3.200000e+01 : f32
    %506 = vector.broadcast %cst_172 : f32 to vector<2x1xf32>
    %507 = arith.divf %505, %506 : vector<2x1xf32>
    %cst_173 = arith.constant 9.99999997E-7 : f32
    %508 = vector.broadcast %cst_173 : f32 to vector<2x1xf32>
    %509 = arith.addf %507, %508 : vector<2x1xf32>
    %510 = math.rsqrt %509 : vector<2x1xf32>
    %511 = vector.broadcast %510 : vector<2x1xf32> to vector<2x32xf32>
    %512 = arith.mulf %500, %511 : vector<2x32xf32>
    %513 = vector.broadcast %502 : vector<1x32xf32> to vector<2x32xf32>
    %514 = arith.mulf %512, %513 : vector<2x32xf32>
    %515 = vector.extract_strided_slice %391 {offsets = [0, 128], sizes = [32, 64], strides = [1, 1]} : vector<32x192xf32> to vector<32x64xf32>
    %cst_174 = arith.constant dense<0.000000e+00> : vector<2x64xf32>
    %516 = tpu.matmul %514, %515, %cst_174 {dimension_numbers = #tpu.dot_dimension_numbers<[1], [0], [0], [1], [0, 0, 1, 1], [], []>} : vector<2x32xf32>, vector<32x64xf32>, vector<2x64xf32> -> vector<2x64xf32>
    %cst_175 = arith.constant 0.000000e+00 : f32
    %517 = vector.broadcast %cst_175 : f32 to vector<2x64xf32>
    %518 = arith.maximumf %516, %517 : vector<2x64xf32>
    %519 = vector.extract_strided_slice %393 {offsets = [64, 0], sizes = [64, 32], strides = [1, 1]} : vector<128x32xf32> to vector<64x32xf32>
    %cst_176 = arith.constant dense<0.000000e+00> : vector<2x32xf32>
    %520 = tpu.matmul %518, %519, %cst_176 {dimension_numbers = #tpu.dot_dimension_numbers<[1], [0], [0], [1], [0, 0, 1, 1], [], []>} : vector<2x64xf32>, vector<64x32xf32>, vector<2x32xf32> -> vector<2x32xf32>
    %521 = arith.addf %500, %520 : vector<2x32xf32>
    %c11 = arith.constant 11 : index
    %c0_177 = arith.constant 0 : index
    %c0_178 = arith.constant 0 : index
    %522 = vector.load %arg5[%c11, %c0_177, %c0_178] : memref<12x1x32xf32, #tpu.memory_space<vmem>>, vector<1x1x32xf32>
    %523 = vector.shape_cast %522 : vector<1x1x32xf32> to vector<1x32xf32>
    %524 = arith.mulf %521, %521 : vector<2x32xf32>
    %cst_179 = arith.constant dense<0.000000e+00> : vector<2xf32>
    %525 = vector.multi_reduction <add>, %524, %cst_179 [1] : vector<2x32xf32> to vector<2xf32>
    %526 = vector.shape_cast %525 : vector<2xf32> to vector<2x1xf32>
    %cst_180 = arith.constant 3.200000e+01 : f32
    %527 = vector.broadcast %cst_180 : f32 to vector<2x1xf32>
    %528 = arith.divf %526, %527 : vector<2x1xf32>
    %cst_181 = arith.constant 9.99999997E-7 : f32
    %529 = vector.broadcast %cst_181 : f32 to vector<2x1xf32>
    %530 = arith.addf %528, %529 : vector<2x1xf32>
    %531 = math.rsqrt %530 : vector<2x1xf32>
    %532 = vector.broadcast %531 : vector<2x1xf32> to vector<2x32xf32>
    %533 = arith.mulf %521, %532 : vector<2x32xf32>
    %534 = vector.broadcast %523 : vector<1x32xf32> to vector<2x32xf32>
    %535 = arith.mulf %533, %534 : vector<2x32xf32>
    %c0_182 = arith.constant 0 : index
    %c0_183 = arith.constant 0 : index
    %536 = vector.load %arg10[%c0_182, %c0_183] : memref<2x32xf32, #tpu.memory_space<vmem>>, vector<2x32xf32>
    tpu.vector_store %arg10[%c0_182, %c0_183], %535 {strides = array<i32>} : memref<2x32xf32, #tpu.memory_space<vmem>>, vector<2x32xf32>,
    return
  }
  func.func @transform_0(%arg0: i32) -> (i32, i32) {
    %c0_i32 = arith.constant 0 : i32
    %c0_i32_0 = arith.constant 0 : i32
    %c0_i32_1 = arith.constant 0 : i32
    return %c0_i32, %c0_i32_0 : i32, i32
  }
  func.func @transform_1(%arg0: i32) -> (i32, i32) {
    %c0_i32 = arith.constant 0 : i32
    %c0_i32_0 = arith.constant 0 : i32
    %c0_i32_1 = arith.constant 0 : i32
    return %c0_i32, %c0_i32_0 : i32, i32
  }
  func.func @transform_2(%arg0: i32) -> (i32, i32, i32) {
    %c0_i32 = arith.constant 0 : i32
    %c0_i32_0 = arith.constant 0 : i32
    %c0_i32_1 = arith.constant 0 : i32
    %c0_i32_2 = arith.constant 0 : i32
    return %c0_i32, %c0_i32_0, %c0_i32_1 : i32, i32, i32
  }
  func.func @transform_3(%arg0: i32) -> (i32, i32) {
    %c0_i32 = arith.constant 0 : i32
    %c0_i32_0 = arith.constant 0 : i32
    %c0_i32_1 = arith.constant 0 : i32
    return %c0_i32, %c0_i32_0 : i32, i32
  }
  func.func @transform_4(%arg0: i32) -> (i32, i32, i32) {
    %c0_i32 = arith.constant 0 : i32
    %c0_i32_0 = arith.constant 0 : i32
    %c0_i32_1 = arith.constant 0 : i32
    %c0_i32_2 = arith.constant 0 : i32
    return %c0_i32, %c0_i32_0, %c0_i32_1 : i32, i32, i32
  }
  func.func @transform_5(%arg0: i32) -> (i32, i32, i32) {
    %c0_i32 = arith.constant 0 : i32
    %c0_i32_0 = arith.constant 0 : i32
    %c0_i32_1 = arith.constant 0 : i32
    %c0_i32_2 = arith.constant 0 : i32
    return %c0_i32, %c0_i32_0, %c0_i32_1 : i32, i32, i32
  }
  func.func @transform_6(%arg0: i32) -> (i32, i32, i32) {
    %c0_i32 = arith.constant 0 : i32
    %c0_i32_0 = arith.constant 0 : i32
    %c0_i32_1 = arith.constant 0 : i32
    %c0_i32_2 = arith.constant 0 : i32
    return %c0_i32, %c0_i32_0, %c0_i32_1 : i32, i32, i32
  }
  func.func @transform_7(%arg0: i32) -> (i32, i32, i32) {
    %c0_i32 = arith.constant 0 : i32
    %c0_i32_0 = arith.constant 0 : i32
    %c0_i32_1 = arith.constant 0 : i32
    %c0_i32_2 = arith.constant 0 : i32
    return %c0_i32, %c0_i32_0, %c0_i32_1 : i32, i32, i32
  }
  func.func @transform_8(%arg0: i32) -> (i32, i32, i32) {
    %c0_i32 = arith.constant 0 : i32
    %c0_i32_0 = arith.constant 0 : i32
    %c0_i32_1 = arith.constant 0 : i32
    %c0_i32_2 = arith.constant 0 : i32
    return %c0_i32, %c0_i32_0, %c0_i32_1 : i32, i32, i32
  }
  func.func @transform_9(%arg0: i32) -> (i32, i32) {
    %c0_i32 = arith.constant 0 : i32
    %c0_i32_0 = arith.constant 0 : i32
    %c0_i32_1 = arith.constant 0 : i32
    return %c0_i32, %c0_i32_0 : i32, i32
  }
}

</mosaic_0001>

<bundles_post_ra>
// kernel: t5_dense_encode.1
= control target key start
LH: loop header
LB: loop body
LE: loop exit
PB: predicated region body
PF: predicated region fallthrough
CT: control target
= control target key end

     0   :  { %vm67_vm0 = vcmask 261120   ;;  %s4134_s0 = inlined_call_operand.vmem [shape: f32[16,32], index: 0, kind: input, shape index: {}]   ;;  %s4135_s1 = inlined_call_operand.vmem [shape: f32[2,32], index: 1, kind: input, shape index: {}]   ;;  %s4136_s2 = inlined_call_operand.vmem [shape: f32[4,16,16], index: 2, kind: input, shape index: {}]   ;;  %s4137_s3 = inlined_call_operand.vmem [shape: f32[2,16], index: 3, kind: input, shape index: {}]   ;;  %s4138_s4 = inlined_call_operand.vmem [shape: f32[12,1,32], index: 4, kind: input, shape index: {}]   ;;  %s4139_s5 = inlined_call_operand.vmem [shape: f32[2,32,160], index: 5, kind: input, shape index: {}]   ;;  %s4140_s6 = inlined_call_operand.vmem [shape: f32[2,96,32], index: 6, kind: input, shape index: {}]   ;;  %s4141_s7 = inlined_call_operand.vmem [shape: f32[2,32,192], index: 7, kind: input, shape index: {}]   ;;  %s4142_s8 = inlined_call_operand.vmem [shape: f32[2,128,32], index: 8, kind: input, shape index: {}]   ;;  %s4143_s9 = inlined_call_operand.hbm [shape: f32[2,32], index: 9, kind: output, shape index: {}]  }
   0x1   :  { %v3243_v0 = vld [vmem:[%s4134_s0] sm:$0xff]  ;;  %v3248_v1 = vld [vmem:[%s4134_s0 + $0x8] sm:$0xff] }
   0x2   :  { %v65_v2 = vmul.f32 %v3243_v0, %v3243_v0 }
   0x4   :  { %v68_v3 = vsel %vm67_vm0, %v65_v2, 0.0 }
   0x5   :  { %69 = vadd.xlane.f32.xlu0 %v68_v3 }
   0x6   :  { %14 = vsyncpa [#allocation3], 0  ;;  %v66_v4 = vmul.f32 %v3248_v1, %v3248_v1  ;;  %v3173_v6 = vmov 32.0   ;;  %v3259_v10 = vld [vmem:[%s4139_s5 + $0x30] sm:$0xff]  ;;  %v3265_v11 = vld [vmem:[%s4139_s5 + $0x20] sm:$0xff]  ;;  %s3174_s22 = smov 88  }
   0x7   :  { %3015 = vrcp.f32 %v3173_v6  ;;  %130 = vmatpush.msra.mxu0 %v3259_v10  ;;  %v3271_v13 = vld [vmem:[%s4139_s5 + $0x10] sm:$0xff]  ;;  %v3277_v14 = vld [vmem:[%s4139_s5] sm:$0xff]  ;;  %s3175_s23 = smov 72   ;;  %s3176_s24 = smov 96   ;;  %vm147_vm8 = vcmask 64512   ;;  %vm179_vm9 = vcmask 130048  }
   0x8   :  { %v71_v5 = vsel %vm67_vm0, %v66_v4, 0.0  ;;  %v3003_v31 = vld [vmem:[%s4138_s4] ss:$0 sm:$0xff]  ;;  %s3177_s25 = smov 104   ;;  %s3178_s26 = smov 80   ;;  %v3314_v50 = vld [vmem:[%s4136_s2 + $0x8] sm:$0xff] }
   0x9   :  { %131 = vmatpush.msra.mxu0 %v3265_v11  ;;  %s3179_s27 = smov 120   ;;  %s3180_s28 = smov 112   ;;  %v3307_v46 = vld [vmem:[%s4136_s2] sm:$0xff]  ;;  %vm553_vm10 = vcmask 195584  }
   0xa   :  { %s3181_s12 = smov 64   ;;  %s3183_s10 = smov 48  }
   0xb   :  { %132 = vmatpush.msra.mxu0 %v3271_v13  ;;  %s3184_s11 = smov 40   ;;  %s3185_s0 = smov 8  }
   0xc   :  { %s3186_s13 = smov 24   ;;  %s3187_s14 = smov 16  }
   0xd   :  { %72 = vadd.xlane.f32.xlu0 %v71_v5  ;;  %v3016_v7 = vpop.eup %3015  ;;  %133 = vmatpush.msra.mxu0 %v3277_v14  ;;  %s3188_s16 = smov 32   ;;  %s3189_s15 = smov [#allocation2]  }
   0xe   :  { %v75_v8 = vmul.f32 32.0, %v3016_v7  ;;  %vm79_vm1 = vweird.f32 %v3016_v7  ;;  %s2648_s18 = sshll.u32 %s4143_s9, 4  ;;  %s2649_s18 = int_to_ptr.hbm [resolvable:$true] %s2648_s18 }
  0x10   :  { %v76_v9 = vsub.f32 1.0, %v75_v8 }
  0x12   :  { %v77_v12 = vmul.f32 %v3016_v7, %v76_v9 }
  0x14   :  { %v78_v15 = vadd.f32 %v3016_v7, %v77_v12 }
  0x16   :  { %v3280_v16 = vsel %vm79_vm1, %v3016_v7, %v78_v15 }
  0x78   :  { %v70_v17 = vpop.xlane.xlu0 %69 }
  0x79   :  { %v81_v18 = vmul.f32 %v3280_v16, %v70_v17 }
  0x7b   :  { %v83_v19 = vadd.f32 1e-06, %v81_v18 }
  0x7d   :  { %3017 = vrsqrt.f32 %v83_v19  ;;  %vm91_vm3 = vweird.f32 %v83_v19 }
  0x80   :  { %v73_v20 = vpop.xlane.xlu0 %72 }
  0x81   :  { %v82_v21 = vmul.f32 %v3280_v16, %v73_v20 }
  0x83   :  { %v3018_v22 = vpop.eup %3017  ;;  %v84_v23 = vadd.f32 1e-06, %v82_v21 }
  0x84   :  { %v86_v24 = vmul.f32 %v3018_v22, %v83_v19  ;;  %vm92_vm2 = vweird.f32 %v3018_v22 }
  0x85   :  { %3019 = vrsqrt.f32 %v84_v23  ;;  %vm93_vm4 = vmor %vm91_vm3, %vm92_vm2  ;;  %vm101_vm6 = vweird.f32 %v84_v23  ;;  %vm691_vm2 = vcmask 523264  }
  0x86   :  { %v87_v25 = vmul.f32 %v3018_v22, %v86_v24 }
  0x88   :  { %v88_v26 = vmul.f32 0.5, %v87_v25 }
  0x8a   :  { %v89_v27 = vsub.f32 1.5, %v88_v26 }
  0x8b   :  { %v3020_v28 = vpop.eup %3019 }
  0x8c   :  { %v96_v29 = vmul.f32 %v3020_v28, %v84_v23  ;;  %v90_v30 = vmul.f32 %v3018_v22, %v89_v27  ;;  %vm102_vm5 = vweird.f32 %v3020_v28 }
  0x8d   :  { %vm103_vm7 = vmor %vm101_vm6, %vm102_vm5 }
  0x8e   :  { %v97_v32 = vmul.f32 %v3020_v28, %v96_v29  ;;  %v94_v33 = vsel %vm93_vm4, %v3018_v22, %v90_v30 }
  0x8f   :  { %v105_v34 = vmul.f32 %v94_v33, %v3243_v0  ;;  %v3352_v33 = vld [vmem:[%s4136_s2 + $0x18] sm:$0xff] }
  0x90   :  { %v98_v35 = vmul.f32 0.5, %v97_v32 }
  0x91   :  { %v110_v36 = vmul.f32 %v3003_v31, %v105_v34 }
  0x92   :  { %v99_v37 = vsub.f32 1.5, %v98_v35 }
  0x93   :  { %2657 = vmatmul.msk.f32.vlgmr.msra.gmra.mxu0 %vm67_vm0, %v110_v36 }
  0x94   :  { %v100_v38 = vmul.f32 %v3020_v28, %v99_v37  ;;  %v3360_v37 = vld [vmem:[%s4136_s2 + $0x30] sm:$0xff] }
  0x96   :  { %v104_v39 = vsel %vm103_vm7, %v3020_v28, %v100_v38  ;;  %v3343_v28 = vld [vmem:[%s4136_s2 + $0x10] sm:$0xff] }
  0x97   :  { %v106_v40 = vmul.f32 %v104_v39, %v3248_v1 }
  0x99   :  { %v111_v41 = vmul.f32 %v3003_v31, %v106_v40 }
  0x9b   :  { %2658 = vmatmul.msk.f32.gmra.mxu0 %vm67_vm0, %v111_v41  ;;  %v3367_v41 = vld [vmem:[%s4136_s2 + $0x38] sm:$0xff] }
 0x110   :  { %v135_v42 = vpop.f32.mrf.mxu0 }
 0x111   :  { %241 = vrot.lane.b32.xlu0 %v135_v42, %s3174_s22 }
 0x118   :  { %v138_v43 = vpop.f32.mrf.mxu0 }
 0x119   :  { %433 = vrot.lane.b32.xlu0 %v135_v42, %s3175_s23  ;;  %145 = vrot.lane.b32.xlu1 %v138_v43, %s3176_s24  ;;  %v3320_v54 = vpack.i.bf16 %v135_v42, %v138_v43 }
 0x121   :  { %429 = vrot.lane.b32.xlu0 %v135_v42, %s3177_s25  ;;  %143 = vrot.lane.b32.xlu1 %v135_v42, %s3176_s24 }
 0x129   :  { %337 = vrot.lane.b32.xlu0 %v135_v42, %s3178_s26  ;;  %237 = vrot.lane.b32.xlu1 %v135_v42, %s3179_s27 }
 0x131   :  { %333 = vrot.lane.b32.xlu0 %v135_v42, %s3180_s28  ;;  %239 = vrot.lane.b32.xlu1 %v138_v43, %s3179_s27 }
 0x183   :  { %v242_v55 = vpop.permute.xlu0 %241 }
 0x18b   :  { %v146_v44 = vpop.permute.xlu1 %145  ;;  %v434_v56 = vpop.permute.xlu0 %433 }
 0x18c   :  { %2659 = vmatpush.xpose.msk.msra.mxu1 %vm147_vm8, %v146_v44 }
 0x193   :  { %v144_v45 = vpop.permute.xlu1 %143  ;;  %v430_v57 = vpop.permute.xlu0 %429 }
 0x194   :  { %2660 = vmatpush.xpose.msk.msra.mxu1 %vm147_vm8, %v144_v45 }
 0x197   :  { %2661 = vmatmul.msk.f32.vlgmr.msra.gmra.mxu1 %vm147_vm8, %v135_v42 }
 0x19b   :  { %v338_v58 = vpop.permute.xlu0 %337  ;;  %v238_v7 = vpop.permute.xlu1 %237 }
 0x19f   :  { %2662 = vmatmul.msk.f32.gmra.mxu1 %vm147_vm8, %v138_v43 }
 0x1a3   :  { %v334_v59 = vpop.permute.xlu0 %333  ;;  %v240_v15 = vpop.permute.xlu1 %239 }
 0x214   :  { %v173_v47 = vpop.f32.mrf.mxu1 }
 0x215   :  { %v174_v48 = vadd.f32 %v173_v47, %v3307_v46 }
 0x217   :  { %v180_v49 = vsel %vm179_vm9, %v174_v48, -inf }
 0x218   :  { %181 = vmax.xlane.f32.xlu2 %v180_v49 }
 0x21c   :  { %v176_v51 = vpop.f32.mrf.mxu1 }
 0x21d   :  { %v177_v52 = vadd.f32 %v176_v51, %v3314_v50  ;;  %v3376_v51 = vld [vmem:[%s4136_s2 + $0x20] sm:$0xff] }
 0x21f   :  { %v183_v53 = vsel %vm179_vm9, %v177_v52, -inf }
 0x220   :  { %184 = vmax.xlane.f32.xlu0 %v183_v53 }
 0x230   :  { %243 = vrot.lane.b32.xlu2 %v138_v43, %s3174_s22 }
 0x238   :  { %435 = vrot.lane.b32.xlu2 %v138_v43, %s3175_s23 }
 0x240   :  { %2844 = vrot.lane.b32.xlu2 %v3320_v54, %s3181_s12 }
 0x248   :  { %339 = vrot.lane.b32.xlu2 %v138_v43, %s3178_s26 }
 0x250   :  { %431 = vrot.lane.b32.xlu2 %v138_v43, %s3177_s25 }
 0x258   :  { %335 = vrot.lane.b32.xlu2 %v138_v43, %s3180_s28 }
 0x28b   :  { %v182_v60 = vpop.xlane.xlu2 %181 }
 0x28c   :  { %v186_v61 = vsub.f32 %v174_v48, %v182_v60  ;;  %v3383_v60 = vld [vmem:[%s4136_s2 + $0x28] sm:$0xff]  ;;  %s3182_s2 = smov 56  }
 0x28e   :  { %v188_v62 = vmul.f32 1.442695, %v186_v61 }
 0x290   :  { %3021 = vpow2.f32 %v188_v62 }
 0x293   :  { %v185_v63 = vpop.xlane.xlu0 %184  ;;  %v244_v2 = vpop.permute.xlu2 %243 }
 0x294   :  { %v187_v3 = vsub.f32 %v177_v52, %v185_v63  ;;  %2665 = vmatpush.xpose.msk.msra.mxu3 %vm147_vm8, %v244_v2 }
 0x296   :  { %v3022_v4 = vpop.eup %3021  ;;  %v190_v5 = vmul.f32 1.442695, %v187_v3 }
 0x297   :  { %v192_v6 = vsel %vm179_vm9, %v3022_v4, 0.0 }
 0x298   :  { %3023 = vpow2.f32 %v190_v5  ;;  %193 = vadd.xlane.f32.xlu1 %v192_v6  ;;  %2666 = vmatpush.xpose.msk.msra.mxu3 %vm147_vm8, %v242_v55 }
 0x29b   :  { %2667 = vmatmul.msk.f32.vlgmr.msra.gmra.mxu3 %vm147_vm8, %v238_v7  ;;  %v436_v8 = vpop.permute.xlu2 %435 }
 0x29c   :  { %2677 = vmatpush.xpose.msk.msrb.mxu3 %vm147_vm8, %v436_v8 }
 0x29e   :  { %v3024_v9 = vpop.eup %3023 }
 0x29f   :  { %v195_v12 = vsel %vm179_vm9, %v3024_v9, 0.0 }
 0x2a0   :  { %196 = vadd.xlane.f32.xlu0 %v195_v12  ;;  %2678 = vmatpush.xpose.msk.msrb.mxu3 %vm147_vm8, %v434_v56 }
 0x2a3   :  { %2668 = vmatmul.msk.f32.gmra.mxu3 %vm147_vm8, %v240_v15  ;;  %v2845_v17 = vpop.permute.xlu2 %2844 }
 0x2a4   :  { %v2846_v18 = vunpack.i.l.bf16 %v2845_v17  ;;  %v2847_v19 = vunpack.i.h.bf16 %v2845_v17 }
 0x2a6   :  { %228 = vmatpush.msrb.mxu0 %v2846_v18  ;;  %2824 = vmatpush.msra.mxu2 %v2846_v18 }
 0x2a8   :  { %229 = vmatpush.msrb.mxu0 %v2847_v19  ;;  %2825 = vmatpush.msra.mxu2 %v2847_v19 }
 0x2ab   :  { %2679 = vmatmul.msk.f32.vlgmr.msrb.gmra.mxu3 %vm147_vm8, %v430_v57  ;;  %v340_v20 = vpop.permute.xlu2 %339 }
 0x2ac   :  { %2671 = vmatpush.xpose.msk.msra.mxu0 %vm147_vm8, %v340_v20 }
 0x2b0   :  { %2672 = vmatpush.xpose.msk.msra.mxu0 %vm147_vm8, %v338_v58 }
 0x2b3   :  { %v432_v21 = vpop.permute.xlu2 %431 }
 0x2b4   :  { %2680 = vmatmul.msk.f32.gmra.mxu3 %vm147_vm8, %v432_v21 }
 0x2bb   :  { %v336_v32 = vpop.permute.xlu2 %335 }
 0x30b   :  { %v194_v22 = vpop.xlane.xlu1 %193 }
 0x30c   :  { %3025 = vrcp.f32 %v194_v22 }
 0x312   :  { %v3026_v23 = vpop.eup %3025 }
 0x313   :  { %v197_v24 = vpop.xlane.xlu0 %196  ;;  %v200_v25 = vmul.f32 %v3026_v23, %v3022_v4 }
 0x314   :  { %3027 = vrcp.f32 %v197_v24 }
 0x315   :  { %2663 = vmatmul.msk.f32.vlgmr.msrb.gmra.mxu0 %vm179_vm9, %v200_v25 }
 0x31a   :  { %v3028_v26 = vpop.eup %3027 }
 0x31b   :  { %v201_v27 = vmul.f32 %v3028_v26, %v3024_v9 }
 0x31d   :  { %2664 = vmatmul.msk.f32.vlgmr.msra.gmra.mxu2 %vm179_vm9, %v201_v27  ;;  %2673 = vmatmul.msk.f32.vlgmr.msra.gmra.mxu0 %vm147_vm8, %v334_v59 }
 0x31e   :  { %v270_v29 = vpop.f32.mrf.mxu3 }
 0x31f   :  { %v271_v30 = vadd.f32 %v270_v29, %v3343_v28 }
 0x321   :  { %v276_v31 = vsel %vm179_vm9, %v271_v30, -inf }
 0x322   :  { %277 = vmax.xlane.f32.xlu2 %v276_v31 }
 0x325   :  { %2674 = vmatmul.msk.f32.gmra.mxu0 %vm147_vm8, %v336_v32 }
 0x326   :  { %v273_v34 = vpop.f32.mrf.mxu3 }
 0x327   :  { %v274_v35 = vadd.f32 %v273_v34, %v3352_v33 }
 0x329   :  { %v279_v36 = vsel %vm179_vm9, %v274_v35, -inf }
 0x32a   :  { %280 = vmax.xlane.f32.xlu1 %v279_v36 }
 0x32e   :  { %v462_v38 = vpop.f32.mrf.mxu3 }
 0x32f   :  { %v463_v39 = vadd.f32 %v462_v38, %v3360_v37 }
 0x331   :  { %v468_v40 = vsel %vm179_vm9, %v463_v39, -inf }
 0x332   :  { %469 = vmax.xlane.f32.xlu1 %v468_v40 }
 0x337   :  { %v465_v42 = vpop.f32.mrf.mxu3 }
 0x338   :  { %v466_v43 = vadd.f32 %v465_v42, %v3367_v41 }
 0x33a   :  { %v471_v44 = vsel %vm179_vm9, %v466_v43, -inf }
 0x33b   :  { %472 = vmax.xlane.f32.xlu1 %v471_v44 }
 0x392   :  { %v3371_v45 = vpop.f32.mrf.mxu0 }
 0x395   :  { %v278_v47 = vpop.xlane.xlu2 %277 }
 0x396   :  { %v282_v48 = vsub.f32 %v271_v30, %v278_v47 }
 0x398   :  { %v284_v49 = vmul.f32 1.442695, %v282_v48 }
 0x39a   :  { %3029 = vpow2.f32 %v284_v49  ;;  %v366_v52 = vpop.f32.mrf.mxu0 }
 0x39b   :  { %v367_v53 = vadd.f32 %v366_v52, %v3376_v51 }
 0x39d   :  { %v281_v55 = vpop.xlane.xlu1 %280  ;;  %v372_v56 = vsel %vm179_vm9, %v367_v53, -inf }
 0x39e   :  { %v283_v57 = vsub.f32 %v274_v35, %v281_v55  ;;  %373 = vmax.xlane.f32.xlu1 %v372_v56 }
 0x3a0   :  { %v3030_v58 = vpop.eup %3029  ;;  %v286_v59 = vmul.f32 1.442695, %v283_v57 }
 0x3a1   :  { %v288_v61 = vsel %vm179_vm9, %v3030_v58, 0.0 }
 0x3a2   :  { %3031 = vpow2.f32 %v286_v59  ;;  %289 = vadd.xlane.f32.xlu2 %v288_v61  ;;  %v369_v62 = vpop.f32.mrf.mxu0 }
 0x3a3   :  { %v370_v63 = vadd.f32 %v369_v62, %v3383_v60 }
 0x3a5   :  { %v470_v2 = vpop.xlane.xlu1 %469  ;;  %v375_v3 = vsel %vm179_vm9, %v370_v63, -inf }
 0x3a6   :  { %v474_v4 = vsub.f32 %v463_v39, %v470_v2  ;;  %376 = vmax.xlane.f32.xlu1 %v375_v3 }
 0x3a8   :  { %v3032_v5 = vpop.eup %3031  ;;  %v476_v6 = vmul.f32 1.442695, %v474_v4  ;;  %v234_v4 = vpop.f32.mrf.mxu2 }
 0x3a9   :  { %v291_v7 = vsel %vm179_vm9, %v3032_v5, 0.0 }
 0x3aa   :  { %3033 = vpow2.f32 %v476_v6  ;;  %292 = vadd.xlane.f32.xlu0 %v291_v7 }
 0x3ae   :  { %v473_v8 = vpop.xlane.xlu1 %472 }
 0x3af   :  { %v475_v9 = vsub.f32 %v466_v43, %v473_v8 }
 0x3b0   :  { %v3034_v12 = vpop.eup %3033 }
 0x3b1   :  { %v478_v15 = vmul.f32 1.442695, %v475_v9  ;;  %v480_v17 = vsel %vm179_vm9, %v3034_v12, 0.0 }
 0x3b2   :  { %481 = vadd.xlane.f32.xlu2 %v480_v17  ;;  %v54_v17 = vld [vmem:[%s4140_s6 + $0x10] sm:$0xff] }
 0x3b3   :  { %3035 = vpow2.f32 %v478_v15  ;;  %v55_v15 = vld [vmem:[%s4140_s6 + $0x18] sm:$0xff] }
 0x3b4   :  { %574 = vmatpush.msrb.mxu0 %v55_v15 }
 0x3b6   :  { %575 = vmatpush.msrb.mxu0 %v54_v17 }
 0x3b9   :  { %v3036_v18 = vpop.eup %3035 }
 0x3ba   :  { %v483_v19 = vsel %vm179_vm9, %v3036_v18, 0.0 }
 0x3bb   :  { %484 = vadd.xlane.f32.xlu0 %v483_v19  ;;  %v52_v19 = vld [vmem:[%s4140_s6] sm:$0xff] }
 0x3bf   :  { %2849 = vrot.lane.b32.xlu1 %v3320_v54, %s3182_s2 }
 0x3c7   :  { %2859 = vrot.lane.b32.xlu1 %v3320_v54, %s3183_s10 }
 0x3ca   :  { %2854 = vrot.lane.b32.xlu2 %v3320_v54, %s3184_s11 }
 0x411   :  { %v374_v20 = vpop.xlane.xlu1 %373 }
 0x412   :  { %v378_v21 = vsub.f32 %v367_v53, %v374_v20 }
 0x414   :  { %v380_v22 = vmul.f32 1.442695, %v378_v21  ;;  %v51_v21 = vld [vmem:[%s4139_s5 + $0x38] sm:$0xff] }
 0x415   :  { %v290_v29 = vpop.xlane.xlu2 %289 }
 0x416   :  { %3037 = vpow2.f32 %v380_v22 }
 0x419   :  { %v377_v23 = vpop.xlane.xlu1 %376 }
 0x41a   :  { %v379_v24 = vsub.f32 %v370_v63, %v377_v23  ;;  %v2863_v23 = vpack.i.bf16 %v51_v21, %v3259_v10  ;;  %v58_v21 = vld [vmem:[%s4140_s6 + $0x30] sm:$0xff] }
 0x41c   :  { %v3038_v25 = vpop.eup %3037  ;;  %v382_v26 = vmul.f32 1.442695, %v379_v24 }
 0x41d   :  { %v384_v27 = vsel %vm179_vm9, %v3038_v25, 0.0  ;;  %v293_v54 = vpop.xlane.xlu0 %292 }
 0x41e   :  { %3039 = vpow2.f32 %v382_v26  ;;  %385 = vadd.xlane.f32.xlu0 %v384_v27 }
 0x41f   :  { %3041 = vrcp.f32 %v290_v29 }
 0x420   :  { %3043 = vrcp.f32 %v293_v54 }
 0x424   :  { %v3040_v30 = vpop.eup %3039 }
 0x425   :  { %v387_v31 = vsel %vm179_vm9, %v3040_v30, 0.0  ;;  %v482_v32 = vpop.xlane.xlu2 %481  ;;  %v3042_v35 = vpop.eup %3041 }
 0x426   :  { %388 = vadd.xlane.f32.xlu0 %v387_v31  ;;  %v296_v40 = vmul.f32 %v3042_v35, %v3030_v58  ;;  %v3044_v47 = vpop.eup %3043  ;;  %3045 = vrcp.f32 %v482_v32  ;;  %v47_v35 = vld [vmem:[%s4139_s5 + $0x18] sm:$0xff] }
 0x427   :  { %v297_v52 = vmul.f32 %v3044_v47, %v3032_v5 }
 0x42c   :  { %v3046_v55 = vpop.eup %3045 }
 0x42d   :  { %v2855_v38 = vpop.permute.xlu2 %2854  ;;  %v488_v56 = vmul.f32 %v3046_v55, %v3034_v12 }
 0x42e   :  { %v2856_v42 = vunpack.i.l.bf16 %v2855_v38  ;;  %v2857_v43 = vunpack.i.h.bf16 %v2855_v38  ;;  %v485_v53 = vpop.xlane.xlu0 %484 }
 0x42f   :  { %3047 = vrcp.f32 %v485_v53 }
 0x431   :  { %v2850_v34 = vpop.permute.xlu1 %2849 }
 0x432   :  { %v2851_v36 = vunpack.i.l.bf16 %v2850_v34  ;;  %v2852_v39 = vunpack.i.h.bf16 %v2850_v34 }
 0x434   :  { %324 = vmatpush.msrb.mxu2 %v2851_v36  ;;  %v2873_v36 = vpack.i.bf16 %v47_v35, %v3271_v13 }
 0x435   :  { %v3048_v57 = vpop.eup %3047 }
 0x436   :  { %325 = vmatpush.msrb.mxu2 %v2852_v39  ;;  %v489_v58 = vmul.f32 %v3048_v57, %v3036_v18  ;;  %v53_v18 = vld [vmem:[%s4140_s6 + $0x8] sm:$0xff] }
 0x437   :  { %2669 = vmatmul.msk.f32.vlgmr.msrb.gmra.mxu2 %vm179_vm9, %v296_v40  ;;  %576 = vmatpush.msrb.mxu0 %v53_v18  ;;  %v59_v18 = vld [vmem:[%s4140_s6 + $0x38] sm:$0xff] }
 0x438   :  { %516 = vmatpush.msra.mxu2 %v2856_v42 }
 0x439   :  { %v2860_v44 = vpop.permute.xlu1 %2859  ;;  %577 = vmatpush.msrb.mxu0 %v52_v19 }
 0x43a   :  { %517 = vmatpush.msra.mxu2 %v2857_v43  ;;  %v2861_v48 = vunpack.i.l.bf16 %v2860_v44  ;;  %v2862_v49 = vunpack.i.h.bf16 %v2860_v44 }
 0x43c   :  { %420 = vmatpush.msrb.mxu1 %v2861_v48 }
 0x43e   :  { %421 = vmatpush.msrb.mxu1 %v2862_v49 }
 0x43f   :  { %2670 = vmatmul.msk.f32.gmra.mxu2 %vm179_vm9, %v297_v52 }
 0x447   :  { %2681 = vmatmul.msk.f32.vlgmr.msra.gmra.mxu2 %vm179_vm9, %v488_v56 }
 0x44f   :  { %2682 = vmatmul.msk.f32.gmra.mxu2 %vm179_vm9, %v489_v58 }
 0x491   :  { %v386_v59 = vpop.xlane.xlu0 %385 }
 0x492   :  { %3049 = vrcp.f32 %v386_v59 }
 0x498   :  { %v3050_v61 = vpop.eup %3049 }
 0x499   :  { %v389_v62 = vpop.xlane.xlu0 %388  ;;  %v392_v63 = vmul.f32 %v3050_v61, %v3038_v25 }
 0x49a   :  { %3051 = vrcp.f32 %v389_v62 }
 0x49b   :  { %2675 = vmatmul.msk.f32.vlgmr.msrb.gmra.mxu1 %vm179_vm9, %v392_v63 }
 0x4a0   :  { %v3052_v2 = vpop.eup %3051 }
 0x4a1   :  { %v393_v3 = vmul.f32 %v3052_v2, %v3040_v30  ;;  %v49_v30 = vld [vmem:[%s4139_s5 + $0x28] sm:$0xff] }
 0x4a2   :  { %v2868_v31 = vpack.i.bf16 %v49_v30, %v3265_v11  ;;  %v45_v11 = vld [vmem:[%s4139_s5 + $0x8] sm:$0xff]  ;;  %v3004_v30 = vld [vmem:[%s4138_s4 + $0x1] ss:$0 sm:$0xff] }
 0x4a3   :  { %2676 = vmatmul.msk.f32.gmra.mxu1 %vm179_vm9, %v393_v3  ;;  %v2878_v38 = vpack.i.bf16 %v45_v11, %v3277_v14 }
 0x4ba   :  { %v327_v5 = vpop.f32.mrf.mxu2 }
 0x4bb   :  { %527 = vrot.lane.b32.xlu1 %v327_v5, %s3185_s0 }
 0x4c2   :  { %v330_v6 = vpop.f32.mrf.mxu2 }
 0x4c3   :  { %529 = vrot.lane.b32.xlu1 %v330_v6, %s3185_s0 }
 0x4ca   :  { %v519_v7 = vpop.f32.mrf.mxu2 }
 0x4cb   :  { %543 = vrot.lane.b32.xlu2 %v519_v7, %s3186_s13  ;;  %v63_v7 = vld [vmem:[%s4140_s6 + $0x58] sm:$0xff] }
 0x4cc   :  { %706 = vmatpush.msra.mxu3 %v63_v7 }
 0x4d2   :  { %v522_v8 = vpop.f32.mrf.mxu2 }
 0x4d3   :  { %545 = vrot.lane.b32.xlu1 %v522_v8, %s3186_s13  ;;  %v62_v8 = vld [vmem:[%s4140_s6 + $0x50] sm:$0xff] }
 0x4d4   :  { %707 = vmatpush.msra.mxu3 %v62_v8 }
 0x4db   :  { %2864 = vrot.lane.b32.xlu1 %v2863_v23, %s3188_s16 }
 0x4e3   :  { %2869 = vrot.lane.b32.xlu1 %v2868_v31, %s3188_s16 }
 0x4eb   :  { %2874 = vrot.lane.b32.xlu1 %v2873_v36, %s3188_s16 }
 0x4f3   :  { %2879 = vrot.lane.b32.xlu1 %v2878_v38, %s3188_s16 }
 0x518   :  { %v423_v9 = vpop.f32.mrf.mxu1 }
 0x519   :  { %535 = vrot.lane.b32.xlu0 %v423_v9, %s3187_s14  ;;  %v61_v9 = vld [vmem:[%s4140_s6 + $0x48] sm:$0xff] }
 0x51a   :  { %708 = vmatpush.msra.mxu3 %v61_v9 }
 0x520   :  { %v426_v12 = vpop.f32.mrf.mxu1 }
 0x521   :  { %537 = vrot.lane.b32.xlu2 %v426_v12, %s3187_s14  ;;  %v60_v12 = vld [vmem:[%s4140_s6 + $0x40] sm:$0xff] }
 0x522   :  { %709 = vmatpush.msra.mxu3 %v60_v12 }
 0x524   :  { %710 = vmatpush.msra.mxu3 %v59_v18 }
 0x525   :  { %v544_v22 = vpop.permute.xlu2 %543 }
 0x526   :  { %711 = vmatpush.msra.mxu3 %v58_v21 }
 0x52d   :  { %v528_v20 = vpop.permute.xlu1 %527 }
 0x52e   :  { %v549_v24 = vsel %vm147_vm8, %v3371_v45, %v528_v20 }
 0x535   :  { %v530_v26 = vpop.permute.xlu1 %529 }
 0x536   :  { %v550_v45 = vsel %vm147_vm8, %v234_v4, %v530_v26 }
 0x545   :  { %v546_v54 = vpop.permute.xlu1 %545 }
 0x54d   :  { %v2865_v48 = vpop.permute.xlu1 %2864 }
 0x54e   :  { %v2867_v49 = vunpack.i.h.bf16 %v2865_v48 }
 0x555   :  { %v2870_v53 = vpop.permute.xlu1 %2869 }
 0x556   :  { %v2872_v55 = vunpack.i.h.bf16 %v2870_v53  ;;  %v2871_v56 = vunpack.i.l.bf16 %v2870_v53 }
 0x558   :  { %v654_v57 = vsel %vm67_vm0, %v2871_v56, %v2872_v55 }
 0x57b   :  { %v538_v10 = vpop.permute.xlu2 %537 }
 0x57c   :  { %v552_v32 = vsel %vm179_vm9, %v550_v45, %v538_v10 }
 0x57d   :  { %v555_v34 = vsel %vm553_vm10, %v552_v32, %v546_v54 }
 0x58b   :  { %v536_v25 = vpop.permute.xlu0 %535 }
 0x58c   :  { %v551_v27 = vsel %vm179_vm9, %v549_v24, %v536_v25 }
 0x58d   :  { %v554_v29 = vsel %vm553_vm10, %v551_v27, %v544_v22 }
 0x58e   :  { %2683 = vmatmul.msk.f32.vlgmr.msrb.gmra.mxu0 %vm67_vm0, %v554_v29 }
 0x596   :  { %2684 = vmatmul.msk.f32.gmra.mxu0 %vm67_vm0, %v555_v34 }
 0x60b   :  { %v579_v39 = vpop.f32.mrf.mxu0 }
 0x60c   :  { %v3453_v40 = vadd.f32 %v579_v39, %v3243_v0  ;;  %v2866_v0 = vunpack.i.l.bf16 %v2865_v48  ;;  %v57_v39 = vld [vmem:[%s4140_s6 + $0x28] sm:$0xff] }
 0x60d   :  { %712 = vmatpush.msra.mxu3 %v57_v39 }
 0x60e   :  { %v589_v42 = vmul.f32 %v3453_v40, %v3453_v40  ;;  %v655_v52 = vsel %vm67_vm0, %v2866_v0, %v2867_v49 }
 0x60f   :  { %678 = vmatpush.msra.mxu1 %v655_v52 }
 0x610   :  { %v591_v43 = vsel %vm67_vm0, %v589_v42, 0.0  ;;  %v56_v42 = vld [vmem:[%s4140_s6 + $0x20] sm:$0xff] }
 0x611   :  { %592 = vadd.xlane.f32.xlu2 %v591_v43  ;;  %679 = vmatpush.msra.mxu1 %v654_v57 }
 0x612   :  { %713 = vmatpush.msra.mxu3 %v56_v42 }
 0x613   :  { %v582_v13 = vpop.f32.mrf.mxu0 }
 0x614   :  { %v3459_v44 = vadd.f32 %v582_v13, %v3248_v1  ;;  %v2875_v1 = vpop.permute.xlu1 %2874 }
 0x615   :  { %v2877_v58 = vunpack.i.h.bf16 %v2875_v1  ;;  %v2876_v59 = vunpack.i.l.bf16 %v2875_v1  ;;  %v3524_v1 = vld [vmem:[%s4139_s5 + $0x60] sm:$0xff] }
 0x616   :  { %v590_v47 = vmul.f32 %v3459_v44, %v3459_v44 }
 0x617   :  { %v653_v61 = vsel %vm67_vm0, %v2876_v59, %v2877_v58  ;;  %v3536_v58 = vld [vmem:[%s4139_s5 + $0x40] sm:$0xff] }
 0x618   :  { %v594_v14 = vsel %vm67_vm0, %v590_v47, 0.0  ;;  %680 = vmatpush.msra.mxu1 %v653_v61 }
 0x619   :  { %595 = vadd.xlane.f32.xlu0 %v594_v14 }
 0x61c   :  { %v2880_v62 = vpop.permute.xlu1 %2879 }
 0x61d   :  { %v2882_v63 = vunpack.i.h.bf16 %v2880_v62  ;;  %v2881_v2 = vunpack.i.l.bf16 %v2880_v62 }
 0x61f   :  { %v652_v3 = vsel %vm67_vm0, %v2881_v2, %v2882_v63 }
 0x620   :  { %681 = vmatpush.msra.mxu1 %v652_v3 }
 0x684   :  { %v593_v4 = vpop.xlane.xlu2 %592 }
 0x685   :  { %v597_v5 = vmul.f32 %v593_v4, %v3280_v16 }
 0x687   :  { %v599_v6 = vadd.f32 1e-06, %v597_v5 }
 0x689   :  { %3053 = vrsqrt.f32 %v599_v6  ;;  %vm607_vm12 = vweird.f32 %v599_v6 }
 0x68c   :  { %v596_v15 = vpop.xlane.xlu0 %595 }
 0x68d   :  { %v598_v17 = vmul.f32 %v596_v15, %v3280_v16 }
 0x68f   :  { %v3054_v19 = vpop.eup %3053  ;;  %v600_v20 = vadd.f32 1e-06, %v598_v17  ;;  %v3005_v17 = vld [vmem:[%s4138_s4 + $0x2] ss:$0 sm:$0xff] }
 0x690   :  { %v602_v22 = vmul.f32 %v3054_v19, %v599_v6  ;;  %vm608_vm11 = vweird.f32 %v3054_v19 }
 0x691   :  { %3055 = vrsqrt.f32 %v600_v20  ;;  %vm609_vm13 = vmor %vm607_vm12, %vm608_vm11  ;;  %vm617_vm15 = vweird.f32 %v600_v20  ;;  %vm1462_vm12 = vcmask 254976  }
 0x692   :  { %v603_v23 = vmul.f32 %v3054_v19, %v602_v22 }
 0x694   :  { %v604_v24 = vmul.f32 0.5, %v603_v23 }
 0x696   :  { %v605_v25 = vsub.f32 1.5, %v604_v24 }
 0x697   :  { %v3056_v26 = vpop.eup %3055 }
 0x698   :  { %v606_v27 = vmul.f32 %v3054_v19, %v605_v25  ;;  %v612_v29 = vmul.f32 %v3056_v26, %v600_v20  ;;  %vm618_vm14 = vweird.f32 %v3056_v26 }
 0x699   :  { %vm619_vm1 = vmor %vm617_vm15, %vm618_vm14 }
 0x69a   :  { %v610_v10 = vsel %vm609_vm13, %v3054_v19, %v606_v27  ;;  %v613_v31 = vmul.f32 %v3056_v26, %v612_v29 }
 0x69b   :  { %v621_v45 = vmul.f32 %v610_v10, %v3453_v40 }
 0x69c   :  { %v614_v32 = vmul.f32 0.5, %v613_v31 }
 0x69d   :  { %v626_v54 = vmul.f32 %v3004_v30, %v621_v45 }
 0x69e   :  { %v615_v34 = vsub.f32 1.5, %v614_v32 }
 0x69f   :  { %2686 = vmatmul.msk.f32.vlgmr.msra.gmra.mxu1 %vm67_vm0, %v626_v54 }
 0x6a0   :  { %v616_v35 = vmul.f32 %v3056_v26, %v615_v34 }
 0x6a2   :  { %v620_v36 = vsel %vm619_vm1, %v3056_v26, %v616_v35 }
 0x6a3   :  { %v622_v11 = vmul.f32 %v620_v36, %v3459_v44 }
 0x6a5   :  { %v627_v38 = vmul.f32 %v3004_v30, %v622_v11 }
 0x6a7   :  { %2687 = vmatmul.msk.f32.gmra.mxu1 %vm67_vm0, %v627_v38 }
 0x71c   :  { %v683_v43 = vpop.f32.mrf.mxu1 }
 0x71d   :  { %v689_v13 = vmax.f32 %v683_v43, 0.0 }
 0x71f   :  { %2688 = vmatmul.msk.f32.vlgmr.msra.gmra.mxu3 %vm691_vm2, %v689_v13 }
 0x724   :  { %v686_v47 = vpop.f32.mrf.mxu1 }
 0x725   :  { %v690_v14 = vmax.f32 %v686_v47, 0.0 }
 0x727   :  { %2689 = vmatmul.msk.f32.gmra.mxu3 %vm691_vm2, %v690_v14 }
 0x7a2   :  { %v715_v48 = vpop.f32.mrf.mxu3 }
 0x7a3   :  { %v3504_v49 = vadd.f32 %v715_v48, %v3453_v40  ;;  %v3518_v40 = vld [vmem:[%s4139_s5 + $0x70] sm:$0xff] }
 0x7a4   :  { %804 = vmatpush.msrb.mxu2 %v3518_v40 }
 0x7a5   :  { %v747_v0 = vmul.f32 %v3504_v49, %v3504_v49 }
 0x7a6   :  { %805 = vmatpush.msrb.mxu2 %v3524_v1 }
 0x7a7   :  { %v749_v52 = vsel %vm67_vm0, %v747_v0, 0.0 }
 0x7a8   :  { %750 = vadd.xlane.f32.xlu1 %v749_v52 }
 0x7aa   :  { %v718_v53 = vpop.f32.mrf.mxu3 }
 0x7ab   :  { %v3510_v55 = vadd.f32 %v718_v53, %v3459_v44  ;;  %v3530_v44 = vld [vmem:[%s4139_s5 + $0x50] sm:$0xff] }
 0x7ac   :  { %806 = vmatpush.msrb.mxu2 %v3530_v44 }
 0x7ad   :  { %v748_v56 = vmul.f32 %v3510_v55, %v3510_v55 }
 0x7ae   :  { %807 = vmatpush.msrb.mxu2 %v3536_v58 }
 0x7af   :  { %v752_v57 = vsel %vm67_vm0, %v748_v56, 0.0 }
 0x7b0   :  { %753 = vadd.xlane.f32.xlu2 %v752_v57 }
 0x81b   :  { %v751_v59 = vpop.xlane.xlu1 %750 }
 0x81c   :  { %v755_v61 = vmul.f32 %v751_v59, %v3280_v16 }
 0x81e   :  { %v757_v62 = vadd.f32 1e-06, %v755_v61 }
 0x820   :  { %3057 = vrsqrt.f32 %v757_v62  ;;  %vm765_vm4 = vweird.f32 %v757_v62 }
 0x823   :  { %v754_v63 = vpop.xlane.xlu2 %753 }
 0x824   :  { %v756_v2 = vmul.f32 %v754_v63, %v3280_v16 }
 0x826   :  { %v3058_v3 = vpop.eup %3057  ;;  %v758_v4 = vadd.f32 1e-06, %v756_v2 }
 0x827   :  { %v760_v5 = vmul.f32 %v3058_v3, %v757_v62  ;;  %vm766_vm3 = vweird.f32 %v3058_v3 }
 0x828   :  { %3059 = vrsqrt.f32 %v758_v4  ;;  %vm767_vm5 = vmor %vm765_vm4, %vm766_vm3  ;;  %vm775_vm7 = vweird.f32 %v758_v4 }
 0x829   :  { %v761_v6 = vmul.f32 %v3058_v3, %v760_v5 }
 0x82b   :  { %v762_v7 = vmul.f32 0.5, %v761_v6 }
 0x82d   :  { %v763_v8 = vsub.f32 1.5, %v762_v7 }
 0x82e   :  { %v3060_v9 = vpop.eup %3059 }
 0x82f   :  { %v764_v12 = vmul.f32 %v3058_v3, %v763_v8  ;;  %v770_v15 = vmul.f32 %v3060_v9, %v758_v4  ;;  %vm776_vm6 = vweird.f32 %v3060_v9 }
 0x830   :  { %vm777_vm11 = vmor %vm775_vm7, %vm776_vm6 }
 0x831   :  { %v768_v18 = vsel %vm767_vm5, %v3058_v3, %v764_v12  ;;  %v771_v19 = vmul.f32 %v3060_v9, %v770_v15 }
 0x832   :  { %v779_v20 = vmul.f32 %v768_v18, %v3504_v49 }
 0x833   :  { %v772_v21 = vmul.f32 0.5, %v771_v19 }
 0x834   :  { %v784_v22 = vmul.f32 %v3005_v17, %v779_v20 }
 0x835   :  { %v773_v23 = vsub.f32 1.5, %v772_v21 }
 0x836   :  { %2711 = vmatmul.msk.f32.vlgmr.msrb.gmra.mxu2 %vm67_vm0, %v784_v22 }
 0x837   :  { %v774_v24 = vmul.f32 %v3060_v9, %v773_v23 }
 0x839   :  { %v778_v25 = vsel %vm777_vm11, %v3060_v9, %v774_v24 }
 0x83a   :  { %v780_v26 = vmul.f32 %v778_v25, %v3510_v55 }
 0x83c   :  { %v785_v27 = vmul.f32 %v3005_v17, %v780_v26 }
 0x83e   :  { %2712 = vmatmul.msk.f32.gmra.mxu2 %vm67_vm0, %v785_v27 }
 0x8b9   :  { %v3548_v29 = vpop.f32.mrf.mxu2 }
 0x8ba   :  { %909 = vrot.lane.b32.xlu0 %v3548_v29, %s3179_s27  ;;  %913 = vrot.lane.b32.xlu2 %v3548_v29, %s3174_s22 }
 0x8c1   :  { %v3554_v30 = vpop.f32.mrf.mxu2 }
 0x8c2   :  { %817 = vrot.lane.b32.xlu2 %v3548_v29, %s3176_s24  ;;  %911 = vrot.lane.b32.xlu1 %v3554_v30, %s3179_s27 }
 0x8c3   :  { %915 = vrot.lane.b32.xlu0 %v3554_v30, %s3174_s22 }
 0x8ca   :  { %1105 = vrot.lane.b32.xlu2 %v3548_v29, %s3175_s23  ;;  %1005 = vrot.lane.b32.xlu1 %v3548_v29, %s3180_s28 }
 0x8cb   :  { %819 = vrot.lane.b32.xlu0 %v3554_v30, %s3176_s24 }
 0x8d2   :  { %1011 = vrot.lane.b32.xlu2 %v3554_v30, %s3178_s26 }
 0x8d3   :  { %1107 = vrot.lane.b32.xlu0 %v3554_v30, %s3175_s23 }
 0x8da   :  { %1103 = vrot.lane.b32.xlu2 %v3554_v30, %s3177_s25 }
 0x8db   :  { %1101 = vrot.lane.b32.xlu0 %v3548_v29, %s3177_s25 }
 0x8e3   :  { %1009 = vrot.lane.b32.xlu0 %v3548_v29, %s3178_s26 }
 0x8eb   :  { %1007 = vrot.lane.b32.xlu0 %v3554_v30, %s3180_s28 }
 0x914   :  { %v914_v10 = vpop.permute.xlu2 %913 }
 0x91c   :  { %v818_v45 = vpop.permute.xlu2 %817 }
 0x924   :  { %v1106_v54 = vpop.permute.xlu2 %1105 }
 0x92c   :  { %v910_v31 = vpop.permute.xlu0 %909  ;;  %v1012_v35 = vpop.permute.xlu2 %1011 }
 0x934   :  { %v912_v36 = vpop.permute.xlu1 %911  ;;  %v1104_v39 = vpop.permute.xlu2 %1103 }
 0x935   :  { %v916_v32 = vpop.permute.xlu0 %915 }
 0x936   :  { %2719 = vmatpush.xpose.msk.msrb.mxu3 %vm147_vm8, %v916_v32 }
 0x93a   :  { %2720 = vmatpush.xpose.msk.msrb.mxu3 %vm147_vm8, %v914_v10 }
 0x93c   :  { %v1006_v43 = vpop.permute.xlu1 %1005 }
 0x93d   :  { %v820_v34 = vpop.permute.xlu0 %819  ;;  %2721 = vmatmul.msk.f32.vlgmr.msrb.gmra.mxu3 %vm147_vm8, %v910_v31 }
 0x93e   :  { %2713 = vmatpush.xpose.msk.msra.mxu0 %vm147_vm8, %v820_v34 }
 0x942   :  { %2714 = vmatpush.xpose.msk.msra.mxu0 %vm147_vm8, %v818_v45 }
 0x945   :  { %v1108_v11 = vpop.permute.xlu0 %1107  ;;  %2715 = vmatmul.msk.f32.vlgmr.msra.gmra.mxu0 %vm147_vm8, %v3548_v29  ;;  %2722 = vmatmul.msk.f32.gmra.mxu3 %vm147_vm8, %v912_v36 }
 0x946   :  { %2725 = vmatpush.xpose.msk.msrb.mxu0 %vm147_vm8, %v1012_v35  ;;  %2731 = vmatpush.xpose.msk.msra.mxu3 %vm147_vm8, %v1108_v11 }
 0x94a   :  { %2732 = vmatpush.xpose.msk.msra.mxu3 %vm147_vm8, %v1106_v54 }
 0x94d   :  { %v1102_v38 = vpop.permute.xlu0 %1101  ;;  %2716 = vmatmul.msk.f32.gmra.mxu0 %vm147_vm8, %v3554_v30 }
 0x94e   :  { %2733 = vmatmul.msk.f32.vlgmr.msra.gmra.mxu3 %vm147_vm8, %v1102_v38 }
 0x955   :  { %v1010_v42 = vpop.permute.xlu0 %1009 }
 0x956   :  { %2726 = vmatpush.xpose.msk.msrb.mxu0 %vm147_vm8, %v1010_v42  ;;  %2734 = vmatmul.msk.f32.gmra.mxu3 %vm147_vm8, %v1104_v39 }
 0x959   :  { %2727 = vmatmul.msk.f32.vlgmr.msrb.gmra.mxu0 %vm147_vm8, %v1006_v43 }
 0x95d   :  { %v1008_v13 = vpop.permute.xlu0 %1007 }
 0x961   :  { %2728 = vmatmul.msk.f32.gmra.mxu0 %vm147_vm8, %v1008_v13 }
 0x9c0   :  { %v942_v47 = vpop.f32.mrf.mxu3 }
 0x9c1   :  { %v943_v14 = vadd.f32 %v942_v47, %v3343_v28 }
 0x9c2   :  { %v846_v48 = vpop.f32.mrf.mxu0 }
 0x9c3   :  { %v847_v0 = vadd.f32 %v846_v48, %v3307_v46  ;;  %v948_v52 = vsel %vm179_vm9, %v943_v14, -inf }
 0x9c4   :  { %949 = vmax.xlane.f32.xlu2 %v948_v52 }
 0x9c5   :  { %v852_v53 = vsel %vm179_vm9, %v847_v0, -inf }
 0x9c6   :  { %853 = vmax.xlane.f32.xlu1 %v852_v53 }
 0x9c8   :  { %v945_v56 = vpop.f32.mrf.mxu3 }
 0x9c9   :  { %v946_v57 = vadd.f32 %v945_v56, %v3352_v33 }
 0x9ca   :  { %v849_v59 = vpop.f32.mrf.mxu0 }
 0x9cb   :  { %v850_v61 = vadd.f32 %v849_v59, %v3314_v50  ;;  %v951_v62 = vsel %vm179_vm9, %v946_v57, -inf }
 0x9cc   :  { %952 = vmax.xlane.f32.xlu0 %v951_v62 }
 0x9cd   :  { %v855_v28 = vsel %vm179_vm9, %v850_v61, -inf }
 0x9ce   :  { %856 = vmax.xlane.f32.xlu2 %v855_v28 }
 0x9d1   :  { %v1134_v63 = vpop.f32.mrf.mxu3 }
 0x9d2   :  { %v3607_v46 = vadd.f32 %v1134_v63, %v3360_v37 }
 0x9d4   :  { %v1140_v2 = vsel %vm179_vm9, %v3607_v46, -inf }
 0x9d5   :  { %1141 = vmax.xlane.f32.xlu1 %v1140_v2 }
 0x9d6   :  { %v1038_v3 = vpop.f32.mrf.mxu0 }
 0x9d7   :  { %v1039_v33 = vadd.f32 %v1038_v3, %v3376_v51  ;;  %v2883_v51 = vpack.i.bf16 %v3548_v29, %v3554_v30 }
 0x9d9   :  { %v1137_v4 = vpop.f32.mrf.mxu3  ;;  %v1044_v50 = vsel %vm179_vm9, %v1039_v33, -inf }
 0x9da   :  { %v1138_v5 = vadd.f32 %v1137_v4, %v3367_v41  ;;  %1045 = vmax.xlane.f32.xlu0 %v1044_v50 }
 0x9dc   :  { %v1143_v6 = vsel %vm179_vm9, %v1138_v5, -inf }
 0x9dd   :  { %1144 = vmax.xlane.f32.xlu2 %v1143_v6 }
 0x9de   :  { %v1041_v7 = vpop.f32.mrf.mxu0 }
 0x9df   :  { %v3616_v37 = vadd.f32 %v1041_v7, %v3383_v60 }
 0x9e1   :  { %v1047_v8 = vsel %vm179_vm9, %v3616_v37, -inf }
 0x9e2   :  { %1048 = vmax.xlane.f32.xlu1 %v1047_v8 }
 0x9fb   :  { %2884 = vrot.lane.b32.xlu1 %v2883_v51, %s3182_s2 }
 0xa37   :  { %v950_v9 = vpop.xlane.xlu2 %949 }
 0xa38   :  { %v954_v12 = vsub.f32 %v943_v14, %v950_v9 }
 0xa39   :  { %v854_v41 = vpop.xlane.xlu1 %853 }
 0xa3a   :  { %v956_v15 = vmul.f32 1.442695, %v954_v12  ;;  %v858_v17 = vsub.f32 %v847_v0, %v854_v41 }
 0xa3c   :  { %3061 = vpow2.f32 %v956_v15  ;;  %v860_v18 = vmul.f32 1.442695, %v858_v17 }
 0xa3e   :  { %3063 = vpow2.f32 %v860_v18 }
 0xa3f   :  { %v953_v19 = vpop.xlane.xlu0 %952 }
 0xa40   :  { %v955_v24 = vsub.f32 %v946_v57, %v953_v19 }
 0xa41   :  { %v857_v60 = vpop.xlane.xlu2 %856 }
 0xa42   :  { %v3062_v20 = vpop.eup %3061  ;;  %v859_v21 = vsub.f32 %v850_v61, %v857_v60  ;;  %v958_v27 = vmul.f32 1.442695, %v955_v24 }
 0xa43   :  { %v960_v22 = vsel %vm179_vm9, %v3062_v20, 0.0 }
 0xa44   :  { %v3064_v23 = vpop.eup %3063  ;;  %v862_v25 = vmul.f32 1.442695, %v859_v21  ;;  %961 = vadd.xlane.f32.xlu0 %v960_v22 }
 0xa45   :  { %v864_v26 = vsel %vm179_vm9, %v3064_v23, 0.0 }
 0xa46   :  { %3065 = vpow2.f32 %v862_v25  ;;  %865 = vadd.xlane.f32.xlu2 %v864_v26 }
 0xa47   :  { %3067 = vpow2.f32 %v958_v27 }
 0xa48   :  { %v1142_v36 = vpop.xlane.xlu1 %1141 }
 0xa49   :  { %v1146_v14 = vsub.f32 %v3607_v46, %v1142_v36 }
 0xa4b   :  { %v1148_v0 = vmul.f32 1.442695, %v1146_v14  ;;  %v2700_v14 = vld [vmem:[%s4140_s6 + $0x70] sm:$0xff] }
 0xa4c   :  { %v3066_v29 = vpop.eup %3065 }
 0xa4d   :  { %v1046_v30 = vpop.xlane.xlu0 %1045  ;;  %v867_v10 = vsel %vm179_vm9, %v3066_v29, 0.0  ;;  %v3068_v32 = vpop.eup %3067 }
 0xa4e   :  { %v1050_v31 = vsub.f32 %v1039_v33, %v1046_v30  ;;  %868 = vadd.xlane.f32.xlu0 %v867_v10  ;;  %v963_v54 = vsel %vm179_vm9, %v3068_v32, 0.0 }
 0xa50   :  { %v1052_v45 = vmul.f32 1.442695, %v1050_v31  ;;  %v1145_v43 = vpop.xlane.xlu2 %1144 }
 0xa51   :  { %v1147_v13 = vsub.f32 %v1138_v5, %v1145_v43 }
 0xa52   :  { %3069 = vpow2.f32 %v1052_v45 }
 0xa53   :  { %v1150_v47 = vmul.f32 1.442695, %v1147_v13  ;;  %v2693_v13 = vld [vmem:[%s4139_s5 + $0x58] sm:$0xff] }
 0xa55   :  { %v1049_v11 = vpop.xlane.xlu1 %1048  ;;  %3071 = vpow2.f32 %v1150_v47  ;;  %v2913_v47 = vpack.i.bf16 %v2693_v13, %v3530_v44  ;;  %v2698_v44 = vld [vmem:[%s4140_s6 + $0x60] sm:$0xff] }
 0xa56   :  { %964 = vadd.xlane.f32.xlu0 %v963_v54  ;;  %3073 = vpow2.f32 %v1148_v0  ;;  %v1051_v28 = vsub.f32 %v3616_v37, %v1049_v11 }
 0xa58   :  { %v3627_v34 = vpop.eup %3069  ;;  %v1054_v33 = vmul.f32 1.442695, %v1051_v28 }
 0xa59   :  { %v1056_v35 = vsel %vm179_vm9, %v3627_v34, 0.0 }
 0xa5a   :  { %1057 = vadd.xlane.f32.xlu1 %v1056_v35 }
 0xa5b   :  { %v3072_v48 = vpop.eup %3071 }
 0xa5c   :  { %v1155_v52 = vsel %vm179_vm9, %v3072_v48, 0.0  ;;  %v3074_v53 = vpop.eup %3073 }
 0xa5d   :  { %v1152_v56 = vsel %vm179_vm9, %v3074_v53, 0.0 }
 0xa5e   :  { %2889 = vrot.lane.b32.xlu2 %v2883_v51, %s3181_s12 }
 0xa6a   :  { %2894 = vrot.lane.b32.xlu0 %v2883_v51, %s3184_s11 }
 0xa6d   :  { %v2885_v38 = vpop.permute.xlu1 %2884 }
 0xa6e   :  { %v2886_v39 = vunpack.i.l.bf16 %v2885_v38  ;;  %v2887_v42 = vunpack.i.h.bf16 %v2885_v38  ;;  %v2697_v38 = vld [vmem:[%s4139_s5 + $0x78] sm:$0xff] }
 0xa70   :  { %996 = vmatpush.msra.mxu2 %v2886_v39  ;;  %v2903_v39 = vpack.i.bf16 %v2697_v38, %v3518_v40  ;;  %v2701_v40 = vld [vmem:[%s4140_s6 + $0x78] sm:$0xff] }
 0xa71   :  { %1245 = vmatpush.msra.mxu0 %v2701_v40  ;;  %v1443_v40 = vld [vmem:[%s4142_s8] sm:$0xff] }
 0xa72   :  { %997 = vmatpush.msra.mxu2 %v2887_v42  ;;  %v2695_v42 = vld [vmem:[%s4139_s5 + $0x68] sm:$0xff] }
 0xa73   :  { %v2908_v43 = vpack.i.bf16 %v2695_v42, %v3524_v1  ;;  %v2699_v1 = vld [vmem:[%s4140_s6 + $0x68] sm:$0xff]  ;;  %1246 = vmatpush.msra.mxu0 %v2700_v14  ;;  %v1446_v42 = vld [vmem:[%s4142_s8 + $0x18] sm:$0xff] }
 0xa75   :  { %1247 = vmatpush.msra.mxu0 %v2699_v1 }
 0xa77   :  { %1248 = vmatpush.msra.mxu0 %v2698_v44 }
 0xa79   :  { %1521 = vmatpush.msrb.mxu0 %v1446_v42 }
 0xa87   :  { %1156 = vadd.xlane.f32.xlu2 %v1155_v52  ;;  %v3684_v52 = vld [vmem:[%s4135_s1] sm:$0x3] }
 0xa94   :  { %1153 = vadd.xlane.f32.xlu0 %v1152_v56 }
 0xaa8   :  { %2899 = vrot.lane.b32.xlu0 %v2883_v51, %s3183_s10 }
 0xab7   :  { %v962_v57 = vpop.xlane.xlu0 %961 }
 0xab8   :  { %3075 = vrcp.f32 %v962_v57 }
 0xab9   :  { %v866_v59 = vpop.xlane.xlu2 %865 }
 0xaba   :  { %3077 = vrcp.f32 %v866_v59 }
 0xabe   :  { %v3076_v61 = vpop.eup %3075 }
 0xabf   :  { %v968_v62 = vmul.f32 %v3076_v61, %v3062_v20  ;;  %v1461_v61 = vmul.f32 %v3684_v52, %v3684_v52 }
 0xac0   :  { %v3078_v2 = vpop.eup %3077 }
 0xac1   :  { %2723 = vmatmul.msk.f32.vlgmr.msra.gmra.mxu2 %vm179_vm9, %v968_v62  ;;  %v869_v63 = vpop.xlane.xlu0 %868  ;;  %v2890_v46 = vpop.permute.xlu2 %2889  ;;  %v872_v50 = vmul.f32 %v3078_v2, %v3064_v23  ;;  %v1463_v62 = vsel %vm1462_vm12, %v1461_v61, 0.0 }
 0xac2   :  { %v2891_v3 = vunpack.i.l.bf16 %v2890_v46  ;;  %3079 = vrcp.f32 %v869_v63  ;;  %v2892_v4 = vunpack.i.h.bf16 %v2890_v46 }
 0xac3   :  { %3081 = vpow2.f32 %v1054_v33 }
 0xac4   :  { %900 = vmatpush.msrb.mxu1 %v2891_v3 }
 0xac6   :  { %901 = vmatpush.msrb.mxu1 %v2892_v4 }
 0xac7   :  { %2717 = vmatmul.msk.f32.vlgmr.msrb.gmra.mxu1 %vm179_vm9, %v872_v50 }
 0xac8   :  { %v3080_v6 = vpop.eup %3079 }
 0xac9   :  { %v965_v5 = vpop.xlane.xlu0 %964  ;;  %v873_v7 = vmul.f32 %v3080_v6, %v3066_v29  ;;  %v3082_v37 = vpop.eup %3081  ;;  %v3700_v6 = vld [vmem:[%s4141_s7 + $0x30] sm:$0xff] }
 0xaca   :  { %3083 = vrcp.f32 %v965_v5  ;;  %v1059_v51 = vsel %vm179_vm9, %v3082_v37, 0.0 }
 0xacd   :  { %v1058_v20 = vpop.xlane.xlu1 %1057 }
 0xacf   :  { %2718 = vmatmul.msk.f32.gmra.mxu1 %vm179_vm9, %v873_v7  ;;  %v3705_v7 = vld [vmem:[%s4141_s7 + $0x20] sm:$0xff] }
 0xad0   :  { %v3084_v8 = vpop.eup %3083 }
 0xad1   :  { %v969_v9 = vmul.f32 %v3084_v8, %v3068_v32  ;;  %v3717_v8 = vld [vmem:[%s4141_s7] sm:$0xff] }
 0xad2   :  { %1060 = vadd.xlane.f32.xlu0 %v1059_v51 }
 0xad3   :  { %2724 = vmatmul.msk.f32.gmra.mxu2 %vm179_vm9, %v969_v9 }
 0xadc   :  { %v2895_v12 = vpop.permute.xlu0 %2894 }
 0xadd   :  { %v2896_v41 = vunpack.i.l.bf16 %v2895_v12  ;;  %v2897_v15 = vunpack.i.h.bf16 %v2895_v12 }
 0xadf   :  { %1188 = vmatpush.msrb.mxu2 %v2896_v41 }
 0xae1   :  { %1189 = vmatpush.msrb.mxu2 %v2897_v15 }
 0xae3   :  { %1498 = vmatpush.msra.mxu2 %v3700_v6 }
 0xae5   :  { %1499 = vmatpush.msra.mxu2 %v3705_v7 }
 0xafa   :  { %v1157_v18 = vpop.xlane.xlu2 %1156 }
 0xb07   :  { %v1154_v17 = vpop.xlane.xlu0 %1153 }
 0xb08   :  { %3085 = vrcp.f32 %v1154_v17 }
 0xb09   :  { %3087 = vrcp.f32 %v1157_v18 }
 0xb0a   :  { %3089 = vrcp.f32 %v1058_v20 }
 0xb0e   :  { %v3086_v19 = vpop.eup %3085 }
 0xb0f   :  { %v1160_v60 = vmul.f32 %v3086_v19, %v3074_v53  ;;  %v3088_v21 = vpop.eup %3087 }
 0xb10   :  { %v1161_v22 = vmul.f32 %v3088_v21, %v3072_v48  ;;  %v3090_v24 = vpop.eup %3089 }
 0xb11   :  { %2735 = vmatmul.msk.f32.vlgmr.msrb.gmra.mxu2 %vm179_vm9, %v1160_v60  ;;  %v1064_v27 = vmul.f32 %v3090_v24, %v3627_v34 }
 0xb19   :  { %2736 = vmatmul.msk.f32.gmra.mxu2 %vm179_vm9, %v1161_v22 }
 0xb1a   :  { %v2900_v23 = vpop.permute.xlu0 %2899 }
 0xb1b   :  { %v2901_v25 = vunpack.i.l.bf16 %v2900_v23  ;;  %v2902_v26 = vunpack.i.h.bf16 %v2900_v23 }
 0xb1d   :  { %1092 = vmatpush.msra.mxu1 %v2901_v25 }
 0xb1f   :  { %1093 = vmatpush.msra.mxu1 %v2902_v26 }
 0xb20   :  { %2729 = vmatmul.msk.f32.vlgmr.msra.gmra.mxu1 %vm179_vm9, %v1064_v27  ;;  %v2691_v27 = vld [vmem:[%s4139_s5 + $0x48] sm:$0xff] }
 0xb44   :  { %v999_v29 = vpop.f32.mrf.mxu2  ;;  %v903_v45 = vpop.f32.mrf.mxu1 }
 0xb45   :  { %1199 = vrot.lane.b32.xlu1 %v999_v29, %s3185_s0  ;;  %v1061_v30 = vpop.xlane.xlu0 %1060  ;;  %v2918_v29 = vpack.i.bf16 %v2691_v27, %v3536_v58 }
 0xb46   :  { %3091 = vrcp.f32 %v1061_v30 }
 0xb4c   :  { %v3092_v10 = vpop.eup %3091  ;;  %v906_v35 = vpop.f32.mrf.mxu1 }
 0xb4d   :  { %v1065_v31 = vmul.f32 %v3092_v10, %v3082_v37  ;;  %v3711_v37 = vld [vmem:[%s4141_s7 + $0x10] sm:$0xff] }
 0xb4e   :  { %1500 = vmatpush.msra.mxu2 %v3711_v37 }
 0xb4f   :  { %2730 = vmatmul.msk.f32.gmra.mxu1 %vm179_vm9, %v1065_v31 }
 0xb50   :  { %1501 = vmatpush.msra.mxu2 %v3717_v8 }
 0xb56   :  { %v1002_v32 = vpop.f32.mrf.mxu2 }
 0xb94   :  { %v1191_v54 = vpop.f32.mrf.mxu2 }
 0xb95   :  { %1215 = vrot.lane.b32.xlu1 %v1191_v54, %s3186_s13 }
 0xb9c   :  { %v1194_v36 = vpop.f32.mrf.mxu2 }
 0xb9d   :  { %1217 = vrot.lane.b32.xlu1 %v1194_v36, %s3186_s13  ;;  %v1095_v34 = vpop.f32.mrf.mxu1 }
 0xb9e   :  { %1207 = vrot.lane.b32.xlu2 %v1095_v34, %s3187_s14 }
 0xba6   :  { %1201 = vrot.lane.b32.xlu2 %v1002_v32, %s3185_s0 }
 0xbb7   :  { %v1200_v48 = vpop.permute.xlu1 %1199 }
 0xbb8   :  { %v1221_v53 = vsel %vm147_vm8, %v903_v45, %v1200_v48 }
 0xbcc   :  { %v1098_v11 = vpop.f32.mrf.mxu1 }
 0xbcd   :  { %1209 = vrot.lane.b32.xlu0 %v1098_v11, %s3187_s14 }
 0xbd5   :  { %2904 = vrot.lane.b32.xlu0 %v2903_v39, %s3188_s16 }
 0xbdd   :  { %2909 = vrot.lane.b32.xlu0 %v2908_v43, %s3188_s16  ;;  %v1444_v43 = vld [vmem:[%s4142_s8 + $0x8] sm:$0xff] }
 0xbe5   :  { %2914 = vrot.lane.b32.xlu0 %v2913_v47, %s3188_s16 }
 0xbf8   :  { %v1208_v0 = vpop.permute.xlu2 %1207 }
 0xbf9   :  { %v1223_v56 = vsel %vm179_vm9, %v1221_v53, %v1208_v0 }
 0xc00   :  { %v1202_v28 = vpop.permute.xlu2 %1201 }
 0xc01   :  { %v1222_v63 = vsel %vm147_vm8, %v906_v35, %v1202_v28  ;;  %v3007_v28 = vld [vmem:[%s4138_s4 + $0x3] ss:$0 sm:$0xff] }
 0xc07   :  { %v1216_v57 = vpop.permute.xlu1 %1215 }
 0xc08   :  { %v1225_v59 = vsel %vm553_vm10, %v1223_v56, %v1216_v57 }
 0xc09   :  { %2737 = vmatmul.msk.f32.vlgmr.msra.gmra.mxu0 %vm67_vm0, %v1225_v59 }
 0xc0f   :  { %1464 = vadd.xlane.f32.xlu0 %v1463_v62  ;;  %v1218_v2 = vpop.permute.xlu1 %1217 }
 0xc3f   :  { %v1210_v46 = vpop.permute.xlu0 %1209 }
 0xc40   :  { %v1224_v3 = vsel %vm179_vm9, %v1222_v63, %v1210_v46 }
 0xc41   :  { %v1226_v33 = vsel %vm553_vm10, %v1224_v3, %v1218_v2 }
 0xc42   :  { %2738 = vmatmul.msk.f32.gmra.mxu0 %vm67_vm0, %v1226_v33  ;;  %v2709_v33 = vld [vmem:[%s4140_s6 + $0xb8] sm:$0xff] }
 0xc43   :  { %1376 = vmatpush.msrb.mxu3 %v2709_v33 }
 0xc47   :  { %v2905_v4 = vpop.permute.xlu0 %2904 }
 0xc48   :  { %v2907_v30 = vunpack.i.h.bf16 %v2905_v4  ;;  %v2906_v10 = vunpack.i.l.bf16 %v2905_v4  ;;  %v2708_v4 = vld [vmem:[%s4140_s6 + $0xb0] sm:$0xff] }
 0xc49   :  { %1377 = vmatpush.msrb.mxu3 %v2708_v4 }
 0xc4a   :  { %v1326_v32 = vsel %vm67_vm0, %v2906_v10, %v2907_v30 }
 0xc4b   :  { %1349 = vmatpush.msrb.mxu1 %v1326_v32 }
 0xc4f   :  { %v2910_v50 = vpop.permute.xlu0 %2909 }
 0xc50   :  { %v2912_v31 = vunpack.i.h.bf16 %v2910_v50  ;;  %v2911_v45 = vunpack.i.l.bf16 %v2910_v50  ;;  %v2707_v50 = vld [vmem:[%s4140_s6 + $0xa8] sm:$0xff] }
 0xc51   :  { %1378 = vmatpush.msrb.mxu3 %v2707_v50 }
 0xc52   :  { %v1325_v54 = vsel %vm67_vm0, %v2911_v45, %v2912_v31 }
 0xc53   :  { %1350 = vmatpush.msrb.mxu1 %v1325_v54 }
 0xc57   :  { %v2915_v5 = vpop.permute.xlu0 %2914 }
 0xc58   :  { %v2917_v11 = vunpack.i.h.bf16 %v2915_v5  ;;  %v2916_v38 = vunpack.i.l.bf16 %v2915_v5  ;;  %v2706_v5 = vld [vmem:[%s4140_s6 + $0xa0] sm:$0xff] }
 0xc59   :  { %1379 = vmatpush.msrb.mxu3 %v2706_v5 }
 0xc5a   :  { %v1324_v39 = vsel %vm67_vm0, %v2916_v38, %v2917_v11 }
 0xc5b   :  { %1351 = vmatpush.msrb.mxu1 %v1324_v39 }
 0xc82   :  { %v1465_v51 = vpop.xlane.xlu0 %1464 }
 0xc83   :  { %v1466_v9 = vmul.f32 %v1465_v51, %v3280_v16 }
 0xc85   :  { %v1467_v12 = vadd.f32 1e-06, %v1466_v9 }
 0xc86   :  { %v1250_v41 = vpop.f32.mrf.mxu0 }
 0xc87   :  { %v3723_v15 = vadd.f32 %v1250_v41, %v3504_v49  ;;  %3093 = vrsqrt.f32 %v1467_v12  ;;  %vm1474_vm13 = vweird.f32 %v1467_v12  ;;  %v3006_v49 = vld [vmem:[%s4138_s4 + $0x5] ss:$0 sm:$0xff] }
 0xc89   :  { %v1260_v17 = vmul.f32 %v3723_v15, %v3723_v15 }
 0xc8b   :  { %v1262_v18 = vsel %vm67_vm0, %v1260_v17, 0.0  ;;  %v2704_v17 = vld [vmem:[%s4140_s6 + $0x90] sm:$0xff] }
 0xc8c   :  { %1263 = vadd.xlane.f32.xlu2 %v1262_v18 }
 0xc8d   :  { %v3094_v19 = vpop.eup %3093 }
 0xc8e   :  { %v1469_v60 = vmul.f32 %v3094_v19, %v1467_v12  ;;  %vm1475_vm14 = vweird.f32 %v3094_v19  ;;  %v2705_v12 = vld [vmem:[%s4140_s6 + $0x98] sm:$0xff] }
 0xc8f   :  { %vm1476_vm15 = vmor %vm1474_vm13, %vm1475_vm14  ;;  %1380 = vmatpush.msrb.mxu3 %v2705_v12 }
 0xc90   :  { %v1470_v20 = vmul.f32 %v3094_v19, %v1469_v60 }
 0xc91   :  { %1381 = vmatpush.msrb.mxu3 %v2704_v17 }
 0xc92   :  { %v1471_v21 = vmul.f32 0.5, %v1470_v20 }
 0xc94   :  { %v1472_v22 = vsub.f32 1.5, %v1471_v21 }
 0xc96   :  { %v1473_v23 = vmul.f32 %v3094_v19, %v1472_v22 }
 0xc98   :  { %v1477_v24 = vsel %vm1476_vm15, %v3094_v19, %v1473_v23 }
 0xc99   :  { %v1478_v25 = vmul.f32 %v1477_v24, %v3684_v52 }
 0xc9b   :  { %v1482_v26 = vmul.f32 %v3006_v49, %v1478_v25  ;;  %v2703_v25 = vld [vmem:[%s4140_s6 + $0x88] sm:$0xff] }
 0xc9c   :  { %1382 = vmatpush.msrb.mxu3 %v2703_v25 }
 0xc9d   :  { %2746 = vmatmul.msk.f32.vlgmr.msra.gmra.mxu2 %vm67_vm0, %v1482_v26  ;;  %v2702_v26 = vld [vmem:[%s4140_s6 + $0x80] sm:$0xff] }
 0xc9e   :  { %1383 = vmatpush.msrb.mxu3 %v2702_v26 }
 0xca4   :  { %2919 = vrot.lane.b32.xlu2 %v2918_v29, %s3188_s16 }
 0xcbf   :  { %v1253_v35 = vpop.f32.mrf.mxu0 }
 0xcc0   :  { %v3741_v36 = vadd.f32 %v1253_v35, %v3510_v55  ;;  %v1445_v55 = vld [vmem:[%s4142_s8 + $0x10] sm:$0xff]  ;;  %v2923_v35 = vpack.i.bf16 %v3705_v7, %v3700_v6 }
 0xcc1   :  { %1522 = vmatpush.msrb.mxu0 %v1445_v55 }
 0xcc2   :  { %v1261_v34 = vmul.f32 %v3741_v36, %v3741_v36  ;;  %2924 = vrot.lane.b32.xlu2 %v2923_v35, %s3181_s12 }
 0xcc3   :  { %1523 = vmatpush.msrb.mxu0 %v1444_v43 }
 0xcc4   :  { %v1265_v58 = vsel %vm67_vm0, %v1261_v34, 0.0  ;;  %v2928_v34 = vpack.i.bf16 %v3717_v8, %v3711_v37 }
 0xcc5   :  { %1266 = vadd.xlane.f32.xlu1 %v1265_v58  ;;  %1524 = vmatpush.msrb.mxu0 %v1443_v40 }
 0xcca   :  { %2929 = vrot.lane.b32.xlu2 %v2928_v34, %s3181_s12 }
 0xcd2   :  { %2939 = vrot.lane.b32.xlu2 %v2928_v34, %s3176_s24 }
 0xcff   :  { %v1264_v13 = vpop.xlane.xlu2 %1263 }
 0xd00   :  { %v1268_v47 = vmul.f32 %v1264_v13, %v3280_v16 }
 0xd02   :  { %v1270_v14 = vadd.f32 1e-06, %v1268_v47 }
 0xd04   :  { %3095 = vrsqrt.f32 %v1270_v14  ;;  %vm1278_vm3 = vweird.f32 %v1270_v14 }
 0xd07   :  { %v2920_v1 = vpop.permute.xlu2 %2919 }
 0xd08   :  { %v2922_v44 = vunpack.i.h.bf16 %v2920_v1  ;;  %v2921_v48 = vunpack.i.l.bf16 %v2920_v1 }
 0xd0a   :  { %v3096_v0 = vpop.eup %3095  ;;  %v1323_v53 = vsel %vm67_vm0, %v2921_v48, %v2922_v44 }
 0xd0b   :  { %v1273_v56 = vmul.f32 %v3096_v0, %v1270_v14  ;;  %1352 = vmatpush.msrb.mxu1 %v1323_v53  ;;  %vm1279_vm1 = vweird.f32 %v3096_v0 }
 0xd0c   :  { %vm1280_vm4 = vmor %vm1278_vm3, %vm1279_vm1 }
 0xd0d   :  { %v1274_v57 = vmul.f32 %v3096_v0, %v1273_v56 }
 0xd0f   :  { %v1275_v59 = vmul.f32 0.5, %v1274_v57  ;;  %v3009_v57 = vld [vmem:[%s4138_s4 + $0x4] ss:$0 sm:$0xff] }
 0xd11   :  { %v1276_v61 = vsub.f32 1.5, %v1275_v59 }
 0xd13   :  { %v1277_v62 = vmul.f32 %v3096_v0, %v1276_v61 }
 0xd15   :  { %v1281_v63 = vsel %vm1280_vm4, %v3096_v0, %v1277_v62 }
 0xd16   :  { %v1292_v46 = vmul.f32 %v1281_v63, %v3723_v15 }
 0xd18   :  { %v1297_v2 = vmul.f32 %v3007_v28, %v1292_v46 }
 0xd1a   :  { %2740 = vmatmul.msk.f32.vlgmr.msrb.gmra.mxu1 %vm67_vm0, %v1297_v2 }
 0xd1c   :  { %v2925_v37 = vpop.permute.xlu2 %2924 }
 0xd1d   :  { %v2926_v8 = vunpack.i.l.bf16 %v2925_v37  ;;  %v2927_v55 = vunpack.i.h.bf16 %v2925_v37 }
 0xd1f   :  { %1622 = vmatpush.msra.mxu3 %v2926_v8  ;;  %v3855_v8 = vld [vmem:[%s4137_s3] sm:$0x3] }
 0xd20   :  { %v1503_v3 = vpop.f32.mrf.mxu2 }
 0xd21   :  { %2747 = vmatmul.msk.f32.vlgmr.msrb.gmra.mxu0 %vm67_vm0, %v1503_v3  ;;  %1623 = vmatpush.msra.mxu3 %v2927_v55 }
 0xd38   :  { %v1267_v51 = vpop.xlane.xlu1 %1266 }
 0xd39   :  { %v1269_v9 = vmul.f32 %v1267_v51, %v3280_v16 }
 0xd3b   :  { %v1271_v41 = vadd.f32 1e-06, %v1269_v9 }
 0xd3d   :  { %3097 = vrsqrt.f32 %v1271_v41  ;;  %vm1288_vm6 = vweird.f32 %v1271_v41 }
 0xd43   :  { %v3098_v18 = vpop.eup %3097 }
 0xd44   :  { %v1283_v19 = vmul.f32 %v3098_v18, %v1271_v41  ;;  %vm1289_vm5 = vweird.f32 %v3098_v18 }
 0xd45   :  { %vm1290_vm7 = vmor %vm1288_vm6, %vm1289_vm5 }
 0xd46   :  { %v1284_v60 = vmul.f32 %v3098_v18, %v1283_v19 }
 0xd48   :  { %v1285_v20 = vmul.f32 0.5, %v1284_v60 }
 0xd4a   :  { %v1286_v21 = vsub.f32 1.5, %v1285_v20 }
 0xd4c   :  { %v1287_v22 = vmul.f32 %v3098_v18, %v1286_v21 }
 0xd4e   :  { %v1291_v23 = vsel %vm1290_vm7, %v3098_v18, %v1287_v22  ;;  %vm1662_vm7 = vcmask 123904  }
 0xd4f   :  { %v1293_v49 = vmul.f32 %v1291_v23, %v3741_v36 }
 0xd51   :  { %v1298_v24 = vmul.f32 %v3007_v28, %v1293_v49 }
 0xd53   :  { %2741 = vmatmul.msk.f32.gmra.mxu1 %vm67_vm0, %v1298_v24 }
 0xd97   :  { %v1354_v27 = vpop.f32.mrf.mxu1 }
 0xd98   :  { %v1360_v29 = vmax.f32 %v1354_v27, 0.0 }
 0xd9a   :  { %2742 = vmatmul.msk.f32.vlgmr.msrb.gmra.mxu3 %vm691_vm2, %v1360_v29  ;;  %v3008_v29 = vld [vmem:[%s4138_s4 + $0x6] ss:$0 sm:$0xff] }
 0xd9e   :  { %v1526_v30 = vpop.f32.mrf.mxu0 }
 0xd9f   :  { %v3796_v10 = vadd.f32 %v1526_v30, %v3684_v52 }
 0xda1   :  { %v1532_v31 = vmul.f32 %v3796_v10, %v3796_v10 }
 0xda3   :  { %v1533_v45 = vsel %vm1462_vm12, %v1532_v31, 0.0 }
 0xda4   :  { %1534 = vadd.xlane.f32.xlu1 %v1533_v45 }
 0xdd0   :  { %v1357_v32 = vpop.f32.mrf.mxu1 }
 0xdd1   :  { %v1361_v54 = vmax.f32 %v1357_v32, 0.0 }
 0xdd3   :  { %2743 = vmatmul.msk.f32.gmra.mxu3 %vm691_vm2, %v1361_v54 }
 0xe17   :  { %v1535_v13 = vpop.xlane.xlu1 %1534 }
 0xe18   :  { %v1536_v28 = vmul.f32 %v1535_v13, %v3280_v16 }
 0xe1a   :  { %v1537_v63 = vadd.f32 1e-06, %v1536_v28 }
 0xe1c   :  { %vm1544_vm1 = vweird.f32 %v1537_v63 }
 0xe1d   :  { %v1385_v52 = vpop.f32.mrf.mxu3 }
 0xe1e   :  { %v1391_v58 = vadd.f32 %v1385_v52, %v3723_v15  ;;  %v2930_v15 = vpop.permute.xlu2 %2929 }
 0xe1f   :  { %v2931_v43 = vunpack.i.l.bf16 %v2930_v15  ;;  %v2932_v47 = vunpack.i.h.bf16 %v2930_v15 }
 0xe20   :  { %v1395_v11 = vmul.f32 %v1391_v58, %v1391_v58 }
 0xe21   :  { %1624 = vmatpush.msra.mxu3 %v2931_v43 }
 0xe22   :  { %v1397_v38 = vsel %vm67_vm0, %v1395_v11, 0.0 }
 0xe23   :  { %1398 = vadd.xlane.f32.xlu1 %v1397_v38  ;;  %1625 = vmatpush.msra.mxu3 %v2932_v47 }
 0xe26   :  { %v2940_v23 = vpop.permute.xlu2 %2939 }
 0xe27   :  { %v2941_v27 = vunpack.i.l.bf16 %v2940_v23  ;;  %v2942_v31 = vunpack.i.h.bf16 %v2940_v23 }
 0xe56   :  { %v1388_v39 = vpop.f32.mrf.mxu3 }
 0xe57   :  { %v1392_v42 = vadd.f32 %v1388_v39, %v3741_v36 }
 0xe59   :  { %v1396_v6 = vmul.f32 %v1392_v42, %v1392_v42 }
 0xe5b   :  { %v1400_v7 = vsel %vm67_vm0, %v1396_v6, 0.0 }
 0xe5c   :  { %1401 = vadd.xlane.f32.xlu1 %v1400_v7 }
 0xe75   :  { %2934 = vrot.lane.b32.xlu1 %v2923_v35, %s3176_s24 }
 0xe96   :  { %v1399_v36 = vpop.xlane.xlu1 %1398 }
 0xe97   :  { %v1403_v40 = vmul.f32 %v1399_v36, %v3280_v16 }
 0xe99   :  { %v1405_v14 = vadd.f32 1e-06, %v1403_v40 }
 0xe9b   :  { %3099 = vrsqrt.f32 %v1405_v14  ;;  %vm1413_vm13 = vweird.f32 %v1405_v14 }
 0xe9c   :  { %3101 = vrsqrt.f32 %v1537_v63 }
 0xea1   :  { %v3100_v1 = vpop.eup %3099 }
 0xea2   :  { %v1408_v44 = vmul.f32 %v3100_v1, %v1405_v14  ;;  %vm1414_vm11 = vweird.f32 %v3100_v1  ;;  %v3102_v3 = vpop.eup %3101 }
 0xea3   :  { %vm1415_vm14 = vmor %vm1413_vm13, %vm1414_vm11  ;;  %v1539_v4 = vmul.f32 %v3102_v3, %v1537_v63  ;;  %vm1545_vm3 = vweird.f32 %v3102_v3 }
 0xea4   :  { %v1409_v48 = vmul.f32 %v3100_v1, %v1408_v44  ;;  %vm1546_vm6 = vmor %vm1544_vm1, %vm1545_vm3 }
 0xea5   :  { %v1540_v50 = vmul.f32 %v3102_v3, %v1539_v4 }
 0xea6   :  { %v1410_v0 = vmul.f32 0.5, %v1409_v48 }
 0xea7   :  { %v1541_v9 = vmul.f32 0.5, %v1540_v50 }
 0xea8   :  { %v1411_v53 = vsub.f32 1.5, %v1410_v0 }
 0xea9   :  { %v1542_v17 = vsub.f32 1.5, %v1541_v9 }
 0xeaa   :  { %v1412_v56 = vmul.f32 %v3100_v1, %v1411_v53 }
 0xeab   :  { %v1543_v60 = vmul.f32 %v3102_v3, %v1542_v17 }
 0xeac   :  { %v1416_v59 = vsel %vm1415_vm14, %v3100_v1, %v1412_v56 }
 0xead   :  { %v1427_v61 = vmul.f32 %v1416_v59, %v1391_v58  ;;  %v1547_v49 = vsel %vm1546_vm6, %v3102_v3, %v1543_v60 }
 0xeae   :  { %v1548_v30 = vmul.f32 %v1547_v49, %v3796_v10 }
 0xeaf   :  { %v3818_v62 = vmul.f32 %v3009_v57, %v1427_v61 }
 0xeb0   :  { %v1552_v45 = vmul.f32 %v3008_v29, %v1548_v30 }
 0xeb1   :  { %2750 = vmatmul.msk.f32.vlgmr.msra.gmra.mxu3 %vm67_vm0, %v3818_v62 }
 0xecf   :  { %v1402_v46 = vpop.xlane.xlu1 %1401 }
 0xed0   :  { %v1404_v2 = vmul.f32 %v1402_v46, %v3280_v16 }
 0xed2   :  { %v1406_v33 = vadd.f32 1e-06, %v1404_v2 }
 0xed4   :  { %3103 = vrsqrt.f32 %v1406_v33  ;;  %vm1423_vm4 = vweird.f32 %v1406_v33 }
 0xeda   :  { %v3104_v5 = vpop.eup %3103 }
 0xedb   :  { %v1418_v51 = vmul.f32 %v3104_v5, %v1406_v33  ;;  %vm1424_vm15 = vweird.f32 %v3104_v5 }
 0xedc   :  { %vm1425_vm5 = vmor %vm1423_vm4, %vm1424_vm15 }
 0xedd   :  { %v1419_v12 = vmul.f32 %v3104_v5, %v1418_v51 }
 0xedf   :  { %v1420_v41 = vmul.f32 0.5, %v1419_v12 }
 0xee1   :  { %v1421_v18 = vsub.f32 1.5, %v1420_v41 }
 0xee3   :  { %v1422_v19 = vmul.f32 %v3104_v5, %v1421_v18 }
 0xee5   :  { %v1426_v20 = vsel %vm1425_vm5, %v3104_v5, %v1422_v19 }
 0xee6   :  { %v1428_v21 = vmul.f32 %v1426_v20, %v1392_v42 }
 0xee7   :  { %v2935_v22 = vpop.permute.xlu1 %2934 }
 0xee8   :  { %v2937_v24 = vunpack.i.h.bf16 %v2935_v22  ;;  %v2936_v25 = vunpack.i.l.bf16 %v2935_v22  ;;  %v3824_v26 = vmul.f32 %v3009_v57, %v1428_v21 }
 0xeea   :  { %1584 = vmatpush.msra.mxu1 %v2936_v25  ;;  %2751 = vmatmul.msk.f32.gmra.mxu3 %vm67_vm0, %v3824_v26 }
 0xeec   :  { %1585 = vmatpush.msra.mxu1 %v2937_v24 }
 0xeee   :  { %1586 = vmatpush.msra.mxu1 %v2941_v27 }
 0xef0   :  { %1587 = vmatpush.msra.mxu1 %v2942_v31 }
 0xef1   :  { %2749 = vmatmul.msk.f32.vlgmr.msra.gmra.mxu1 %vm67_vm0, %v1552_v45 }
 0xf34   :  { %v1627_v32 = vpop.f32.mrf.mxu3 }
 0xf35   :  { %1849 = vrot.lane.b32.xlu1 %v1627_v32, %s3177_s25 }
 0xf6d   :  { %v1630_v54 = vpop.f32.mrf.mxu3 }
 0xf6e   :  { %1707 = vrot.lane.b32.xlu2 %v1630_v54, %s3179_s27  ;;  %2752 = vmatpush.xpose.msk.msrb.mxu2 %vm147_vm8, %v1630_v54  ;;  %v3836_v35 = vpack.i.bf16 %v1627_v32, %v1630_v54  ;;  %v1589_v34 = vpop.f32.mrf.mxu1 }
 0xf70   :  { %2944 = vrot.lane.b32.xlu1 %v3836_v35, %s3176_s24 }
 0xf72   :  { %2753 = vmatpush.xpose.msk.msrb.mxu2 %vm147_vm8, %v1627_v32 }
 0xf75   :  { %2754 = vmatmul.msk.f32.vlgmr.msrb.gmra.mxu2 %vm147_vm8, %v1589_v34 }
 0xf76   :  { %1851 = vrot.lane.b32.xlu2 %v1630_v54, %s3177_s25 }
 0xf78   :  { %1779 = vrot.lane.b32.xlu1 %v1630_v54, %s3180_s28 }
 0xf7e   :  { %1703 = vrot.lane.b32.xlu2 %v1589_v34, %s3179_s27 }
 0xf86   :  { %1847 = vrot.lane.b32.xlu2 %v1589_v34, %s3177_s25 }
 0xf8e   :  { %1775 = vrot.lane.b32.xlu2 %v1589_v34, %s3180_s28 }
 0xfa7   :  { %v1850_v11 = vpop.permute.xlu1 %1849 }
 0xfc8   :  { %v1708_v52 = vpop.permute.xlu2 %1707 }
 0xfc9   :  { %2756 = vmatpush.xpose.msk.msrb.mxu1 %vm147_vm8, %v1708_v52 }
 0xfd0   :  { %v1852_v58 = vpop.permute.xlu2 %1851 }
 0xfd1   :  { %2764 = vmatpush.xpose.msk.msrb.mxu3 %vm147_vm8, %v1852_v58 }
 0xfd5   :  { %2765 = vmatpush.xpose.msk.msrb.mxu3 %vm147_vm8, %v1850_v11 }
 0xfd8   :  { %v1704_v38 = vpop.permute.xlu2 %1703 }
 0xfe0   :  { %v1848_v39 = vpop.permute.xlu2 %1847 }
 0xfe1   :  { %2766 = vmatmul.msk.f32.vlgmr.msrb.gmra.mxu3 %vm147_vm8, %v1848_v39 }
 0xfe2   :  { %v2945_v42 = vpop.permute.xlu1 %2944 }
 0xfe3   :  { %v2946_v6 = vunpack.i.l.bf16 %v2945_v42  ;;  %v2947_v7 = vunpack.i.h.bf16 %v2945_v42 }
 0xfe5   :  { %1697 = vmatpush.msra.mxu0 %v2946_v6 }
 0xfe7   :  { %1698 = vmatpush.msra.mxu0 %v2947_v7 }
 0xfe8   :  { %v1776_v63 = vpop.permute.xlu2 %1775 }
 0xfea   :  { %v1780_v37 = vpop.permute.xlu1 %1779 }
 0xfeb   :  { %2760 = vmatpush.xpose.msk.msrb.mxu0 %vm147_vm8, %v1780_v37 }
 0xff8   :  { %v1659_v55 = vpop.f32.mrf.mxu2 }
 0xff9   :  { %v1660_v15 = vadd.f32 %v1659_v55, %v3855_v8 }
 0xffb   :  { %v1663_v43 = vsel %vm1662_vm7, %v1660_v15, -inf }
 0xffc   :  { %1664 = vmax.xlane.f32.xlu0 %v1663_v43  ;;  %v1448_v43 = vld [vmem:[%s4142_s8 + $0x28] sm:$0xff] }
0x1010   :  { %1705 = vrot.lane.b32.xlu0 %v1627_v32, %s3179_s27 }
0x1064   :  { %v1876_v44 = vpop.f32.mrf.mxu3 }
0x1065   :  { %v1877_v48 = vadd.f32 %v1876_v44, %v3855_v8 }
0x1067   :  { %v1879_v0 = vsel %vm1662_vm7, %v1877_v48, -inf }
0x106f   :  { %v1665_v13 = vpop.xlane.xlu0 %1664 }
0x1070   :  { %v1666_v47 = vsub.f32 %v1660_v15, %v1665_v13  ;;  %v1449_v15 = vld [vmem:[%s4142_s8 + $0x30] sm:$0xff] }
0x1072   :  { %v1667_v36 = vmul.f32 1.442695, %v1666_v47  ;;  %v1447_v47 = vld [vmem:[%s4142_s8 + $0x20] sm:$0xff] }
0x1074   :  { %3105 = vpow2.f32 %v1667_v36 }
0x107a   :  { %v3106_v40 = vpop.eup %3105 }
0x107b   :  { %v1669_v14 = vsel %vm1662_vm7, %v3106_v40, 0.0 }
0x107c   :  { %1670 = vadd.xlane.f32.xlu0 %v1669_v14 }
0x1082   :  { %v1706_v1 = vpop.permute.xlu0 %1705 }
0x1083   :  { %2757 = vmatpush.xpose.msk.msrb.mxu1 %vm147_vm8, %v1706_v1 }
0x1086   :  { %2758 = vmatmul.msk.f32.vlgmr.msrb.gmra.mxu1 %vm147_vm8, %v1704_v38 }
0x1090   :  { %1777 = vrot.lane.b32.xlu0 %v1627_v32, %s3180_s28 }
0x10ba   :  { %1880 = vmax.xlane.f32.xlu0 %v1879_v0 }
0x10ce   :  { %2949 = vrot.lane.b32.xlu0 %v3836_v35, %s3174_s22 }
0x10ef   :  { %v1671_v53 = vpop.xlane.xlu0 %1670 }
0x10f0   :  { %3107 = vrcp.f32 %v1671_v53 }
0x10f6   :  { %v3108_v56 = vpop.eup %3107 }
0x10f7   :  { %v1673_v57 = vmul.f32 %v3108_v56, %v3106_v40 }
0x10f9   :  { %2755 = vmatmul.msk.f32.vlgmr.msra.gmra.mxu0 %vm179_vm9, %v1673_v57 }
0x1102   :  { %v1778_v59 = vpop.permute.xlu0 %1777 }
0x1103   :  { %v1732_v61 = vpop.f32.mrf.mxu1  ;;  %2761 = vmatpush.xpose.msk.msrb.mxu0 %vm147_vm8, %v1778_v59  ;;  %v1442_v59 = vld [vmem:[%s4141_s7 + $0x38] sm:$0xff] }
0x1104   :  { %v1733_v28 = vadd.f32 %v1732_v61, %v3855_v8  ;;  %v1440_v61 = vld [vmem:[%s4141_s7 + $0x28] sm:$0xff] }
0x1106   :  { %2762 = vmatmul.msk.f32.vlgmr.msrb.gmra.mxu0 %vm147_vm8, %v1776_v63  ;;  %v1735_v46 = vsel %vm1662_vm7, %v1733_v28, -inf  ;;  %v1458_v63 = vld [vmem:[%s4142_s8 + $0x78] sm:$0xff] }
0x1107   :  { %1736 = vmax.xlane.f32.xlu1 %v1735_v46  ;;  %v1457_v46 = vld [vmem:[%s4142_s8 + $0x70] sm:$0xff]  ;;  %2016 = vmatpush.msra.mxu3 %v1458_v63 }
0x1109   :  { %2017 = vmatpush.msra.mxu3 %v1457_v46 }
0x112d   :  { %v1881_v2 = vpop.xlane.xlu0 %1880 }
0x112e   :  { %v1882_v9 = vsub.f32 %v1877_v48, %v1881_v2  ;;  %v1456_v2 = vld [vmem:[%s4142_s8 + $0x68] sm:$0xff] }
0x112f   :  { %2018 = vmatpush.msra.mxu3 %v1456_v2 }
0x1130   :  { %v1883_v41 = vmul.f32 1.442695, %v1882_v9 }
0x1140   :  { %v2950_v3 = vpop.permute.xlu0 %2949 }
0x1141   :  { %v2951_v33 = vunpack.i.l.bf16 %v2950_v3  ;;  %v2952_v4 = vunpack.i.h.bf16 %v2950_v3  ;;  %v1455_v3 = vld [vmem:[%s4142_s8 + $0x60] sm:$0xff] }
0x1142   :  { %2019 = vmatpush.msra.mxu3 %v1455_v3 }
0x1143   :  { %1769 = vmatpush.msra.mxu2 %v2951_v33 }
0x1145   :  { %1770 = vmatpush.msra.mxu2 %v2952_v4 }
0x1176   :  { %v3873_v5 = vpop.f32.mrf.mxu0 }
0x117a   :  { %v1737_v50 = vpop.xlane.xlu1 %1736 }
0x117b   :  { %v1738_v51 = vsub.f32 %v1733_v28, %v1737_v50  ;;  %v1438_v28 = vld [vmem:[%s4141_s7 + $0x18] sm:$0xff] }
0x117c   :  { %v1454_v50 = vld [vmem:[%s4142_s8 + $0x58] sm:$0xff] }
0x117d   :  { %v1739_v12 = vmul.f32 1.442695, %v1738_v51  ;;  %v1453_v51 = vld [vmem:[%s4142_s8 + $0x50] sm:$0xff]  ;;  %2020 = vmatpush.msra.mxu3 %v1454_v50 }
0x117f   :  { %3109 = vpow2.f32 %v1739_v12  ;;  %2021 = vmatpush.msra.mxu3 %v1453_v51 }
0x1180   :  { %3111 = vpow2.f32 %v1883_v41 }
0x1183   :  { %v1804_v17 = vpop.f32.mrf.mxu0 }
0x1184   :  { %v1805_v18 = vadd.f32 %v1804_v17, %v3855_v8 }
0x1185   :  { %v3110_v19 = vpop.eup %3109 }
0x1186   :  { %v1741_v60 = vsel %vm1662_vm7, %v3110_v19, 0.0  ;;  %v1807_v20 = vsel %vm1662_vm7, %v1805_v18, -inf  ;;  %v3112_v21 = vpop.eup %3111 }
0x1187   :  { %1742 = vadd.xlane.f32.xlu1 %v1741_v60  ;;  %1808 = vmax.xlane.f32.xlu2 %v1807_v20  ;;  %v1885_v22 = vsel %vm1662_vm7, %v3112_v21, 0.0  ;;  %v3010_v60 = vld [vmem:[%s4138_s4 + $0x7] ss:$0 sm:$0xff] }
0x118f   :  { %1886 = vadd.xlane.f32.xlu2 %v1885_v22 }
0x11a7   :  { %2954 = vrot.lane.b32.xlu2 %v3836_v35, %s3175_s23 }
0x11fa   :  { %v1743_v23 = vpop.xlane.xlu1 %1742  ;;  %v1809_v49 = vpop.xlane.xlu2 %1808 }
0x11fb   :  { %3113 = vrcp.f32 %v1743_v23  ;;  %v1810_v24 = vsub.f32 %v1805_v18, %v1809_v49  ;;  %v1452_v23 = vld [vmem:[%s4142_s8 + $0x48] sm:$0xff]  ;;  %v1451_v49 = vld [vmem:[%s4142_s8 + $0x40] sm:$0xff] }
0x11fc   :  { %2022 = vmatpush.msra.mxu3 %v1452_v23 }
0x11fd   :  { %v1811_v25 = vmul.f32 1.442695, %v1810_v24 }
0x11fe   :  { %2023 = vmatpush.msra.mxu3 %v1451_v49 }
0x11ff   :  { %3115 = vpow2.f32 %v1811_v25 }
0x1201   :  { %v3114_v27 = vpop.eup %3113 }
0x1202   :  { %v1745_v29 = vmul.f32 %v3114_v27, %v3110_v19  ;;  %v1887_v30 = vpop.xlane.xlu2 %1886  ;;  %v2772_v27 = vld [vmem:[%s4141_s7 + $0x40] sm:$0xff] }
0x1203   :  { %3117 = vrcp.f32 %v1887_v30  ;;  %v2776_v30 = vld [vmem:[%s4141_s7 + $0x60] sm:$0xff] }
0x1204   :  { %2759 = vmatmul.msk.f32.vlgmr.msra.gmra.mxu2 %vm179_vm9, %v1745_v29  ;;  %v2774_v29 = vld [vmem:[%s4141_s7 + $0x50] sm:$0xff] }
0x1205   :  { %v3116_v31 = vpop.eup %3115 }
0x1206   :  { %v1813_v45 = vsel %vm1662_vm7, %v3116_v31, 0.0 }
0x1207   :  { %1814 = vadd.xlane.f32.xlu1 %v1813_v45  ;;  %v2778_v45 = vld [vmem:[%s4141_s7 + $0x70] sm:$0xff] }
0x1209   :  { %v3118_v54 = vpop.eup %3117 }
0x120a   :  { %v2955_v32 = vpop.permute.xlu2 %2954  ;;  %v1889_v58 = vmul.f32 %v3118_v54, %v3112_v21 }
0x120b   :  { %v2956_v34 = vunpack.i.l.bf16 %v2955_v32  ;;  %v2957_v52 = vunpack.i.h.bf16 %v2955_v32  ;;  %v2963_v32 = vpack.i.bf16 %v2776_v30, %v2778_v45 }
0x120d   :  { %1913 = vmatpush.msrb.mxu2 %v2956_v34 }
0x120f   :  { %1914 = vmatpush.msrb.mxu2 %v2957_v52 }
0x1210   :  { %2767 = vmatmul.msk.f32.vlgmr.msrb.gmra.mxu2 %vm179_vm9, %v1889_v58 }
0x1211   :  { %2093 = vmatpush.msra.mxu2 %v2778_v45 }
0x1213   :  { %2094 = vmatpush.msra.mxu2 %v2776_v30 }
0x1215   :  { %2095 = vmatpush.msra.mxu2 %v2774_v29 }
0x1217   :  { %2096 = vmatpush.msra.mxu2 %v2772_v27 }
0x1220   :  { %2959 = vrot.lane.b32.xlu1 %v3836_v35, %s3178_s26  ;;  %v1450_v35 = vld [vmem:[%s4142_s8 + $0x38] sm:$0xff] }
0x1221   :  { %1949 = vmatpush.msra.mxu0 %v1450_v35 }
0x1223   :  { %1950 = vmatpush.msra.mxu0 %v1449_v15 }
0x1225   :  { %1951 = vmatpush.msra.mxu0 %v1448_v43  ;;  %v2783_v43 = vld [vmem:[%s4142_s8 + $0x98] sm:$0xff] }
0x1227   :  { %1952 = vmatpush.msra.mxu0 %v1447_v47 }
0x1229   :  { %2116 = vmatpush.msrb.mxu0 %v2783_v43 }
0x127a   :  { %v1815_v38 = vpop.xlane.xlu1 %1814 }
0x127b   :  { %3119 = vrcp.f32 %v1815_v38 }
0x1281   :  { %v3120_v42 = vpop.eup %3119 }
0x1282   :  { %v1817_v55 = vmul.f32 %v3120_v42, %v3116_v31  ;;  %v3960_v31 = vpack.i.bf16 %v2772_v27, %v2774_v29 }
0x1287   :  { %v1772_v11 = vpop.f32.mrf.mxu2 }
0x1288   :  { %1920 = vrot.lane.b32.xlu0 %v1772_v11, %s3185_s0 }
0x1292   :  { %v2960_v39 = vpop.permute.xlu1 %2959 }
0x1293   :  { %v2961_v6 = vunpack.i.l.bf16 %v2960_v39  ;;  %v1916_v7 = vpop.f32.mrf.mxu2  ;;  %v2962_v37 = vunpack.i.h.bf16 %v2960_v39 }
0x1294   :  { %1928 = vrot.lane.b32.xlu2 %v1916_v7, %s3186_s13 }
0x1295   :  { %1841 = vmatpush.msra.mxu1 %v2961_v6 }
0x1297   :  { %1842 = vmatpush.msra.mxu1 %v2962_v37 }
0x1298   :  { %2763 = vmatmul.msk.f32.vlgmr.msra.gmra.mxu1 %vm179_vm9, %v1817_v55 }
0x1299   :  { %1996 = vmatpush.msrb.mxu1 %v1442_v59 }
0x129b   :  { %1997 = vmatpush.msrb.mxu1 %v1440_v61 }
0x129c   :  { %2964 = vrot.lane.b32.xlu2 %v2963_v32, %s3181_s12 }
0x129d   :  { %1998 = vmatpush.msrb.mxu1 %v1438_v28 }
0x12ee   :  { %v1929_v1 = vpop.permute.xlu2 %1928 }
0x12f6   :  { %v2965_v11 = vpop.permute.xlu2 %2964 }
0x12f7   :  { %v2967_v38 = vunpack.i.h.bf16 %v2965_v11  ;;  %v2966_v39 = vunpack.i.l.bf16 %v2965_v11 }
0x12f9   :  { %2211 = vmatpush.msrb.mxu2 %v2966_v39 }
0x12fa   :  { %v1921_v36 = vpop.permute.xlu0 %1920 }
0x12fb   :  { %v1931_v40 = vsel %vm147_vm8, %v3873_v5, %v1921_v36  ;;  %2212 = vmatpush.msrb.mxu2 %v2967_v38  ;;  %v2781_v36 = vld [vmem:[%s4142_s8 + $0x88] sm:$0xff] }
0x1315   :  { %v1844_v13 = vpop.f32.mrf.mxu1 }
0x1316   :  { %1924 = vrot.lane.b32.xlu0 %v1844_v13, %s3187_s14  ;;  %v2782_v13 = vld [vmem:[%s4142_s8 + $0x90] sm:$0xff] }
0x1317   :  { %2117 = vmatpush.msrb.mxu0 %v2782_v13 }
0x1319   :  { %2118 = vmatpush.msrb.mxu0 %v2781_v36 }
0x1388   :  { %v1925_v14 = vpop.permute.xlu0 %1924 }
0x1389   :  { %v1932_v44 = vsel %vm179_vm9, %v1931_v40, %v1925_v14 }
0x138a   :  { %v1933_v48 = vsel %vm553_vm10, %v1932_v44, %v1929_v1 }
0x138b   :  { %2768 = vmatmul.msk.f32.vlgmr.msra.gmra.mxu0 %vm67_vm0, %v1933_v48  ;;  %v3011_v48 = vld [vmem:[%s4138_s4 + $0x8] ss:$0 sm:$0xff] }
0x1408   :  { %v1954_v0 = vpop.f32.mrf.mxu0 }
0x1409   :  { %v1957_v53 = vadd.f32 %v1954_v0, %v3796_v10  ;;  %v1436_v10 = vld [vmem:[%s4141_s7 + $0x8] sm:$0xff] }
0x140a   :  { %1999 = vmatpush.msrb.mxu1 %v1436_v10 }
0x140b   :  { %v1960_v56 = vmul.f32 %v1957_v53, %v1957_v53 }
0x140d   :  { %v1961_v57 = vsel %vm1462_vm12, %v1960_v56, 0.0 }
0x140e   :  { %1962 = vadd.xlane.f32.xlu0 %v1961_v57  ;;  %v2780_v57 = vld [vmem:[%s4142_s8 + $0x80] sm:$0xff] }
0x140f   :  { %2119 = vmatpush.msrb.mxu0 %v2780_v57 }
0x1422   :  { %2969 = vrot.lane.b32.xlu0 %v3960_v31, %s3181_s12 }
0x1481   :  { %v1963_v33 = vpop.xlane.xlu0 %1962 }
0x1482   :  { %v1964_v4 = vmul.f32 %v1963_v33, %v3280_v16 }
0x1484   :  { %v1965_v5 = vadd.f32 1e-06, %v1964_v4 }
0x1486   :  { %3121 = vrsqrt.f32 %v1965_v5  ;;  %vm1972_vm13 = vweird.f32 %v1965_v5 }
0x148c   :  { %v3122_v9 = vpop.eup %3121 }
0x148d   :  { %v1967_v12 = vmul.f32 %v3122_v9, %v1965_v5  ;;  %vm1973_vm11 = vweird.f32 %v3122_v9 }
0x148e   :  { %vm1974_vm14 = vmor %vm1972_vm13, %vm1973_vm11 }
0x148f   :  { %v1968_v41 = vmul.f32 %v3122_v9, %v1967_v12 }
0x1491   :  { %v1969_v17 = vmul.f32 0.5, %v1968_v41 }
0x1493   :  { %v1970_v18 = vsub.f32 1.5, %v1969_v17 }
0x1494   :  { %v2970_v42 = vpop.permute.xlu0 %2969 }
0x1495   :  { %v1971_v19 = vmul.f32 %v3122_v9, %v1970_v18  ;;  %v2971_v6 = vunpack.i.l.bf16 %v2970_v42  ;;  %v2972_v7 = vunpack.i.h.bf16 %v2970_v42 }
0x1497   :  { %v1975_v20 = vsel %vm1974_vm14, %v3122_v9, %v1971_v19  ;;  %2213 = vmatpush.msrb.mxu2 %v2971_v6 }
0x1498   :  { %v1976_v21 = vmul.f32 %v1975_v20, %v1957_v53 }
0x1499   :  { %2214 = vmatpush.msrb.mxu2 %v2972_v7 }
0x149a   :  { %v1980_v22 = vmul.f32 %v3010_v60, %v1976_v21 }
0x149c   :  { %2770 = vmatmul.msk.f32.vlgmr.msrb.gmra.mxu1 %vm67_vm0, %v1980_v22  ;;  %v3012_v22 = vld [vmem:[%s4138_s4 + $0x9] ss:$0 sm:$0xff] }
0x1519   :  { %v2001_v24 = vpop.f32.mrf.mxu1 }
0x151a   :  { %v2004_v25 = vmax.f32 %v2001_v24, 0.0 }
0x151c   :  { %2771 = vmatmul.msk.f32.vlgmr.msra.gmra.mxu3 %vm691_vm2, %v2004_v25 }
0x159f   :  { %v2025_v54 = vpop.f32.mrf.mxu3 }
0x15a0   :  { %v2028_v34 = vadd.f32 %v2025_v54, %v1957_v53 }
0x15a2   :  { %v2057_v52 = vmul.f32 %v2028_v34, %v2028_v34 }
0x15a4   :  { %v2058_v58 = vsel %vm1462_vm12, %v2057_v52, 0.0 }
0x15a5   :  { %2059 = vadd.xlane.f32.xlu1 %v2058_v58 }
0x15be   :  { %2974 = vrot.lane.b32.xlu1 %v2963_v32, %s3176_s24 }
0x1618   :  { %v2060_v37 = vpop.xlane.xlu1 %2059 }
0x1619   :  { %v2061_v55 = vmul.f32 %v2060_v37, %v3280_v16 }
0x161b   :  { %v2062_v35 = vadd.f32 1e-06, %v2061_v55 }
0x161d   :  { %3123 = vrsqrt.f32 %v2062_v35  ;;  %vm2069_vm1 = vweird.f32 %v2062_v35 }
0x1623   :  { %v3124_v15 = vpop.eup %3123 }
0x1624   :  { %v2064_v47 = vmul.f32 %v3124_v15, %v2062_v35  ;;  %vm2070_vm15 = vweird.f32 %v3124_v15 }
0x1625   :  { %vm2071_vm3 = vmor %vm2069_vm1, %vm2070_vm15 }
0x1626   :  { %v2065_v40 = vmul.f32 %v3124_v15, %v2064_v47 }
0x1628   :  { %v2066_v14 = vmul.f32 0.5, %v2065_v40 }
0x162a   :  { %v2067_v1 = vsub.f32 1.5, %v2066_v14 }
0x162c   :  { %v2068_v44 = vmul.f32 %v3124_v15, %v2067_v1 }
0x162e   :  { %v2072_v0 = vsel %vm2071_vm3, %v3124_v15, %v2068_v44 }
0x162f   :  { %v2073_v53 = vmul.f32 %v2072_v0, %v2028_v34 }
0x1630   :  { %v2975_v2 = vpop.permute.xlu1 %2974 }
0x1631   :  { %v2077_v56 = vmul.f32 %v3011_v48, %v2073_v53  ;;  %v2976_v3 = vunpack.i.l.bf16 %v2975_v2  ;;  %v2977_v33 = vunpack.i.h.bf16 %v2975_v2 }
0x1633   :  { %2797 = vmatmul.msk.f32.vlgmr.msra.gmra.mxu2 %vm67_vm0, %v2077_v56  ;;  %2179 = vmatpush.msra.mxu1 %v2976_v3 }
0x1635   :  { %2180 = vmatpush.msra.mxu1 %v2977_v33 }
0x163b   :  { %2801 = vmatmul.msk.f32.vlgmr.msrb.gmra.mxu2 %vm67_vm0, %v3818_v62 }
0x1643   :  { %2802 = vmatmul.msk.f32.gmra.mxu2 %vm67_vm0, %v3824_v26 }
0x16b6   :  { %v2098_v59 = vpop.f32.mrf.mxu2 }
0x16b7   :  { %2798 = vmatmul.msk.f32.vlgmr.msrb.gmra.mxu0 %vm67_vm0, %v2098_v59 }
0x16be   :  { %v2216_v61 = vpop.f32.mrf.mxu2 }
0x16c6   :  { %v3991_v28 = vpop.f32.mrf.mxu2 }
0x16c7   :  { %2803 = vmatpush.xpose.msk.msra.mxu0 %vm147_vm8, %v3991_v28  ;;  %v4007_v46 = vpack.i.bf16 %v2216_v61, %v3991_v28 }
0x16cb   :  { %2804 = vmatpush.xpose.msk.msra.mxu0 %vm147_vm8, %v2216_v61 }
0x1734   :  { %v2121_v62 = vpop.f32.mrf.mxu0 }
0x1735   :  { %v3997_v26 = vadd.f32 %v2121_v62, %v2028_v34 }
0x1737   :  { %v2127_v10 = vmul.f32 %v3997_v26, %v3997_v26 }
0x1739   :  { %v2128_v63 = vsel %vm1462_vm12, %v2127_v10, 0.0 }
0x173a   :  { %2129 = vadd.xlane.f32.xlu2 %v2128_v63 }
0x1752   :  { %2979 = vrot.lane.b32.xlu2 %v3960_v31, %s3176_s24 }
0x175a   :  { %2295 = vrot.lane.b32.xlu2 %v3991_v28, %s3179_s27 }
0x1762   :  { %2984 = vrot.lane.b32.xlu2 %v4007_v46, %s3176_s24 }
0x176a   :  { %2293 = vrot.lane.b32.xlu2 %v2216_v61, %s3179_s27 }
0x17ad   :  { %v2130_v4 = vpop.xlane.xlu2 %2129 }
0x17ae   :  { %v2131_v50 = vmul.f32 %v2130_v4, %v3280_v16 }
0x17b0   :  { %v2132_v5 = vadd.f32 1e-06, %v2131_v50 }
0x17b2   :  { %3125 = vrsqrt.f32 %v2132_v5  ;;  %vm2139_vm5 = vweird.f32 %v2132_v5 }
0x17b5   :  { %v2980_v51 = vpop.permute.xlu2 %2979 }
0x17b6   :  { %v2982_v9 = vunpack.i.h.bf16 %v2980_v51  ;;  %v2981_v12 = vunpack.i.l.bf16 %v2980_v51 }
0x17b8   :  { %v3126_v41 = vpop.eup %3125  ;;  %2181 = vmatpush.msra.mxu1 %v2981_v12 }
0x17b9   :  { %v2134_v17 = vmul.f32 %v3126_v41, %v2132_v5  ;;  %vm2140_vm4 = vweird.f32 %v3126_v41 }
0x17ba   :  { %2182 = vmatpush.msra.mxu1 %v2982_v9  ;;  %vm2141_vm6 = vmor %vm2139_vm5, %vm2140_vm4 }
0x17bb   :  { %v2135_v18 = vmul.f32 %v3126_v41, %v2134_v17 }
0x17bd   :  { %v2136_v19 = vmul.f32 0.5, %v2135_v18  ;;  %v2296_v60 = vpop.permute.xlu2 %2295 }
0x17be   :  { %2807 = vmatpush.xpose.msk.msrb.mxu3 %vm147_vm8, %v2296_v60 }
0x17bf   :  { %v2137_v20 = vsub.f32 1.5, %v2136_v19 }
0x17c1   :  { %v2138_v21 = vmul.f32 %v3126_v41, %v2137_v20 }
0x17c3   :  { %v2142_v23 = vsel %vm2141_vm6, %v3126_v41, %v2138_v21 }
0x17c4   :  { %v2143_v49 = vmul.f32 %v2142_v23, %v3997_v26 }
0x17c5   :  { %v2985_v24 = vpop.permute.xlu2 %2984 }
0x17c6   :  { %v2147_v25 = vmul.f32 %v3012_v22, %v2143_v49  ;;  %v2986_v27 = vunpack.i.l.bf16 %v2985_v24  ;;  %v2987_v29 = vunpack.i.h.bf16 %v2985_v24 }
0x17c8   :  { %2800 = vmatmul.msk.f32.vlgmr.msra.gmra.mxu1 %vm67_vm0, %v2147_v25 }
0x17c9   :  { %2285 = vmatpush.msrb.mxu1 %v2986_v27 }
0x17cb   :  { %2286 = vmatpush.msrb.mxu1 %v2987_v29 }
0x17cd   :  { %v2294_v30 = vpop.permute.xlu2 %2293 }
0x17ce   :  { %2808 = vmatpush.xpose.msk.msrb.mxu3 %vm147_vm8, %v2294_v30 }
0x1845   :  { %v2184_v31 = vpop.f32.mrf.mxu1 }
0x1846   :  { %2291 = vrot.lane.b32.xlu2 %v2184_v31, %s3179_s27  ;;  %2805 = vmatmul.msk.f32.vlgmr.msra.gmra.mxu0 %vm147_vm8, %v2184_v31 }
0x184e   :  { %2365 = vrot.lane.b32.xlu2 %v2216_v61, %s3180_s28 }
0x1856   :  { %2437 = vrot.lane.b32.xlu2 %v2216_v61, %s3177_s25 }
0x185e   :  { %2435 = vrot.lane.b32.xlu2 %v2184_v31, %s3177_s25 }
0x18a0   :  { %v2292_v45 = vpop.permute.xlu2 %2291 }
0x18a1   :  { %2809 = vmatmul.msk.f32.vlgmr.msrb.gmra.mxu3 %vm147_vm8, %v2292_v45 }
0x18a8   :  { %v2366_v55 = vpop.permute.xlu2 %2365 }
0x18b0   :  { %v2438_v44 = vpop.permute.xlu2 %2437 }
0x18b8   :  { %v2436_v0 = vpop.permute.xlu2 %2435 }
0x18c3   :  { %v2248_v32 = vpop.f32.mrf.mxu0 }
0x18c4   :  { %v2249_v54 = vadd.f32 %v2248_v32, %v3855_v8  ;;  %v2786_v32 = vld [vmem:[%s4142_s8 + $0xb0] sm:$0xff] }
0x18c6   :  { %v2251_v34 = vsel %vm1662_vm7, %v2249_v54, -inf }
0x18c7   :  { %2252 = vmax.xlane.f32.xlu0 %v2251_v34 }
0x18db   :  { %2367 = vrot.lane.b32.xlu0 %v3991_v28, %s3180_s28 }
0x18e3   :  { %2363 = vrot.lane.b32.xlu0 %v2184_v31, %s3180_s28 }
0x1924   :  { %v2320_v52 = vpop.f32.mrf.mxu3 }
0x1925   :  { %v2321_v58 = vadd.f32 %v2320_v52, %v3855_v8  ;;  %v2785_v52 = vld [vmem:[%s4142_s8 + $0xa8] sm:$0xff] }
0x1927   :  { %v2323_v11 = vsel %vm1662_vm7, %v2321_v58, -inf }
0x1928   :  { %2324 = vmax.xlane.f32.xlu0 %v2323_v11 }
0x193a   :  { %v2253_v38 = vpop.xlane.xlu0 %2252 }
0x193b   :  { %v2254_v39 = vsub.f32 %v2249_v54, %v2253_v38 }
0x193d   :  { %v2255_v42 = vmul.f32 1.442695, %v2254_v39 }
0x193f   :  { %3127 = vpow2.f32 %v2255_v42 }
0x1945   :  { %v3128_v6 = vpop.eup %3127 }
0x1946   :  { %v2257_v7 = vsel %vm1662_vm7, %v3128_v6, 0.0 }
0x1947   :  { %2258 = vadd.xlane.f32.xlu1 %v2257_v7 }
0x194d   :  { %v2368_v37 = vpop.permute.xlu0 %2367 }
0x194e   :  { %2811 = vmatpush.xpose.msk.msra.mxu1 %vm147_vm8, %v2368_v37 }
0x1952   :  { %2812 = vmatpush.xpose.msk.msra.mxu1 %vm147_vm8, %v2366_v55 }
0x1955   :  { %v2364_v35 = vpop.permute.xlu0 %2363 }
0x1960   :  { %2439 = vrot.lane.b32.xlu1 %v3991_v28, %s3177_s25 }
0x199b   :  { %v2325_v15 = vpop.xlane.xlu0 %2324 }
0x199c   :  { %v2326_v43 = vsub.f32 %v2321_v58, %v2325_v15  ;;  %v2784_v58 = vld [vmem:[%s4142_s8 + $0xa0] sm:$0xff] }
0x199e   :  { %v2327_v13 = vmul.f32 1.442695, %v2326_v43  ;;  %v2779_v43 = vld [vmem:[%s4141_s7 + $0x78] sm:$0xff] }
0x19a0   :  { %3129 = vpow2.f32 %v2327_v13  ;;  %v2777_v13 = vld [vmem:[%s4141_s7 + $0x68] sm:$0xff] }
0x19a6   :  { %v3130_v47 = vpop.eup %3129 }
0x19a7   :  { %v2329_v36 = vsel %vm1662_vm7, %v3130_v47, 0.0 }
0x19a8   :  { %2330 = vadd.xlane.f32.xlu0 %v2329_v36  ;;  %v2795_v36 = vld [vmem:[%s4142_s8 + $0xf8] sm:$0xff] }
0x19ba   :  { %v2259_v40 = vpop.xlane.xlu1 %2258 }
0x19bb   :  { %3131 = vrcp.f32 %v2259_v40  ;;  %v2794_v40 = vld [vmem:[%s4142_s8 + $0xf0] sm:$0xff] }
0x19bc   :  { %2994 = vrot.lane.b32.xlu0 %v4007_v46, %s3178_s26 }
0x19c1   :  { %v3132_v14 = vpop.eup %3131 }
0x19c2   :  { %v2261_v1 = vmul.f32 %v3132_v14, %v3128_v6  ;;  %v2793_v14 = vld [vmem:[%s4142_s8 + $0xe8] sm:$0xff] }
0x19c4   :  { %2806 = vmatmul.msk.f32.vlgmr.msrb.gmra.mxu1 %vm179_vm9, %v2261_v1  ;;  %v2792_v1 = vld [vmem:[%s4142_s8 + $0xe0] sm:$0xff] }
0x19cc   :  { %2813 = vmatmul.msk.f32.vlgmr.msra.gmra.mxu1 %vm147_vm8, %v2364_v35 }
0x19d2   :  { %v2440_v48 = vpop.permute.xlu1 %2439 }
0x19d3   :  { %2815 = vmatpush.xpose.msk.msra.mxu2 %vm147_vm8, %v2440_v48 }
0x19d7   :  { %2816 = vmatpush.xpose.msk.msra.mxu2 %vm147_vm8, %v2438_v44 }
0x19da   :  { %2817 = vmatmul.msk.f32.vlgmr.msra.gmra.mxu2 %vm147_vm8, %v2436_v0  ;;  %v2791_v0 = vld [vmem:[%s4142_s8 + $0xd8] sm:$0xff] }
0x19db   :  { %2604 = vmatpush.msrb.mxu2 %v2795_v36 }
0x19dd   :  { %2605 = vmatpush.msrb.mxu2 %v2794_v40 }
0x19df   :  { %2606 = vmatpush.msrb.mxu2 %v2793_v14 }
0x19e1   :  { %2607 = vmatpush.msrb.mxu2 %v2792_v1 }
0x19e3   :  { %2608 = vmatpush.msrb.mxu2 %v2791_v0 }
0x1a1b   :  { %v2331_v53 = vpop.xlane.xlu0 %2330 }
0x1a2e   :  { %v2995_v56 = vpop.permute.xlu0 %2994 }
0x1a2f   :  { %v2996_v57 = vunpack.i.l.bf16 %v2995_v56  ;;  %v2997_v59 = vunpack.i.h.bf16 %v2995_v56  ;;  %v2790_v56 = vld [vmem:[%s4142_s8 + $0xd0] sm:$0xff] }
0x1a30   :  { %2609 = vmatpush.msrb.mxu2 %v2790_v56 }
0x1a31   :  { %2429 = vmatpush.msra.mxu3 %v2996_v57 }
0x1a33   :  { %2430 = vmatpush.msra.mxu3 %v2997_v59 }
0x1a35   :  { %2584 = vmatpush.msrb.mxu3 %v2779_v43 }
0x1a37   :  { %2585 = vmatpush.msrb.mxu3 %v2777_v13 }
0x1a41   :  { %v4046_v61 = vpop.f32.mrf.mxu1 }
0x1a49   :  { %v2392_v28 = vpop.f32.mrf.mxu1 }
0x1a4a   :  { %v2393_v62 = vadd.f32 %v2392_v28, %v3855_v8 }
0x1a4c   :  { %v2395_v10 = vsel %vm1662_vm7, %v2393_v62, -inf }
0x1a4d   :  { %2396 = vmax.xlane.f32.xlu2 %v2395_v10 }
0x1a5d   :  { %v2464_v63 = vpop.f32.mrf.mxu2 }
0x1a5e   :  { %v2465_v2 = vadd.f32 %v2464_v63, %v3855_v8  ;;  %v3013_v63 = vld [vmem:[%s4138_s4 + $0xa] ss:$0 sm:$0xff] }
0x1a60   :  { %v2467_v3 = vsel %vm1662_vm7, %v2465_v2, -inf }
0x1a61   :  { %2468 = vmax.xlane.f32.xlu1 %v2467_v3 }
0x1a7a   :  { %2989 = vrot.lane.b32.xlu1 %v4007_v46, %s3174_s22 }
0x1ac0   :  { %v2397_v33 = vpop.xlane.xlu2 %2396 }
0x1ac1   :  { %v2398_v5 = vsub.f32 %v2393_v62, %v2397_v33 }
0x1ac3   :  { %v2399_v9 = vmul.f32 1.442695, %v2398_v5 }
0x1ad4   :  { %v2469_v4 = vpop.xlane.xlu1 %2468 }
0x1ad5   :  { %v2470_v50 = vsub.f32 %v2465_v2, %v2469_v4  ;;  %v2789_v4 = vld [vmem:[%s4142_s8 + $0xc8] sm:$0xff] }
0x1ad6   :  { %2610 = vmatpush.msrb.mxu2 %v2789_v4 }
0x1ad7   :  { %v2471_v51 = vmul.f32 1.442695, %v2470_v50  ;;  %v2788_v50 = vld [vmem:[%s4142_s8 + $0xc0] sm:$0xff] }
0x1ad8   :  { %2611 = vmatpush.msrb.mxu2 %v2788_v50 }
0x1ad9   :  { %3133 = vpow2.f32 %v2471_v51 }
0x1ada   :  { %3135 = vpow2.f32 %v2399_v9 }
0x1adb   :  { %3137 = vrcp.f32 %v2331_v53 }
0x1adf   :  { %v3134_v12 = vpop.eup %3133 }
0x1ae0   :  { %v2473_v41 = vsel %vm1662_vm7, %v3134_v12, 0.0  ;;  %v3136_v17 = vpop.eup %3135 }
0x1ae1   :  { %2474 = vadd.xlane.f32.xlu2 %v2473_v41  ;;  %v2401_v8 = vsel %vm1662_vm7, %v3136_v17, 0.0  ;;  %v3138_v19 = vpop.eup %3137 }
0x1ae2   :  { %v2333_v21 = vmul.f32 %v3138_v19, %v3130_v47  ;;  %v2775_v47 = vld [vmem:[%s4141_s7 + $0x58] sm:$0xff] }
0x1ae3   :  { %2586 = vmatpush.msrb.mxu3 %v2775_v47 }
0x1ae9   :  { %2402 = vadd.xlane.f32.xlu2 %v2401_v8 }
0x1aec   :  { %v2990_v18 = vpop.permute.xlu1 %2989 }
0x1aed   :  { %v2991_v60 = vunpack.i.l.bf16 %v2990_v18  ;;  %v2992_v20 = vunpack.i.h.bf16 %v2990_v18 }
0x1aef   :  { %2357 = vmatpush.msrb.mxu0 %v2991_v60 }
0x1af1   :  { %2358 = vmatpush.msrb.mxu0 %v2992_v20 }
0x1af2   :  { %2810 = vmatmul.msk.f32.vlgmr.msrb.gmra.mxu0 %vm179_vm9, %v2333_v21 }
0x1b01   :  { %2999 = vrot.lane.b32.xlu2 %v4007_v46, %s3175_s23  ;;  %v2787_v46 = vld [vmem:[%s4142_s8 + $0xb8] sm:$0xff] }
0x1b02   :  { %2537 = vmatpush.msrb.mxu1 %v2787_v46 }
0x1b04   :  { %2538 = vmatpush.msrb.mxu1 %v2786_v32 }
0x1b06   :  { %2539 = vmatpush.msrb.mxu1 %v2785_v52 }
0x1b08   :  { %2540 = vmatpush.msrb.mxu1 %v2784_v58 }
0x1b54   :  { %v2475_v22 = vpop.xlane.xlu2 %2474 }
0x1b5c   :  { %v2403_v23 = vpop.xlane.xlu2 %2402 }
0x1b5d   :  { %3139 = vrcp.f32 %v2403_v23 }
0x1b5e   :  { %3141 = vrcp.f32 %v2475_v22 }
0x1b63   :  { %v3140_v49 = vpop.eup %3139 }
0x1b64   :  { %v2405_v24 = vmul.f32 %v3140_v49, %v3136_v17  ;;  %v3000_v25 = vpop.permute.xlu2 %2999  ;;  %v3142_v27 = vpop.eup %3141 }
0x1b65   :  { %v3001_v29 = vunpack.i.l.bf16 %v3000_v25  ;;  %v3002_v30 = vunpack.i.h.bf16 %v3000_v25  ;;  %v2477_v31 = vmul.f32 %v3142_v27, %v3134_v12 }
0x1b66   :  { %2814 = vmatmul.msk.f32.vlgmr.msra.gmra.mxu3 %vm179_vm9, %v2405_v24  ;;  %v3014_v24 = vld [vmem:[%s4138_s4 + $0xb] ss:$0 sm:$0xff] }
0x1b67   :  { %2501 = vmatpush.msra.mxu0 %v3001_v29 }
0x1b69   :  { %2502 = vmatpush.msra.mxu0 %v3002_v30 }
0x1b6a   :  { %2818 = vmatmul.msk.f32.vlgmr.msra.gmra.mxu0 %vm179_vm9, %v2477_v31 }
0x1b6f   :  { %v2360_v45 = vpop.f32.mrf.mxu0 }
0x1b70   :  { %2508 = vrot.lane.b32.xlu0 %v2360_v45, %s3185_s0 }
0x1be2   :  { %v2509_v11 = vpop.permute.xlu0 %2508 }
0x1be3   :  { %v2519_v38 = vsel %vm147_vm8, %v4046_v61, %v2509_v11 }
0x1be7   :  { %v2504_v54 = vpop.f32.mrf.mxu0 }
0x1be8   :  { %2516 = vrot.lane.b32.xlu0 %v2504_v54, %s3186_s13  ;;  %s2646_s13 = sshll.u32 %s3189_s15, 4  ;;  %s2647_s13 = int_to_ptr.vmem [resolvable:$true] %s2646_s13 }
0x1be9   :  { %v2432_v34 = vpop.f32.mrf.mxu3 }
0x1bea   :  { %2512 = vrot.lane.b32.xlu1 %v2432_v34, %s3187_s14 }
0x1c5a   :  { %v2517_v42 = vpop.permute.xlu0 %2516 }
0x1c5c   :  { %v2513_v39 = vpop.permute.xlu1 %2512 }
0x1c5d   :  { %v2520_v6 = vsel %vm179_vm9, %v2519_v38, %v2513_v39 }
0x1c5e   :  { %v2521_v7 = vsel %vm553_vm10, %v2520_v6, %v2517_v42 }
0x1c5f   :  { %2819 = vmatmul.msk.f32.vlgmr.msrb.gmra.mxu1 %vm67_vm0, %v2521_v7 }
0x1cdc   :  { %v2542_v37 = vpop.f32.mrf.mxu1 }
0x1cdd   :  { %v2545_v55 = vadd.f32 %v2542_v37, %v3997_v26  ;;  %v2773_v26 = vld [vmem:[%s4141_s7 + $0x48] sm:$0xff] }
0x1cde   :  { %2587 = vmatpush.msrb.mxu3 %v2773_v26 }
0x1cdf   :  { %v2548_v35 = vmul.f32 %v2545_v55, %v2545_v55 }
0x1ce1   :  { %v2549_v15 = vsel %vm1462_vm12, %v2548_v35, 0.0 }
0x1ce2   :  { %2550 = vadd.xlane.f32.xlu1 %v2549_v15 }
0x1d55   :  { %v2551_v44 = vpop.xlane.xlu1 %2550 }
0x1d56   :  { %v2552_v48 = vmul.f32 %v2551_v44, %v3280_v16 }
0x1d58   :  { %v2553_v53 = vadd.f32 1e-06, %v2552_v48 }
0x1d5a   :  { %3143 = vrsqrt.f32 %v2553_v53  ;;  %vm2560_vm9 = vweird.f32 %v2553_v53 }
0x1d60   :  { %v3144_v57 = vpop.eup %3143 }
0x1d61   :  { %v2555_v59 = vmul.f32 %v3144_v57, %v2553_v53  ;;  %vm2561_vm8 = vweird.f32 %v3144_v57 }
0x1d62   :  { %vm2562_vm10 = vmor %vm2560_vm9, %vm2561_vm8 }
0x1d63   :  { %v2556_v61 = vmul.f32 %v3144_v57, %v2555_v59 }
0x1d65   :  { %v2557_v28 = vmul.f32 0.5, %v2556_v61 }
0x1d67   :  { %v2558_v62 = vsub.f32 1.5, %v2557_v28 }
0x1d69   :  { %v2559_v10 = vmul.f32 %v3144_v57, %v2558_v62 }
0x1d6b   :  { %v2563_v2 = vsel %vm2562_vm10, %v3144_v57, %v2559_v10 }
0x1d6c   :  { %v2564_v3 = vmul.f32 %v2563_v2, %v2545_v55 }
0x1d6e   :  { %v2568_v33 = vmul.f32 %v3013_v63, %v2564_v3 }
0x1d70   :  { %2821 = vmatmul.msk.f32.vlgmr.msrb.gmra.mxu3 %vm67_vm0, %v2568_v33 }
0x1df3   :  { %v2589_v5 = vpop.f32.mrf.mxu3 }
0x1df4   :  { %v2592_v51 = vmax.f32 %v2589_v5, 0.0 }
0x1df6   :  { %2822 = vmatmul.msk.f32.vlgmr.msrb.gmra.mxu2 %vm691_vm2, %v2592_v51 }
0x1e79   :  { %v2613_v9 = vpop.f32.mrf.mxu2 }
0x1e7a   :  { %v2616_v12 = vadd.f32 %v2613_v9, %v2545_v55 }
0x1e7c   :  { %v2619_v41 = vmul.f32 %v2616_v12, %v2616_v12 }
0x1e7e   :  { %v2620_v17 = vsel %vm1462_vm12, %v2619_v41, 0.0 }
0x1e7f   :  { %2621 = vadd.xlane.f32.xlu2 %v2620_v17 }
0x1ef2   :  { %v2622_v8 = vpop.xlane.xlu2 %2621 }
0x1ef3   :  { %v2623_v18 = vmul.f32 %v2622_v8, %v3280_v16 }
0x1ef5   :  { %v2624_v19 = vadd.f32 1e-06, %v2623_v18 }
0x1ef7   :  { %3145 = vrsqrt.f32 %v2624_v19  ;;  %vm2631_vm7 = vweird.f32 %v2624_v19 }
0x1efd   :  { %v3146_v60 = vpop.eup %3145 }
0x1efe   :  { %v2626_v20 = vmul.f32 %v3146_v60, %v2624_v19  ;;  %vm2632_vm0 = vweird.f32 %v3146_v60 }
0x1eff   :  { %vm2633_vm2 = vmor %vm2631_vm7, %vm2632_vm0 }
0x1f00   :  { %v2627_v21 = vmul.f32 %v3146_v60, %v2626_v20 }
0x1f02   :  { %v2628_v22 = vmul.f32 0.5, %v2627_v21 }
0x1f04   :  { %v2629_v23 = vsub.f32 1.5, %v2628_v22 }
0x1f06   :  { %v2630_v49 = vmul.f32 %v3146_v60, %v2629_v23 }
0x1f08   :  { %v2634_v25 = vsel %vm2633_vm2, %v3146_v60, %v2630_v49 }
0x1f09   :  { %v2635_v16 = vmul.f32 %v2634_v25, %v2616_v12 }
0x1f0b   :  { %v2639_v27 = vmul.f32 %v3014_v24, %v2635_v16 }
0x1f0d   :  { %2640 = vst.msk [vmem:[#allocation2] sm:$0x3] %vm1462_vm12, %v2639_v27 }
0x1f0e   :  { %2651 = dma.vmem_to_hbm [thread:$0]  %s2647_s13, 32, %s2649_s18, [#allocation3]  }
0x1f0f   :  { %3171 = dma.done.wait [#allocation3], 32  }
0x1f10   :  { %3172 = vsyncadd [#allocation3], 4294967264 }
0x1f11   :  { %2656 = vsyncpa [#allocation3], 1 }

</bundles_post_ra>
